<compile_context>
chip_gen: v7x
topology: tpu7x:2x2x1
jax: 0.10.0
libtpu: 0.0.40
codegen_flags: <defaults>
</compile_context>

<pallas_src>
import math

import jax
import jax.numpy as jnp
from jax.experimental import pallas as pl
from jax.experimental.pallas import tpu as pltpu

_BN_EPS = 1e-5
_BN_SCALE = 1.0 / math.sqrt(1.0 + _BN_EPS)
_LANES = 128


def _round_up(n, m):
    return ((n + m - 1) // m) * m


# ----------------------------- Pallas kernel (hot path) -----------------------------

def _make_conv_bn_relu_kernel(K, stride, Hq, Ho, Wo, cin, coutp):
    """Fused Conv2d(KxK, stride, bias=False) + folded BatchNorm + ReLU (one image)."""

    def kernel(x_ref, w_ref, b_ref, o_ref):
        # x_ref : (1, s*s*Hq, Wq, cin)   bf16  phase-layout padded input
        # w_ref : (K*K, cin, coutp)      bf16  BN-scale-folded per-tap weights
        # b_ref : (1, coutp)             f32   folded BN bias
        # o_ref : (1, Ho, Wo, coutp)     f32
        acc = jnp.zeros((Ho * Wo, coutp), jnp.float32)
        for kh in range(K):
            for kw in range(K):
                # phase index + in-phase offsets are all static Python ints.
                ph = (kh % stride) * stride + (kw % stride)
                r0 = ph * Hq + kh // stride
                c0 = kw // stride
                tap = x_ref[0, r0:r0 + Ho, c0:c0 + Wo, :]          # (Ho, Wo, cin)
                # Wo is a multiple of 8 at these shapes -> clean sublane merge.
                acc = acc + jnp.dot(tap.reshape(Ho * Wo, cin),
                                    w_ref[kh * K + kw],
                                    preferred_element_type=jnp.float32)
        y = jnp.maximum(acc + b_ref[...], 0.0)                     # f32 epilogue
        o_ref[...] = y.reshape(1, Ho, Wo, coutp)

    return kernel


# ----------------------------- Pallas wrapper -----------------------------

def fused_conv_bn_relu(x, w_folded, bias, *, K, stride, padding, cout):
    """x: (B,H,W,Cin) NHWC.  w_folded: (K*K,Cin,Coutp) bf16.  Returns (B,Ho,Wo,cout) f32."""
    B, H, W, Cin = x.shape
    s = stride
    Hp, Wp = H + 2 * padding, W + 2 * padding
    Ho = (Hp - K) // s + 1
    Wo = (Wp - K) // s + 1
    Hq = max(-(-Hp // s), Ho + (K - 1) // s)
    Wq = max(-(-Wp // s), Wo + (K - 1) // s)
    coutp = w_folded.shape[-1]

    # Pad + duplication-free phase re-layout (pure reshape/transpose, bf16 MXU input).
    xb = x.astype(jnp.bfloat16)
    xp = jnp.pad(xb, ((0, 0),
                      (padding, s * Hq - H - padding),
                      (padding, s * Wq - W - padding),
                      (0, 0)))
    xph = xp.reshape(B, Hq, s, Wq, s, Cin).transpose(0, 2, 4, 1, 3, 5)
    xph = xph.reshape(B, s * s * Hq, Wq, Cin)

    kernel = _make_conv_bn_relu_kernel(K, s, Hq, Ho, Wo, Cin, coutp)
    out = pl.pallas_call(
        kernel,
        out_shape=jax.ShapeDtypeStruct((B, Ho, Wo, coutp), jnp.float32),
        grid=(B,),
        in_specs=[
            pl.BlockSpec((1, s * s * Hq, Wq, Cin), lambda b: (b, 0, 0, 0)),
            pl.BlockSpec((K * K, Cin, coutp), lambda b: (0, 0, 0)),
            pl.BlockSpec((1, coutp), lambda b: (0, 0)),
        ],
        out_specs=pl.BlockSpec((1, Ho, Wo, coutp), lambda b: (b, 0, 0, 0)),
        compiler_params=pltpu.CompilerParams(
            dimension_semantics=("parallel",),
            vmem_limit_bytes=32 * 1024 * 1024),
    )(xph, w_folded, bias)
    return out[..., :cout]


# ----------------------------- parameters -----------------------------

def init_conv_params(key, cin, cout, K):
    """Conv weight ~ N(0, sqrt(2/(K*K*cout))) (RANet _init_weights); BN folded in."""
    std = math.sqrt(2.0 / (K * K * cout))
    w = jax.random.normal(key, (K, K, cin, cout), jnp.float32) * std
    coutp = _round_up(cout, _LANES)
    w_f = w * _BN_SCALE                                            # fold BN scale
    w_f = jnp.pad(w_f, ((0, 0), (0, 0), (0, 0), (0, coutp - cout)))  # lane-dense N
    w_f = w_f.reshape(K * K, cin, coutp).astype(jnp.bfloat16)
    bias = jnp.zeros((1, coutp), jnp.float32)                      # folded BN bias
    return {'w': w_f, 'b': bias}


# ----------------------------- module (mirrors ResAdapInitial) -----------------------------

class ResAdapInitialPallas:
    def __init__(self, scale_list, grFactor, down_scale_params, key):
        dsp = dict(down_scale_params)
        in_channels = dsp.pop('in_channels')
        out_channels = dsp.pop('out_channels')
        K = dsp.get('kernel', 3)
        padding = dsp.get('padding', 1)

        specs = [(in_channels, out_channels * grFactor[0], 1)]
        for i in range(1, len(scale_list)):
            cin = out_channels * grFactor[i - 1]
            stride = 1 if scale_list[i - 1] == scale_list[i] else 2
            specs.append((cin, out_channels * grFactor[i], stride))

        keys = jax.random.split(key, len(specs))
        self.params = [init_conv_params(keys[i], ci, co, K)
                       for i, (ci, co, _) in enumerate(specs)]
        self.configs = [{'K': K, 'stride': st, 'padding': padding, 'cout': co}
                        for (_, co, st) in specs]
        self._forward_jit = jax.jit(self._forward)

    def _forward(self, params, x_nchw):
        x = jnp.transpose(x_nchw, (0, 2, 3, 1)).astype(jnp.float32)  # NCHW -> NHWC
        res = []
        for p, cfg in zip(params, self.configs):
            x = fused_conv_bn_relu(x, p['w'], p['b'],
                                   K=cfg['K'], stride=cfg['stride'],
                                   padding=cfg['padding'], cout=cfg['cout'])
            res.append(jnp.transpose(x, (0, 3, 1, 2)))               # NHWC -> NCHW
        return res[::-1]                                             # reversed, like the reference

    def __call__(self, x_nchw):
        return self._forward_jit(self.params, x_nchw)


# ----------------------------- main -----------------------------

if __name__ == "__main__":
    key = jax.random.PRNGKey(0)
    kp, kx = jax.random.split(key)

    scale_list = [1, 2, 2]
    grFactor = [1, 2, 4]
    down_scale_params = dict(in_channels=3, out_channels=8, kernel=3, padding=1)

    model = ResAdapInitialPallas(scale_list, grFactor, down_scale_params, kp)

    x = jax.random.normal(kx, (2, 3, 16, 16), jnp.float32)   # NCHW, like the PyTorch module
    outs = model(x)
    outs = jax.block_until_ready(outs)

    expected = [(2, 32, 8, 8), (2, 16, 8, 8), (2, 8, 16, 16)]
    assert [tuple(o.shape) for o in outs] == expected, [tuple(o.shape) for o in outs]
    assert all(bool(jnp.isfinite(o).all()) for o in outs)
    print("KERNEL_OK")
</pallas_src>

<mosaic_0001>
module attributes {stable_mosaic.version = 11 : i64} {
  func.func @kernel(%arg0: i32, %arg1: memref<1x18x18x3xbf16, #tpu.memory_space<vmem>>, %arg2: memref<9x3x128xbf16, #tpu.memory_space<vmem>>, %arg3: memref<1x128xf32, #tpu.memory_space<vmem>>, %arg4: memref<1x16x16x128xf32, #tpu.memory_space<vmem>>) attributes {dimension_semantics = [#tpu.dimension_semantics<parallel>], iteration_bounds = array<i64: 2>, scalar_prefetch = 0 : i64, scratch_operands = 0 : i64, tpu.core_type = #tpu.core_type<tc>, window_params = [{transform_indices = @transform_0, window_bounds = array<i64: 1, 18, 18, 3>}, {pipeline_mode = #tpu.pipeline_mode<synchronous>, transform_indices = @transform_1, window_bounds = array<i64: 9, 3, 128>}, {pipeline_mode = #tpu.pipeline_mode<synchronous>, transform_indices = @transform_2, window_bounds = array<i64: 1, 128>}, {transform_indices = @transform_3, window_bounds = array<i64: 1, 16, 16, 128>}]} {
    %cst = arith.constant 0.000000e+00 : f32
    %0 = vector.broadcast %cst : f32 to vector<256x128xf32>
    %c0 = arith.constant 0 : index
    %c0_0 = arith.constant 0 : index
    %c0_1 = arith.constant 0 : index
    %c0_2 = arith.constant 0 : index
    %1 = vector.load %arg1[%c0, %c0_0, %c0_1, %c0_2] : memref<1x18x18x3xbf16, #tpu.memory_space<vmem>>, vector<1x16x16x3xbf16>
    %2 = vector.shape_cast %1 : vector<1x16x16x3xbf16> to vector<16x16x3xbf16>
    %3 = vector.shape_cast %2 : vector<16x16x3xbf16> to vector<256x3xbf16>
    %c0_3 = arith.constant 0 : index
    %c0_4 = arith.constant 0 : index
    %c0_5 = arith.constant 0 : index
    %4 = vector.load %arg2[%c0_3, %c0_4, %c0_5] : memref<9x3x128xbf16, #tpu.memory_space<vmem>>, vector<1x3x128xbf16>
    %5 = vector.shape_cast %4 : vector<1x3x128xbf16> to vector<3x128xbf16>
    %cst_6 = arith.constant dense<0.000000e+00> : vector<256x128xf32>
    %6 = tpu.matmul %3, %5, %cst_6 {dimension_numbers = #tpu.dot_dimension_numbers<[1], [0], [0], [1], [0, 0, 1, 1], [], []>} : vector<256x3xbf16>, vector<3x128xbf16>, vector<256x128xf32> -> vector<256x128xf32>
    %7 = arith.addf %0, %6 : vector<256x128xf32>
    %c0_7 = arith.constant 0 : index
    %c0_8 = arith.constant 0 : index
    %c1 = arith.constant 1 : index
    %c0_9 = arith.constant 0 : index
    %8 = vector.load %arg1[%c0_7, %c0_8, %c1, %c0_9] : memref<1x18x18x3xbf16, #tpu.memory_space<vmem>>, vector<1x16x16x3xbf16>
    %9 = vector.shape_cast %8 : vector<1x16x16x3xbf16> to vector<16x16x3xbf16>
    %10 = vector.shape_cast %9 : vector<16x16x3xbf16> to vector<256x3xbf16>
    %c1_10 = arith.constant 1 : index
    %c0_11 = arith.constant 0 : index
    %c0_12 = arith.constant 0 : index
    %11 = vector.load %arg2[%c1_10, %c0_11, %c0_12] : memref<9x3x128xbf16, #tpu.memory_space<vmem>>, vector<1x3x128xbf16>
    %12 = vector.shape_cast %11 : vector<1x3x128xbf16> to vector<3x128xbf16>
    %cst_13 = arith.constant dense<0.000000e+00> : vector<256x128xf32>
    %13 = tpu.matmul %10, %12, %cst_13 {dimension_numbers = #tpu.dot_dimension_numbers<[1], [0], [0], [1], [0, 0, 1, 1], [], []>} : vector<256x3xbf16>, vector<3x128xbf16>, vector<256x128xf32> -> vector<256x128xf32>
    %14 = arith.addf %7, %13 : vector<256x128xf32>
    %c0_14 = arith.constant 0 : index
    %c0_15 = arith.constant 0 : index
    %c2 = arith.constant 2 : index
    %c0_16 = arith.constant 0 : index
    %15 = vector.load %arg1[%c0_14, %c0_15, %c2, %c0_16] : memref<1x18x18x3xbf16, #tpu.memory_space<vmem>>, vector<1x16x16x3xbf16>
    %16 = vector.shape_cast %15 : vector<1x16x16x3xbf16> to vector<16x16x3xbf16>
    %17 = vector.shape_cast %16 : vector<16x16x3xbf16> to vector<256x3xbf16>
    %c2_17 = arith.constant 2 : index
    %c0_18 = arith.constant 0 : index
    %c0_19 = arith.constant 0 : index
    %18 = vector.load %arg2[%c2_17, %c0_18, %c0_19] : memref<9x3x128xbf16, #tpu.memory_space<vmem>>, vector<1x3x128xbf16>
    %19 = vector.shape_cast %18 : vector<1x3x128xbf16> to vector<3x128xbf16>
    %cst_20 = arith.constant dense<0.000000e+00> : vector<256x128xf32>
    %20 = tpu.matmul %17, %19, %cst_20 {dimension_numbers = #tpu.dot_dimension_numbers<[1], [0], [0], [1], [0, 0, 1, 1], [], []>} : vector<256x3xbf16>, vector<3x128xbf16>, vector<256x128xf32> -> vector<256x128xf32>
    %21 = arith.addf %14, %20 : vector<256x128xf32>
    %c0_21 = arith.constant 0 : index
    %c1_22 = arith.constant 1 : index
    %c0_23 = arith.constant 0 : index
    %c0_24 = arith.constant 0 : index
    %22 = vector.load %arg1[%c0_21, %c1_22, %c0_23, %c0_24] : memref<1x18x18x3xbf16, #tpu.memory_space<vmem>>, vector<1x16x16x3xbf16>
    %23 = vector.shape_cast %22 : vector<1x16x16x3xbf16> to vector<16x16x3xbf16>
    %24 = vector.shape_cast %23 : vector<16x16x3xbf16> to vector<256x3xbf16>
    %c3 = arith.constant 3 : index
    %c0_25 = arith.constant 0 : index
    %c0_26 = arith.constant 0 : index
    %25 = vector.load %arg2[%c3, %c0_25, %c0_26] : memref<9x3x128xbf16, #tpu.memory_space<vmem>>, vector<1x3x128xbf16>
    %26 = vector.shape_cast %25 : vector<1x3x128xbf16> to vector<3x128xbf16>
    %cst_27 = arith.constant dense<0.000000e+00> : vector<256x128xf32>
    %27 = tpu.matmul %24, %26, %cst_27 {dimension_numbers = #tpu.dot_dimension_numbers<[1], [0], [0], [1], [0, 0, 1, 1], [], []>} : vector<256x3xbf16>, vector<3x128xbf16>, vector<256x128xf32> -> vector<256x128xf32>
    %28 = arith.addf %21, %27 : vector<256x128xf32>
    %c0_28 = arith.constant 0 : index
    %c1_29 = arith.constant 1 : index
    %c1_30 = arith.constant 1 : index
    %c0_31 = arith.constant 0 : index
    %29 = vector.load %arg1[%c0_28, %c1_29, %c1_30, %c0_31] : memref<1x18x18x3xbf16, #tpu.memory_space<vmem>>, vector<1x16x16x3xbf16>
    %30 = vector.shape_cast %29 : vector<1x16x16x3xbf16> to vector<16x16x3xbf16>
    %31 = vector.shape_cast %30 : vector<16x16x3xbf16> to vector<256x3xbf16>
    %c4 = arith.constant 4 : index
    %c0_32 = arith.constant 0 : index
    %c0_33 = arith.constant 0 : index
    %32 = vector.load %arg2[%c4, %c0_32, %c0_33] : memref<9x3x128xbf16, #tpu.memory_space<vmem>>, vector<1x3x128xbf16>
    %33 = vector.shape_cast %32 : vector<1x3x128xbf16> to vector<3x128xbf16>
    %cst_34 = arith.constant dense<0.000000e+00> : vector<256x128xf32>
    %34 = tpu.matmul %31, %33, %cst_34 {dimension_numbers = #tpu.dot_dimension_numbers<[1], [0], [0], [1], [0, 0, 1, 1], [], []>} : vector<256x3xbf16>, vector<3x128xbf16>, vector<256x128xf32> -> vector<256x128xf32>
    %35 = arith.addf %28, %34 : vector<256x128xf32>
    %c0_35 = arith.constant 0 : index
    %c1_36 = arith.constant 1 : index
    %c2_37 = arith.constant 2 : index
    %c0_38 = arith.constant 0 : index
    %36 = vector.load %arg1[%c0_35, %c1_36, %c2_37, %c0_38] : memref<1x18x18x3xbf16, #tpu.memory_space<vmem>>, vector<1x16x16x3xbf16>
    %37 = vector.shape_cast %36 : vector<1x16x16x3xbf16> to vector<16x16x3xbf16>
    %38 = vector.shape_cast %37 : vector<16x16x3xbf16> to vector<256x3xbf16>
    %c5 = arith.constant 5 : index
    %c0_39 = arith.constant 0 : index
    %c0_40 = arith.constant 0 : index
    %39 = vector.load %arg2[%c5, %c0_39, %c0_40] : memref<9x3x128xbf16, #tpu.memory_space<vmem>>, vector<1x3x128xbf16>
    %40 = vector.shape_cast %39 : vector<1x3x128xbf16> to vector<3x128xbf16>
    %cst_41 = arith.constant dense<0.000000e+00> : vector<256x128xf32>
    %41 = tpu.matmul %38, %40, %cst_41 {dimension_numbers = #tpu.dot_dimension_numbers<[1], [0], [0], [1], [0, 0, 1, 1], [], []>} : vector<256x3xbf16>, vector<3x128xbf16>, vector<256x128xf32> -> vector<256x128xf32>
    %42 = arith.addf %35, %41 : vector<256x128xf32>
    %c0_42 = arith.constant 0 : index
    %c2_43 = arith.constant 2 : index
    %c0_44 = arith.constant 0 : index
    %c0_45 = arith.constant 0 : index
    %43 = vector.load %arg1[%c0_42, %c2_43, %c0_44, %c0_45] : memref<1x18x18x3xbf16, #tpu.memory_space<vmem>>, vector<1x16x16x3xbf16>
    %44 = vector.shape_cast %43 : vector<1x16x16x3xbf16> to vector<16x16x3xbf16>
    %45 = vector.shape_cast %44 : vector<16x16x3xbf16> to vector<256x3xbf16>
    %c6 = arith.constant 6 : index
    %c0_46 = arith.constant 0 : index
    %c0_47 = arith.constant 0 : index
    %46 = vector.load %arg2[%c6, %c0_46, %c0_47] : memref<9x3x128xbf16, #tpu.memory_space<vmem>>, vector<1x3x128xbf16>
    %47 = vector.shape_cast %46 : vector<1x3x128xbf16> to vector<3x128xbf16>
    %cst_48 = arith.constant dense<0.000000e+00> : vector<256x128xf32>
    %48 = tpu.matmul %45, %47, %cst_48 {dimension_numbers = #tpu.dot_dimension_numbers<[1], [0], [0], [1], [0, 0, 1, 1], [], []>} : vector<256x3xbf16>, vector<3x128xbf16>, vector<256x128xf32> -> vector<256x128xf32>
    %49 = arith.addf %42, %48 : vector<256x128xf32>
    %c0_49 = arith.constant 0 : index
    %c2_50 = arith.constant 2 : index
    %c1_51 = arith.constant 1 : index
    %c0_52 = arith.constant 0 : index
    %50 = vector.load %arg1[%c0_49, %c2_50, %c1_51, %c0_52] : memref<1x18x18x3xbf16, #tpu.memory_space<vmem>>, vector<1x16x16x3xbf16>
    %51 = vector.shape_cast %50 : vector<1x16x16x3xbf16> to vector<16x16x3xbf16>
    %52 = vector.shape_cast %51 : vector<16x16x3xbf16> to vector<256x3xbf16>
    %c7 = arith.constant 7 : index
    %c0_53 = arith.constant 0 : index
    %c0_54 = arith.constant 0 : index
    %53 = vector.load %arg2[%c7, %c0_53, %c0_54] : memref<9x3x128xbf16, #tpu.memory_space<vmem>>, vector<1x3x128xbf16>
    %54 = vector.shape_cast %53 : vector<1x3x128xbf16> to vector<3x128xbf16>
    %cst_55 = arith.constant dense<0.000000e+00> : vector<256x128xf32>
    %55 = tpu.matmul %52, %54, %cst_55 {dimension_numbers = #tpu.dot_dimension_numbers<[1], [0], [0], [1], [0, 0, 1, 1], [], []>} : vector<256x3xbf16>, vector<3x128xbf16>, vector<256x128xf32> -> vector<256x128xf32>
    %56 = arith.addf %49, %55 : vector<256x128xf32>
    %c0_56 = arith.constant 0 : index
    %c2_57 = arith.constant 2 : index
    %c2_58 = arith.constant 2 : index
    %c0_59 = arith.constant 0 : index
    %57 = vector.load %arg1[%c0_56, %c2_57, %c2_58, %c0_59] : memref<1x18x18x3xbf16, #tpu.memory_space<vmem>>, vector<1x16x16x3xbf16>
    %58 = vector.shape_cast %57 : vector<1x16x16x3xbf16> to vector<16x16x3xbf16>
    %59 = vector.shape_cast %58 : vector<16x16x3xbf16> to vector<256x3xbf16>
    %c8 = arith.constant 8 : index
    %c0_60 = arith.constant 0 : index
    %c0_61 = arith.constant 0 : index
    %60 = vector.load %arg2[%c8, %c0_60, %c0_61] : memref<9x3x128xbf16, #tpu.memory_space<vmem>>, vector<1x3x128xbf16>
    %61 = vector.shape_cast %60 : vector<1x3x128xbf16> to vector<3x128xbf16>
    %cst_62 = arith.constant dense<0.000000e+00> : vector<256x128xf32>
    %62 = tpu.matmul %59, %61, %cst_62 {dimension_numbers = #tpu.dot_dimension_numbers<[1], [0], [0], [1], [0, 0, 1, 1], [], []>} : vector<256x3xbf16>, vector<3x128xbf16>, vector<256x128xf32> -> vector<256x128xf32>
    %63 = arith.addf %56, %62 : vector<256x128xf32>
    %c0_63 = arith.constant 0 : index
    %c0_64 = arith.constant 0 : index
    %64 = vector.load %arg3[%c0_63, %c0_64] : memref<1x128xf32, #tpu.memory_space<vmem>>, vector<1x128xf32>
    %65 = vector.broadcast %64 : vector<1x128xf32> to vector<256x128xf32>
    %66 = arith.addf %63, %65 : vector<256x128xf32>
    %cst_65 = arith.constant 0.000000e+00 : f32
    %67 = vector.broadcast %cst_65 : f32 to vector<256x128xf32>
    %68 = arith.maximumf %66, %67 : vector<256x128xf32>
    %69 = vector.shape_cast %68 : vector<256x128xf32> to vector<1x16x16x128xf32>
    %c0_66 = arith.constant 0 : index
    %c0_67 = arith.constant 0 : index
    %c0_68 = arith.constant 0 : index
    %c0_69 = arith.constant 0 : index
    %70 = vector.load %arg4[%c0_66, %c0_67, %c0_68, %c0_69] : memref<1x16x16x128xf32, #tpu.memory_space<vmem>>, vector<1x16x16x128xf32>
    tpu.vector_store %arg4[%c0_66, %c0_67, %c0_68, %c0_69], %69 {strides = array<i32>} : memref<1x16x16x128xf32, #tpu.memory_space<vmem>>, vector<1x16x16x128xf32>,
    return
  }
  func.func @transform_0(%arg0: i32) -> (i32, i32, i32, i32) {
    %c0_i32 = arith.constant 0 : i32
    %c0_i32_0 = arith.constant 0 : i32
    %c0_i32_1 = arith.constant 0 : i32
    %c0_i32_2 = arith.constant 0 : i32
    return %arg0, %c0_i32, %c0_i32_0, %c0_i32_1 : i32, i32, i32, i32
  }
  func.func @transform_1(%arg0: i32) -> (i32, i32, i32) {
    %c0_i32 = arith.constant 0 : i32
    %c0_i32_0 = arith.constant 0 : i32
    %c0_i32_1 = arith.constant 0 : i32
    %c0_i32_2 = arith.constant 0 : i32
    return %c0_i32, %c0_i32_0, %c0_i32_1 : i32, i32, i32
  }
  func.func @transform_2(%arg0: i32) -> (i32, i32) {
    %c0_i32 = arith.constant 0 : i32
    %c0_i32_0 = arith.constant 0 : i32
    %c0_i32_1 = arith.constant 0 : i32
    return %c0_i32, %c0_i32_0 : i32, i32
  }
  func.func @transform_3(%arg0: i32) -> (i32, i32, i32, i32) {
    %c0_i32 = arith.constant 0 : i32
    %c0_i32_0 = arith.constant 0 : i32
    %c0_i32_1 = arith.constant 0 : i32
    %c0_i32_2 = arith.constant 0 : i32
    return %arg0, %c0_i32, %c0_i32_0, %c0_i32_1 : i32, i32, i32, i32
  }
}

module attributes {stable_mosaic.version = 11 : i64} {
  func.func @kernel(%arg0: i32, %arg1: memref<1x36x9x8xbf16, #tpu.memory_space<vmem>>, %arg2: memref<9x8x128xbf16, #tpu.memory_space<vmem>>, %arg3: memref<1x128xf32, #tpu.memory_space<vmem>>, %arg4: memref<1x8x8x128xf32, #tpu.memory_space<vmem>>) attributes {dimension_semantics = [#tpu.dimension_semantics<parallel>], iteration_bounds = array<i64: 2>, scalar_prefetch = 0 : i64, scratch_operands = 0 : i64, tpu.core_type = #tpu.core_type<tc>, window_params = [{transform_indices = @transform_0, window_bounds = array<i64: 1, 36, 9, 8>}, {pipeline_mode = #tpu.pipeline_mode<synchronous>, transform_indices = @transform_1, window_bounds = array<i64: 9, 8, 128>}, {pipeline_mode = #tpu.pipeline_mode<synchronous>, transform_indices = @transform_2, window_bounds = array<i64: 1, 128>}, {transform_indices = @transform_3, window_bounds = array<i64: 1, 8, 8, 128>}]} {
    %cst = arith.constant 0.000000e+00 : f32
    %0 = vector.broadcast %cst : f32 to vector<64x128xf32>
    %c0 = arith.constant 0 : index
    %c0_0 = arith.constant 0 : index
    %c0_1 = arith.constant 0 : index
    %c0_2 = arith.constant 0 : index
    %1 = vector.load %arg1[%c0, %c0_0, %c0_1, %c0_2] : memref<1x36x9x8xbf16, #tpu.memory_space<vmem>>, vector<1x8x8x8xbf16>
    %2 = vector.shape_cast %1 : vector<1x8x8x8xbf16> to vector<8x8x8xbf16>
    %3 = vector.shape_cast %2 : vector<8x8x8xbf16> to vector<64x8xbf16>
    %c0_3 = arith.constant 0 : index
    %c0_4 = arith.constant 0 : index
    %c0_5 = arith.constant 0 : index
    %4 = vector.load %arg2[%c0_3, %c0_4, %c0_5] : memref<9x8x128xbf16, #tpu.memory_space<vmem>>, vector<1x8x128xbf16>
    %5 = vector.shape_cast %4 : vector<1x8x128xbf16> to vector<8x128xbf16>
    %cst_6 = arith.constant dense<0.000000e+00> : vector<64x128xf32>
    %6 = tpu.matmul %3, %5, %cst_6 {dimension_numbers = #tpu.dot_dimension_numbers<[1], [0], [0], [1], [0, 0, 1, 1], [], []>} : vector<64x8xbf16>, vector<8x128xbf16>, vector<64x128xf32> -> vector<64x128xf32>
    %7 = arith.addf %0, %6 : vector<64x128xf32>
    %c0_7 = arith.constant 0 : index
    %c9 = arith.constant 9 : index
    %c0_8 = arith.constant 0 : index
    %c0_9 = arith.constant 0 : index
    %8 = vector.load %arg1[%c0_7, %c9, %c0_8, %c0_9] : memref<1x36x9x8xbf16, #tpu.memory_space<vmem>>, vector<1x8x8x8xbf16>
    %9 = vector.shape_cast %8 : vector<1x8x8x8xbf16> to vector<8x8x8xbf16>
    %10 = vector.shape_cast %9 : vector<8x8x8xbf16> to vector<64x8xbf16>
    %c1 = arith.constant 1 : index
    %c0_10 = arith.constant 0 : index
    %c0_11 = arith.constant 0 : index
    %11 = vector.load %arg2[%c1, %c0_10, %c0_11] : memref<9x8x128xbf16, #tpu.memory_space<vmem>>, vector<1x8x128xbf16>
    %12 = vector.shape_cast %11 : vector<1x8x128xbf16> to vector<8x128xbf16>
    %cst_12 = arith.constant dense<0.000000e+00> : vector<64x128xf32>
    %13 = tpu.matmul %10, %12, %cst_12 {dimension_numbers = #tpu.dot_dimension_numbers<[1], [0], [0], [1], [0, 0, 1, 1], [], []>} : vector<64x8xbf16>, vector<8x128xbf16>, vector<64x128xf32> -> vector<64x128xf32>
    %14 = arith.addf %7, %13 : vector<64x128xf32>
    %c0_13 = arith.constant 0 : index
    %c0_14 = arith.constant 0 : index
    %c1_15 = arith.constant 1 : index
    %c0_16 = arith.constant 0 : index
    %15 = vector.load %arg1[%c0_13, %c0_14, %c1_15, %c0_16] : memref<1x36x9x8xbf16, #tpu.memory_space<vmem>>, vector<1x8x8x8xbf16>
    %16 = vector.shape_cast %15 : vector<1x8x8x8xbf16> to vector<8x8x8xbf16>
    %17 = vector.shape_cast %16 : vector<8x8x8xbf16> to vector<64x8xbf16>
    %c2 = arith.constant 2 : index
    %c0_17 = arith.constant 0 : index
    %c0_18 = arith.constant 0 : index
    %18 = vector.load %arg2[%c2, %c0_17, %c0_18] : memref<9x8x128xbf16, #tpu.memory_space<vmem>>, vector<1x8x128xbf16>
    %19 = vector.shape_cast %18 : vector<1x8x128xbf16> to vector<8x128xbf16>
    %cst_19 = arith.constant dense<0.000000e+00> : vector<64x128xf32>
    %20 = tpu.matmul %17, %19, %cst_19 {dimension_numbers = #tpu.dot_dimension_numbers<[1], [0], [0], [1], [0, 0, 1, 1], [], []>} : vector<64x8xbf16>, vector<8x128xbf16>, vector<64x128xf32> -> vector<64x128xf32>
    %21 = arith.addf %14, %20 : vector<64x128xf32>
    %c0_20 = arith.constant 0 : index
    %c18 = arith.constant 18 : index
    %c0_21 = arith.constant 0 : index
    %c0_22 = arith.constant 0 : index
    %22 = vector.load %arg1[%c0_20, %c18, %c0_21, %c0_22] : memref<1x36x9x8xbf16, #tpu.memory_space<vmem>>, vector<1x8x8x8xbf16>
    %23 = vector.shape_cast %22 : vector<1x8x8x8xbf16> to vector<8x8x8xbf16>
    %24 = vector.shape_cast %23 : vector<8x8x8xbf16> to vector<64x8xbf16>
    %c3 = arith.constant 3 : index
    %c0_23 = arith.constant 0 : index
    %c0_24 = arith.constant 0 : index
    %25 = vector.load %arg2[%c3, %c0_23, %c0_24] : memref<9x8x128xbf16, #tpu.memory_space<vmem>>, vector<1x8x128xbf16>
    %26 = vector.shape_cast %25 : vector<1x8x128xbf16> to vector<8x128xbf16>
    %cst_25 = arith.constant dense<0.000000e+00> : vector<64x128xf32>
    %27 = tpu.matmul %24, %26, %cst_25 {dimension_numbers = #tpu.dot_dimension_numbers<[1], [0], [0], [1], [0, 0, 1, 1], [], []>} : vector<64x8xbf16>, vector<8x128xbf16>, vector<64x128xf32> -> vector<64x128xf32>
    %28 = arith.addf %21, %27 : vector<64x128xf32>
    %c0_26 = arith.constant 0 : index
    %c27 = arith.constant 27 : index
    %c0_27 = arith.constant 0 : index
    %c0_28 = arith.constant 0 : index
    %29 = vector.load %arg1[%c0_26, %c27, %c0_27, %c0_28] : memref<1x36x9x8xbf16, #tpu.memory_space<vmem>>, vector<1x8x8x8xbf16>
    %30 = vector.shape_cast %29 : vector<1x8x8x8xbf16> to vector<8x8x8xbf16>
    %31 = vector.shape_cast %30 : vector<8x8x8xbf16> to vector<64x8xbf16>
    %c4 = arith.constant 4 : index
    %c0_29 = arith.constant 0 : index
    %c0_30 = arith.constant 0 : index
    %32 = vector.load %arg2[%c4, %c0_29, %c0_30] : memref<9x8x128xbf16, #tpu.memory_space<vmem>>, vector<1x8x128xbf16>
    %33 = vector.shape_cast %32 : vector<1x8x128xbf16> to vector<8x128xbf16>
    %cst_31 = arith.constant dense<0.000000e+00> : vector<64x128xf32>
    %34 = tpu.matmul %31, %33, %cst_31 {dimension_numbers = #tpu.dot_dimension_numbers<[1], [0], [0], [1], [0, 0, 1, 1], [], []>} : vector<64x8xbf16>, vector<8x128xbf16>, vector<64x128xf32> -> vector<64x128xf32>
    %35 = arith.addf %28, %34 : vector<64x128xf32>
    %c0_32 = arith.constant 0 : index
    %c18_33 = arith.constant 18 : index
    %c1_34 = arith.constant 1 : index
    %c0_35 = arith.constant 0 : index
    %36 = vector.load %arg1[%c0_32, %c18_33, %c1_34, %c0_35] : memref<1x36x9x8xbf16, #tpu.memory_space<vmem>>, vector<1x8x8x8xbf16>
    %37 = vector.shape_cast %36 : vector<1x8x8x8xbf16> to vector<8x8x8xbf16>
    %38 = vector.shape_cast %37 : vector<8x8x8xbf16> to vector<64x8xbf16>
    %c5 = arith.constant 5 : index
    %c0_36 = arith.constant 0 : index
    %c0_37 = arith.constant 0 : index
    %39 = vector.load %arg2[%c5, %c0_36, %c0_37] : memref<9x8x128xbf16, #tpu.memory_space<vmem>>, vector<1x8x128xbf16>
    %40 = vector.shape_cast %39 : vector<1x8x128xbf16> to vector<8x128xbf16>
    %cst_38 = arith.constant dense<0.000000e+00> : vector<64x128xf32>
    %41 = tpu.matmul %38, %40, %cst_38 {dimension_numbers = #tpu.dot_dimension_numbers<[1], [0], [0], [1], [0, 0, 1, 1], [], []>} : vector<64x8xbf16>, vector<8x128xbf16>, vector<64x128xf32> -> vector<64x128xf32>
    %42 = arith.addf %35, %41 : vector<64x128xf32>
    %c0_39 = arith.constant 0 : index
    %c1_40 = arith.constant 1 : index
    %c0_41 = arith.constant 0 : index
    %c0_42 = arith.constant 0 : index
    %43 = vector.load %arg1[%c0_39, %c1_40, %c0_41, %c0_42] : memref<1x36x9x8xbf16, #tpu.memory_space<vmem>>, vector<1x8x8x8xbf16>
    %44 = vector.shape_cast %43 : vector<1x8x8x8xbf16> to vector<8x8x8xbf16>
    %45 = vector.shape_cast %44 : vector<8x8x8xbf16> to vector<64x8xbf16>
    %c6 = arith.constant 6 : index
    %c0_43 = arith.constant 0 : index
    %c0_44 = arith.constant 0 : index
    %46 = vector.load %arg2[%c6, %c0_43, %c0_44] : memref<9x8x128xbf16, #tpu.memory_space<vmem>>, vector<1x8x128xbf16>
    %47 = vector.shape_cast %46 : vector<1x8x128xbf16> to vector<8x128xbf16>
    %cst_45 = arith.constant dense<0.000000e+00> : vector<64x128xf32>
    %48 = tpu.matmul %45, %47, %cst_45 {dimension_numbers = #tpu.dot_dimension_numbers<[1], [0], [0], [1], [0, 0, 1, 1], [], []>} : vector<64x8xbf16>, vector<8x128xbf16>, vector<64x128xf32> -> vector<64x128xf32>
    %49 = arith.addf %42, %48 : vector<64x128xf32>
    %c0_46 = arith.constant 0 : index
    %c10 = arith.constant 10 : index
    %c0_47 = arith.constant 0 : index
    %c0_48 = arith.constant 0 : index
    %50 = vector.load %arg1[%c0_46, %c10, %c0_47, %c0_48] : memref<1x36x9x8xbf16, #tpu.memory_space<vmem>>, vector<1x8x8x8xbf16>
    %51 = vector.shape_cast %50 : vector<1x8x8x8xbf16> to vector<8x8x8xbf16>
    %52 = vector.shape_cast %51 : vector<8x8x8xbf16> to vector<64x8xbf16>
    %c7 = arith.constant 7 : index
    %c0_49 = arith.constant 0 : index
    %c0_50 = arith.constant 0 : index
    %53 = vector.load %arg2[%c7, %c0_49, %c0_50] : memref<9x8x128xbf16, #tpu.memory_space<vmem>>, vector<1x8x128xbf16>
    %54 = vector.shape_cast %53 : vector<1x8x128xbf16> to vector<8x128xbf16>
    %cst_51 = arith.constant dense<0.000000e+00> : vector<64x128xf32>
    %55 = tpu.matmul %52, %54, %cst_51 {dimension_numbers = #tpu.dot_dimension_numbers<[1], [0], [0], [1], [0, 0, 1, 1], [], []>} : vector<64x8xbf16>, vector<8x128xbf16>, vector<64x128xf32> -> vector<64x128xf32>
    %56 = arith.addf %49, %55 : vector<64x128xf32>
    %c0_52 = arith.constant 0 : index
    %c1_53 = arith.constant 1 : index
    %c1_54 = arith.constant 1 : index
    %c0_55 = arith.constant 0 : index
    %57 = vector.load %arg1[%c0_52, %c1_53, %c1_54, %c0_55] : memref<1x36x9x8xbf16, #tpu.memory_space<vmem>>, vector<1x8x8x8xbf16>
    %58 = vector.shape_cast %57 : vector<1x8x8x8xbf16> to vector<8x8x8xbf16>
    %59 = vector.shape_cast %58 : vector<8x8x8xbf16> to vector<64x8xbf16>
    %c8 = arith.constant 8 : index
    %c0_56 = arith.constant 0 : index
    %c0_57 = arith.constant 0 : index
    %60 = vector.load %arg2[%c8, %c0_56, %c0_57] : memref<9x8x128xbf16, #tpu.memory_space<vmem>>, vector<1x8x128xbf16>
    %61 = vector.shape_cast %60 : vector<1x8x128xbf16> to vector<8x128xbf16>
    %cst_58 = arith.constant dense<0.000000e+00> : vector<64x128xf32>
    %62 = tpu.matmul %59, %61, %cst_58 {dimension_numbers = #tpu.dot_dimension_numbers<[1], [0], [0], [1], [0, 0, 1, 1], [], []>} : vector<64x8xbf16>, vector<8x128xbf16>, vector<64x128xf32> -> vector<64x128xf32>
    %63 = arith.addf %56, %62 : vector<64x128xf32>
    %c0_59 = arith.constant 0 : index
    %c0_60 = arith.constant 0 : index
    %64 = vector.load %arg3[%c0_59, %c0_60] : memref<1x128xf32, #tpu.memory_space<vmem>>, vector<1x128xf32>
    %65 = vector.broadcast %64 : vector<1x128xf32> to vector<64x128xf32>
    %66 = arith.addf %63, %65 : vector<64x128xf32>
    %cst_61 = arith.constant 0.000000e+00 : f32
    %67 = vector.broadcast %cst_61 : f32 to vector<64x128xf32>
    %68 = arith.maximumf %66, %67 : vector<64x128xf32>
    %69 = vector.shape_cast %68 : vector<64x128xf32> to vector<1x8x8x128xf32>
    %c0_62 = arith.constant 0 : index
    %c0_63 = arith.constant 0 : index
    %c0_64 = arith.constant 0 : index
    %c0_65 = arith.constant 0 : index
    %70 = vector.load %arg4[%c0_62, %c0_63, %c0_64, %c0_65] : memref<1x8x8x128xf32, #tpu.memory_space<vmem>>, vector<1x8x8x128xf32>
    tpu.vector_store %arg4[%c0_62, %c0_63, %c0_64, %c0_65], %69 {strides = array<i32>} : memref<1x8x8x128xf32, #tpu.memory_space<vmem>>, vector<1x8x8x128xf32>,
    return
  }
  func.func @transform_0(%arg0: i32) -> (i32, i32, i32, i32) {
    %c0_i32 = arith.constant 0 : i32
    %c0_i32_0 = arith.constant 0 : i32
    %c0_i32_1 = arith.constant 0 : i32
    %c0_i32_2 = arith.constant 0 : i32
    return %arg0, %c0_i32, %c0_i32_0, %c0_i32_1 : i32, i32, i32, i32
  }
  func.func @transform_1(%arg0: i32) -> (i32, i32, i32) {
    %c0_i32 = arith.constant 0 : i32
    %c0_i32_0 = arith.constant 0 : i32
    %c0_i32_1 = arith.constant 0 : i32
    %c0_i32_2 = arith.constant 0 : i32
    return %c0_i32, %c0_i32_0, %c0_i32_1 : i32, i32, i32
  }
  func.func @transform_2(%arg0: i32) -> (i32, i32) {
    %c0_i32 = arith.constant 0 : i32
    %c0_i32_0 = arith.constant 0 : i32
    %c0_i32_1 = arith.constant 0 : i32
    return %c0_i32, %c0_i32_0 : i32, i32
  }
  func.func @transform_3(%arg0: i32) -> (i32, i32, i32, i32) {
    %c0_i32 = arith.constant 0 : i32
    %c0_i32_0 = arith.constant 0 : i32
    %c0_i32_1 = arith.constant 0 : i32
    %c0_i32_2 = arith.constant 0 : i32
    return %arg0, %c0_i32, %c0_i32_0, %c0_i32_1 : i32, i32, i32, i32
  }
}

module attributes {stable_mosaic.version = 11 : i64} {
  func.func @kernel(%arg0: i32, %arg1: memref<1x10x10x16xbf16, #tpu.memory_space<vmem>>, %arg2: memref<9x16x128xbf16, #tpu.memory_space<vmem>>, %arg3: memref<1x128xf32, #tpu.memory_space<vmem>>, %arg4: memref<1x8x8x128xf32, #tpu.memory_space<vmem>>) attributes {dimension_semantics = [#tpu.dimension_semantics<parallel>], iteration_bounds = array<i64: 2>, scalar_prefetch = 0 : i64, scratch_operands = 0 : i64, tpu.core_type = #tpu.core_type<tc>, window_params = [{transform_indices = @transform_0, window_bounds = array<i64: 1, 10, 10, 16>}, {pipeline_mode = #tpu.pipeline_mode<synchronous>, transform_indices = @transform_1, window_bounds = array<i64: 9, 16, 128>}, {pipeline_mode = #tpu.pipeline_mode<synchronous>, transform_indices = @transform_2, window_bounds = array<i64: 1, 128>}, {transform_indices = @transform_3, window_bounds = array<i64: 1, 8, 8, 128>}]} {
    %cst = arith.constant 0.000000e+00 : f32
    %0 = vector.broadcast %cst : f32 to vector<64x128xf32>
    %c0 = arith.constant 0 : index
    %c0_0 = arith.constant 0 : index
    %c0_1 = arith.constant 0 : index
    %c0_2 = arith.constant 0 : index
    %1 = vector.load %arg1[%c0, %c0_0, %c0_1, %c0_2] : memref<1x10x10x16xbf16, #tpu.memory_space<vmem>>, vector<1x8x8x16xbf16>
    %2 = vector.shape_cast %1 : vector<1x8x8x16xbf16> to vector<8x8x16xbf16>
    %3 = vector.shape_cast %2 : vector<8x8x16xbf16> to vector<64x16xbf16>
    %c0_3 = arith.constant 0 : index
    %c0_4 = arith.constant 0 : index
    %c0_5 = arith.constant 0 : index
    %4 = vector.load %arg2[%c0_3, %c0_4, %c0_5] : memref<9x16x128xbf16, #tpu.memory_space<vmem>>, vector<1x16x128xbf16>
    %5 = vector.shape_cast %4 : vector<1x16x128xbf16> to vector<16x128xbf16>
    %cst_6 = arith.constant dense<0.000000e+00> : vector<64x128xf32>
    %6 = tpu.matmul %3, %5, %cst_6 {dimension_numbers = #tpu.dot_dimension_numbers<[1], [0], [0], [1], [0, 0, 1, 1], [], []>} : vector<64x16xbf16>, vector<16x128xbf16>, vector<64x128xf32> -> vector<64x128xf32>
    %7 = arith.addf %0, %6 : vector<64x128xf32>
    %c0_7 = arith.constant 0 : index
    %c0_8 = arith.constant 0 : index
    %c1 = arith.constant 1 : index
    %c0_9 = arith.constant 0 : index
    %8 = vector.load %arg1[%c0_7, %c0_8, %c1, %c0_9] : memref<1x10x10x16xbf16, #tpu.memory_space<vmem>>, vector<1x8x8x16xbf16>
    %9 = vector.shape_cast %8 : vector<1x8x8x16xbf16> to vector<8x8x16xbf16>
    %10 = vector.shape_cast %9 : vector<8x8x16xbf16> to vector<64x16xbf16>
    %c1_10 = arith.constant 1 : index
    %c0_11 = arith.constant 0 : index
    %c0_12 = arith.constant 0 : index
    %11 = vector.load %arg2[%c1_10, %c0_11, %c0_12] : memref<9x16x128xbf16, #tpu.memory_space<vmem>>, vector<1x16x128xbf16>
    %12 = vector.shape_cast %11 : vector<1x16x128xbf16> to vector<16x128xbf16>
    %cst_13 = arith.constant dense<0.000000e+00> : vector<64x128xf32>
    %13 = tpu.matmul %10, %12, %cst_13 {dimension_numbers = #tpu.dot_dimension_numbers<[1], [0], [0], [1], [0, 0, 1, 1], [], []>} : vector<64x16xbf16>, vector<16x128xbf16>, vector<64x128xf32> -> vector<64x128xf32>
    %14 = arith.addf %7, %13 : vector<64x128xf32>
    %c0_14 = arith.constant 0 : index
    %c0_15 = arith.constant 0 : index
    %c2 = arith.constant 2 : index
    %c0_16 = arith.constant 0 : index
    %15 = vector.load %arg1[%c0_14, %c0_15, %c2, %c0_16] : memref<1x10x10x16xbf16, #tpu.memory_space<vmem>>, vector<1x8x8x16xbf16>
    %16 = vector.shape_cast %15 : vector<1x8x8x16xbf16> to vector<8x8x16xbf16>
    %17 = vector.shape_cast %16 : vector<8x8x16xbf16> to vector<64x16xbf16>
    %c2_17 = arith.constant 2 : index
    %c0_18 = arith.constant 0 : index
    %c0_19 = arith.constant 0 : index
    %18 = vector.load %arg2[%c2_17, %c0_18, %c0_19] : memref<9x16x128xbf16, #tpu.memory_space<vmem>>, vector<1x16x128xbf16>
    %19 = vector.shape_cast %18 : vector<1x16x128xbf16> to vector<16x128xbf16>
    %cst_20 = arith.constant dense<0.000000e+00> : vector<64x128xf32>
    %20 = tpu.matmul %17, %19, %cst_20 {dimension_numbers = #tpu.dot_dimension_numbers<[1], [0], [0], [1], [0, 0, 1, 1], [], []>} : vector<64x16xbf16>, vector<16x128xbf16>, vector<64x128xf32> -> vector<64x128xf32>
    %21 = arith.addf %14, %20 : vector<64x128xf32>
    %c0_21 = arith.constant 0 : index
    %c1_22 = arith.constant 1 : index
    %c0_23 = arith.constant 0 : index
    %c0_24 = arith.constant 0 : index
    %22 = vector.load %arg1[%c0_21, %c1_22, %c0_23, %c0_24] : memref<1x10x10x16xbf16, #tpu.memory_space<vmem>>, vector<1x8x8x16xbf16>
    %23 = vector.shape_cast %22 : vector<1x8x8x16xbf16> to vector<8x8x16xbf16>
    %24 = vector.shape_cast %23 : vector<8x8x16xbf16> to vector<64x16xbf16>
    %c3 = arith.constant 3 : index
    %c0_25 = arith.constant 0 : index
    %c0_26 = arith.constant 0 : index
    %25 = vector.load %arg2[%c3, %c0_25, %c0_26] : memref<9x16x128xbf16, #tpu.memory_space<vmem>>, vector<1x16x128xbf16>
    %26 = vector.shape_cast %25 : vector<1x16x128xbf16> to vector<16x128xbf16>
    %cst_27 = arith.constant dense<0.000000e+00> : vector<64x128xf32>
    %27 = tpu.matmul %24, %26, %cst_27 {dimension_numbers = #tpu.dot_dimension_numbers<[1], [0], [0], [1], [0, 0, 1, 1], [], []>} : vector<64x16xbf16>, vector<16x128xbf16>, vector<64x128xf32> -> vector<64x128xf32>
    %28 = arith.addf %21, %27 : vector<64x128xf32>
    %c0_28 = arith.constant 0 : index
    %c1_29 = arith.constant 1 : index
    %c1_30 = arith.constant 1 : index
    %c0_31 = arith.constant 0 : index
    %29 = vector.load %arg1[%c0_28, %c1_29, %c1_30, %c0_31] : memref<1x10x10x16xbf16, #tpu.memory_space<vmem>>, vector<1x8x8x16xbf16>
    %30 = vector.shape_cast %29 : vector<1x8x8x16xbf16> to vector<8x8x16xbf16>
    %31 = vector.shape_cast %30 : vector<8x8x16xbf16> to vector<64x16xbf16>
    %c4 = arith.constant 4 : index
    %c0_32 = arith.constant 0 : index
    %c0_33 = arith.constant 0 : index
    %32 = vector.load %arg2[%c4, %c0_32, %c0_33] : memref<9x16x128xbf16, #tpu.memory_space<vmem>>, vector<1x16x128xbf16>
    %33 = vector.shape_cast %32 : vector<1x16x128xbf16> to vector<16x128xbf16>
    %cst_34 = arith.constant dense<0.000000e+00> : vector<64x128xf32>
    %34 = tpu.matmul %31, %33, %cst_34 {dimension_numbers = #tpu.dot_dimension_numbers<[1], [0], [0], [1], [0, 0, 1, 1], [], []>} : vector<64x16xbf16>, vector<16x128xbf16>, vector<64x128xf32> -> vector<64x128xf32>
    %35 = arith.addf %28, %34 : vector<64x128xf32>
    %c0_35 = arith.constant 0 : index
    %c1_36 = arith.constant 1 : index
    %c2_37 = arith.constant 2 : index
    %c0_38 = arith.constant 0 : index
    %36 = vector.load %arg1[%c0_35, %c1_36, %c2_37, %c0_38] : memref<1x10x10x16xbf16, #tpu.memory_space<vmem>>, vector<1x8x8x16xbf16>
    %37 = vector.shape_cast %36 : vector<1x8x8x16xbf16> to vector<8x8x16xbf16>
    %38 = vector.shape_cast %37 : vector<8x8x16xbf16> to vector<64x16xbf16>
    %c5 = arith.constant 5 : index
    %c0_39 = arith.constant 0 : index
    %c0_40 = arith.constant 0 : index
    %39 = vector.load %arg2[%c5, %c0_39, %c0_40] : memref<9x16x128xbf16, #tpu.memory_space<vmem>>, vector<1x16x128xbf16>
    %40 = vector.shape_cast %39 : vector<1x16x128xbf16> to vector<16x128xbf16>
    %cst_41 = arith.constant dense<0.000000e+00> : vector<64x128xf32>
    %41 = tpu.matmul %38, %40, %cst_41 {dimension_numbers = #tpu.dot_dimension_numbers<[1], [0], [0], [1], [0, 0, 1, 1], [], []>} : vector<64x16xbf16>, vector<16x128xbf16>, vector<64x128xf32> -> vector<64x128xf32>
    %42 = arith.addf %35, %41 : vector<64x128xf32>
    %c0_42 = arith.constant 0 : index
    %c2_43 = arith.constant 2 : index
    %c0_44 = arith.constant 0 : index
    %c0_45 = arith.constant 0 : index
    %43 = vector.load %arg1[%c0_42, %c2_43, %c0_44, %c0_45] : memref<1x10x10x16xbf16, #tpu.memory_space<vmem>>, vector<1x8x8x16xbf16>
    %44 = vector.shape_cast %43 : vector<1x8x8x16xbf16> to vector<8x8x16xbf16>
    %45 = vector.shape_cast %44 : vector<8x8x16xbf16> to vector<64x16xbf16>
    %c6 = arith.constant 6 : index
    %c0_46 = arith.constant 0 : index
    %c0_47 = arith.constant 0 : index
    %46 = vector.load %arg2[%c6, %c0_46, %c0_47] : memref<9x16x128xbf16, #tpu.memory_space<vmem>>, vector<1x16x128xbf16>
    %47 = vector.shape_cast %46 : vector<1x16x128xbf16> to vector<16x128xbf16>
    %cst_48 = arith.constant dense<0.000000e+00> : vector<64x128xf32>
    %48 = tpu.matmul %45, %47, %cst_48 {dimension_numbers = #tpu.dot_dimension_numbers<[1], [0], [0], [1], [0, 0, 1, 1], [], []>} : vector<64x16xbf16>, vector<16x128xbf16>, vector<64x128xf32> -> vector<64x128xf32>
    %49 = arith.addf %42, %48 : vector<64x128xf32>
    %c0_49 = arith.constant 0 : index
    %c2_50 = arith.constant 2 : index
    %c1_51 = arith.constant 1 : index
    %c0_52 = arith.constant 0 : index
    %50 = vector.load %arg1[%c0_49, %c2_50, %c1_51, %c0_52] : memref<1x10x10x16xbf16, #tpu.memory_space<vmem>>, vector<1x8x8x16xbf16>
    %51 = vector.shape_cast %50 : vector<1x8x8x16xbf16> to vector<8x8x16xbf16>
    %52 = vector.shape_cast %51 : vector<8x8x16xbf16> to vector<64x16xbf16>
    %c7 = arith.constant 7 : index
    %c0_53 = arith.constant 0 : index
    %c0_54 = arith.constant 0 : index
    %53 = vector.load %arg2[%c7, %c0_53, %c0_54] : memref<9x16x128xbf16, #tpu.memory_space<vmem>>, vector<1x16x128xbf16>
    %54 = vector.shape_cast %53 : vector<1x16x128xbf16> to vector<16x128xbf16>
    %cst_55 = arith.constant dense<0.000000e+00> : vector<64x128xf32>
    %55 = tpu.matmul %52, %54, %cst_55 {dimension_numbers = #tpu.dot_dimension_numbers<[1], [0], [0], [1], [0, 0, 1, 1], [], []>} : vector<64x16xbf16>, vector<16x128xbf16>, vector<64x128xf32> -> vector<64x128xf32>
    %56 = arith.addf %49, %55 : vector<64x128xf32>
    %c0_56 = arith.constant 0 : index
    %c2_57 = arith.constant 2 : index
    %c2_58 = arith.constant 2 : index
    %c0_59 = arith.constant 0 : index
    %57 = vector.load %arg1[%c0_56, %c2_57, %c2_58, %c0_59] : memref<1x10x10x16xbf16, #tpu.memory_space<vmem>>, vector<1x8x8x16xbf16>
    %58 = vector.shape_cast %57 : vector<1x8x8x16xbf16> to vector<8x8x16xbf16>
    %59 = vector.shape_cast %58 : vector<8x8x16xbf16> to vector<64x16xbf16>
    %c8 = arith.constant 8 : index
    %c0_60 = arith.constant 0 : index
    %c0_61 = arith.constant 0 : index
    %60 = vector.load %arg2[%c8, %c0_60, %c0_61] : memref<9x16x128xbf16, #tpu.memory_space<vmem>>, vector<1x16x128xbf16>
    %61 = vector.shape_cast %60 : vector<1x16x128xbf16> to vector<16x128xbf16>
    %cst_62 = arith.constant dense<0.000000e+00> : vector<64x128xf32>
    %62 = tpu.matmul %59, %61, %cst_62 {dimension_numbers = #tpu.dot_dimension_numbers<[1], [0], [0], [1], [0, 0, 1, 1], [], []>} : vector<64x16xbf16>, vector<16x128xbf16>, vector<64x128xf32> -> vector<64x128xf32>
    %63 = arith.addf %56, %62 : vector<64x128xf32>
    %c0_63 = arith.constant 0 : index
    %c0_64 = arith.constant 0 : index
    %64 = vector.load %arg3[%c0_63, %c0_64] : memref<1x128xf32, #tpu.memory_space<vmem>>, vector<1x128xf32>
    %65 = vector.broadcast %64 : vector<1x128xf32> to vector<64x128xf32>
    %66 = arith.addf %63, %65 : vector<64x128xf32>
    %cst_65 = arith.constant 0.000000e+00 : f32
    %67 = vector.broadcast %cst_65 : f32 to vector<64x128xf32>
    %68 = arith.maximumf %66, %67 : vector<64x128xf32>
    %69 = vector.shape_cast %68 : vector<64x128xf32> to vector<1x8x8x128xf32>
    %c0_66 = arith.constant 0 : index
    %c0_67 = arith.constant 0 : index
    %c0_68 = arith.constant 0 : index
    %c0_69 = arith.constant 0 : index
    %70 = vector.load %arg4[%c0_66, %c0_67, %c0_68, %c0_69] : memref<1x8x8x128xf32, #tpu.memory_space<vmem>>, vector<1x8x8x128xf32>
    tpu.vector_store %arg4[%c0_66, %c0_67, %c0_68, %c0_69], %69 {strides = array<i32>} : memref<1x8x8x128xf32, #tpu.memory_space<vmem>>, vector<1x8x8x128xf32>,
    return
  }
  func.func @transform_0(%arg0: i32) -> (i32, i32, i32, i32) {
    %c0_i32 = arith.constant 0 : i32
    %c0_i32_0 = arith.constant 0 : i32
    %c0_i32_1 = arith.constant 0 : i32
    %c0_i32_2 = arith.constant 0 : i32
    return %arg0, %c0_i32, %c0_i32_0, %c0_i32_1 : i32, i32, i32, i32
  }
  func.func @transform_1(%arg0: i32) -> (i32, i32, i32) {
    %c0_i32 = arith.constant 0 : i32
    %c0_i32_0 = arith.constant 0 : i32
    %c0_i32_1 = arith.constant 0 : i32
    %c0_i32_2 = arith.constant 0 : i32
    return %c0_i32, %c0_i32_0, %c0_i32_1 : i32, i32, i32
  }
  func.func @transform_2(%arg0: i32) -> (i32, i32) {
    %c0_i32 = arith.constant 0 : i32
    %c0_i32_0 = arith.constant 0 : i32
    %c0_i32_1 = arith.constant 0 : i32
    return %c0_i32, %c0_i32_0 : i32, i32
  }
  func.func @transform_3(%arg0: i32) -> (i32, i32, i32, i32) {
    %c0_i32 = arith.constant 0 : i32
    %c0_i32_0 = arith.constant 0 : i32
    %c0_i32_1 = arith.constant 0 : i32
    %c0_i32_2 = arith.constant 0 : i32
    return %arg0, %c0_i32, %c0_i32_0, %c0_i32_1 : i32, i32, i32, i32
  }
}

</mosaic_0001>

<bundles_post_ra>
// kernel: _forward.4
= control target key start
LH: loop header
LB: loop body
LE: loop exit
PB: predicated region body
PF: predicated region fallthrough
CT: control target
= control target key end

     0   :  { %s2085_s12 = smov 0   ;;  %s2356_s0 = inlined_call_operand.vmem [shape: bf16[2,36,9,8], index: 0, kind: input, shape index: {}]   ;;  %s2357_s1 = inlined_call_operand.vmem [shape: bf16[9,8,128], index: 1, kind: input, shape index: {}]   ;;  %s2358_s2 = inlined_call_operand.vmem [shape: f32[1,128], index: 2, kind: input, shape index: {}]   ;;  %s2359_s3 = inlined_call_operand.vmem [shape: f32[2,8,8,128], index: 3, kind: output, shape index: {}]  }
   0x1 LB: > { %s1649_s13 = sadd.s32 4294967295, %s2063_s12   ;;  %p1653_p0 = scmp.ge.s32.totalorder %s2063_s12, 1  ;;  %s2063_s12 = sphi %s2085_s12, %s13_s12  }
   0x2   : > { %p137_p1 = scmp.lt.s32.totalorder %s2063_s12, 3 }
   0x4   : > { %p138_p2 = pnand %p1653_p0, %p137_p1 }
   0x5   : > { %v1665_v0 = vld [vmem:[%s2357_s1 + $0x4] sm:$0xf] (!%p138_p2)  ;;  %vm225_vm0 = vcmask (!%p138_p2), 1043456   ;;  %v2099_v1 = vld [vmem:[%s2357_s1 + $0x10] sm:$0xf] (!%p138_p2)  ;;  %p161_p3 = scmp.lt.s32.totalorder (!%p138_p2), %s1649_s13, 1 }
   0x6   : > { %141 = sbr.rel (%p138_p2) target bundleno = 316 (0x13c), region = 32  ;;  %2014 = vmatprep.subr.msk.bf16.mxu1 (!%p138_p2), %vm225_vm0, %v1665_v0  ;;  %2018 = vmatprep.subr.msk.bf16.mxu0 (!%p138_p2), %vm225_vm0, %v2099_v1  ;;  %v227_v2 = vsel (!%p138_p2), %vm225_vm0, %v1665_v0, 0  ;;  %v2107_v3 = vsel (!%p138_p2), %vm225_vm0, %v2099_v1, 0  ;;  %v180_v4 = vld [vmem:[%s2357_s1] sm:$0xf] (!%p138_p2)  ;;  %vm212_vm1 = vcmask (!%p138_p2), 64512  }
   0x7   : > { %1859 = vmatpush3.bf16.msra.mxu1 (!%p138_p2), %v227_v2  ;;  %1899 = vmatpush3.bf16.msra.mxu0 (!%p138_p2), %v2107_v3  ;;  %v1741_v5 = vld [vmem:[%s2357_s1 + $0x14] sm:$0xf] (!%p138_p2)  ;;  %v327_v6 = vsel (!%p138_p2), %vm225_vm0, %v180_v4, 0  ;;  %v1758_v9 = vld [vmem:[%s2357_s1 + $0x18] sm:$0xf] (!%p138_p2) }
   0x8   : > { %2015 = vmatprep.subr.msk.bf16.mxu1 (!%p138_p2), %vm225_vm0, %v180_v4  ;;  %2020 = vmatprep.subr.msk.bf16.mxu0 (!%p138_p2), %vm225_vm0, %v1741_v5  ;;  %v1020_v7 = vsel (!%p138_p2), %vm225_vm0, %v1741_v5, 0  ;;  %v1682_v10 = vld [vmem:[%s2357_s1 + $0x8] sm:$0xf] (!%p138_p2)  ;;  %vm410_vm2 = vsmask.f32 (!%p138_p2), 3328  ;;  %v2144_v15 = vsel (!%p138_p2), %vm225_vm0, %v1758_v9, 0 }
   0x9   : > { %vm411_vm3 = vsmask.f32 (!%p138_p2), 7440  ;;  %v2147_v16 = vsel (!%p138_p2), %vm225_vm0, %v1682_v10, 0 }
   0xa   : > { %vm2164_vm4 = vmor (!%p138_p2), %vm410_vm2, %vm411_vm3 }
   0xd   : > { %s2363_s13 = smov (!%p161_p3, %s1649_s13), 1 }
   0xe   : > { %s2024_s22 = smul.u32 288, %s2363_s13  ;;  %s1812_s11 = sshll.u32 %s2363_s13, 6 }
   0xf   : > { %s2343_s16 = scalar_lea.vmem %s2359_s3, %s1812_s11 }
  0x10   : > { %s2124_s25 = scalar_lea.vmem %s2356_s0, %s2024_s22 }
  0x11   : > { %v2033_v8 = vld [vmem:[%s2124_s25 + $0x48] ss:$8 sps:$4 sm:$0xff]   ;;  %v2034_v11 = vld [vmem:[%s2124_s25 + $0xd8] ss:$8 sps:$4 sm:$0xff]   ;;  %v1726_v19 = vld [vmem:[%s2124_s25 + $0x94] sm:$0x1] }
  0x12   : > { %1860 = vmatprep.mubr.msk.bf16.mxu1 %vm212_vm1, %v2033_v8  ;;  %v2035_v12 = vld [vmem:[%s2124_s25 + $0x58] ss:$8 sps:$4 sm:$0xff]   ;;  %1900 = vmatprep.mubr.msk.bf16.mxu0 %vm212_vm1, %v2034_v11  ;;  %v2036_v13 = vld [vmem:[%s2124_s25 + $0xe8] ss:$8 sps:$4 sm:$0xff]   ;;  %v1728_v21 = vld [vmem:[%s2124_s25 + $0x9c] sm:$0x1] }
  0x13   : > { %1861 = vmatmul.mubr.msk.bf16.vlgmr.msra.gmra.mrb[0].mxu1 %vm212_vm1, %v2035_v12  ;;  %v2037_v14 = vld [vmem:[%s2124_s25 + $0x68] ss:$8 sps:$4 sm:$0xff]   ;;  %1901 = vmatmul.mubr.msk.bf16.vlgmr.msra.gmra.mrb[0].mxu0 %vm212_vm1, %v2036_v13  ;;  %v2038_v17 = vld [vmem:[%s2124_s25 + $0x78] ss:$8 sps:$4 sm:$0xff]   ;;  %v891_v24 = vshll.u32 %v1726_v19, 16  ;;  %v905_v27 = vshll.u32 %v1728_v21, 16 }
  0x14   : > { %1869 = vmatpush3.bf16.msra.mxu1 %v327_v6  ;;  %1909 = vmatpush3.bf16.msra.mxu0 %v1020_v7  ;;  %v1725_v18 = vld [vmem:[%s2124_s25 + $0x90] sm:$0xf]  ;;  %v1727_v20 = vld [vmem:[%s2124_s25 + $0x98] sm:$0xf]  ;;  %v1729_v28 = vld [vmem:[%s2124_s25 + $0xa0] sm:$0xf] }
  0x15   : > { %1864 = vmatprep.mubr.msk.bf16.mxu1 %vm212_vm1, %v2037_v14  ;;  %v882_v22 = vshrl.u32 %v1725_v18, 16  ;;  %v885_v23 = vshll.u32 %v1725_v18, 16  ;;  %v896_v25 = vshrl.u32 %v1727_v20, 16  ;;  %2021 = vmatprep.subr.msk.bf16.mxu0 %vm225_vm0, %v1758_v9  ;;  %v899_v26 = vshll.u32 %v1727_v20, 16  ;;  %v1730_v29 = vld [vmem:[%s2124_s25 + $0xa4] sm:$0x1] }
  0x16   : > { %2016 = vmatprep.subr.msk.bf16.mxu1 %vm225_vm0, %v1682_v10  ;;  %v893_v32 = vrot.slane %v891_v24, 5  ;;  %v1731_v34 = vld [vmem:[%s2124_s25 + $0xa8] sm:$0xf]  ;;  %v907_v36 = vrot.slane %v905_v27, 5  ;;  %v1732_v37 = vld [vmem:[%s2124_s25 + $0xac] sm:$0x1] }
  0x17   : > { %v884_v30 = vrot.slane %v882_v22, 4  ;;  %v887_v31 = vrot.slane %v885_v23, 5  ;;  %v898_v33 = vrot.slane %v896_v25, 4  ;;  %v901_v35 = vrot.slane %v899_v26, 5  ;;  %v2039_v53 = vld [vmem:[%s2124_s25] ss:$8 sps:$4 sm:$0xff]  }
  0x18   : > { %v910_v38 = vshrl.u32 %v1729_v28, 16  ;;  %v913_v39 = vshll.u32 %v1729_v28, 16  ;;  %v919_v41 = vshll.u32 %v1730_v29, 16  ;;  %v924_v42 = vshrl.u32 %v1731_v34, 16  ;;  %v2040_v59 = vld [vmem:[%s2124_s25 + $0x10] ss:$8 sps:$4 sm:$0xff]  }
  0x19   : > { %v888_v40 = vor.u32 %v887_v31, %v884_v30  ;;  %v927_v43 = vshll.u32 %v1731_v34, 16  ;;  %v902_v45 = vor.u32 %v901_v35, %v898_v33  ;;  %v933_v48 = vshll.u32 %v1732_v37, 16  ;;  %v1733_v60 = vld [vmem:[%s2124_s25 + $0xb0] sm:$0xf]  ;;  %v1734_v61 = vld [vmem:[%s2124_s25 + $0xb4] sm:$0x1] }
  0x1a   : > { %v912_v46 = vrot.slane %v910_v38, 4  ;;  %v915_v47 = vrot.slane %v913_v39, 5  ;;  %v921_v50 = vrot.slane %v919_v41, 5  ;;  %v926_v51 = vrot.slane %v924_v42, 4  ;;  %v1735_v0 = vld [vmem:[%s2124_s25 + $0xb8] sm:$0xf] }
  0x1b   : > { %1865 = vmatmul.mubr.msk.bf16.gmra.mrb[4].mxu1 %vm212_vm1, %v2038_v17  ;;  %v889_v49 = vrot.slane %v888_v40, 4  ;;  %v929_v52 = vrot.slane %v927_v43, 5  ;;  %v903_v54 = vrot.slane %v902_v45, 4  ;;  %v935_v56 = vrot.slane %v933_v48, 5  ;;  %v1736_v2 = vld [vmem:[%s2124_s25 + $0xbc] sm:$0x1] }
  0x1c   : > { %v916_v55 = vor.u32 %v915_v47, %v912_v46  ;;  %1870 = vmatprep.mubr.msk.bf16.mxu1 %vm212_vm1, %v2039_v53  ;;  %v938_v4 = vshrl.u32 %v1733_v60, 16  ;;  %v941_v7 = vshll.u32 %v1733_v60, 16  ;;  %v947_v8 = vshll.u32 %v1734_v61, 16  ;;  %v1737_v9 = vld [vmem:[%s2124_s25 + $0xc0] sm:$0xf] }
  0x1d   : > { %v894_v57 = vsel %vm2164_vm4, %v889_v49, %v893_v32  ;;  %v930_v58 = vor.u32 %v929_v52, %v926_v51  ;;  %v908_v62 = vsel %vm2164_vm4, %v903_v54, %v907_v36  ;;  %v2183_v10 = vld [vmem:[%s2357_s1 + $0xc] sm:$0xf]  ;;  %v952_v13 = vshrl.u32 %v1735_v0, 16  ;;  %v1738_v17 = vld [vmem:[%s2124_s25 + $0xc4] sm:$0x1] }
  0x1e   : > { %v917_v63 = vrot.slane %v916_v55, 4  ;;  %v1742_v5 = vcombine.low %v894_v57, %v908_v62  ;;  %v940_v12 = vrot.slane %v938_v4, 4  ;;  %v955_v14 = vshll.u32 %v1735_v0, 16  ;;  %v1739_v22 = vld [vmem:[%s2124_s25 + $0xc8] sm:$0xf] }
  0x1f   : > { %v931_v6 = vrot.slane %v930_v58, 4  ;;  %v943_v19 = vrot.slane %v941_v7, 5  ;;  %v949_v20 = vrot.slane %v947_v8, 5  ;;  %v961_v21 = vshll.u32 %v1736_v2, 16  ;;  %v2195_v23 = vld [vmem:[%s2357_s1 + $0x1c] sm:$0xf] }
  0x20   : > { %v922_v11 = vsel %vm2164_vm4, %v917_v63, %v921_v50  ;;  %1910 = vmatprep.mubr.msk.bf16.mxu0 %vm212_vm1, %v1742_v5  ;;  %v954_v25 = vrot.slane %v952_v13, 4  ;;  %v957_v26 = vrot.slane %v955_v14, 5  ;;  %v1740_v27 = vld [vmem:[%s2124_s25 + $0xcc] sm:$0x1]  ;;  %v966_v28 = vshrl.u32 %v1737_v9, 16 }
  0x21   : > { %v936_v18 = vsel %vm2164_vm4, %v931_v6, %v935_v56  ;;  %v944_v29 = vor.u32 %v943_v19, %v940_v12  ;;  %v963_v30 = vrot.slane %v961_v21, 5  ;;  %v969_v31 = vshll.u32 %v1737_v9, 16  ;;  %v2043_v53 = vld [vmem:[%s2124_s25 + $0x8] ss:$8 sps:$4 sm:$0xff]   ;;  %v394_v54 = vld [vmem:[%s2124_s25] sm:$0xf] }
  0x22   : > { %v1743_v24 = vcombine.low %v922_v11, %v936_v18  ;;  %v975_v32 = vshll.u32 %v1738_v17, 16  ;;  %v958_v33 = vor.u32 %v957_v26, %v954_v25  ;;  %v968_v34 = vrot.slane %v966_v28, 4  ;;  %v395_v56 = vld [vmem:[%s2124_s25 + $0x4] sm:$0x1]  ;;  %v396_v57 = vld [vmem:[%s2124_s25 + $0x8] sm:$0xf] }
  0x23   : > { %1871 = vmatmul.mubr.msk.bf16.vlgmr.msra.gmra.mrb[0].mxu1 %vm212_vm1, %v2040_v59  ;;  %v980_v35 = vshrl.u32 %v1739_v22, 16  ;;  %v983_v36 = vshll.u32 %v1739_v22, 16  ;;  %v945_v37 = vrot.slane %v944_v29, 4  ;;  %v971_v38 = vrot.slane %v969_v31, 5  ;;  %v397_v58 = vld [vmem:[%s2124_s25 + $0xc] sm:$0x1] }
  0x24   : > { %1879 = vmatpush3.bf16.msra.mxu1 %v2147_v16  ;;  %1911 = vmatmul.mubr.msk.bf16.vlgmr.msra.gmra.mrb[0].mxu0 %vm212_vm1, %v1743_v24  ;;  %v989_v39 = vshll.u32 %v1740_v27, 16  ;;  %v2041_v16 = vld [vmem:[%s2124_s25 + $0x20] ss:$8 sps:$4 sm:$0xff]   ;;  %v959_v40 = vrot.slane %v958_v33, 4  ;;  %v977_v46 = vrot.slane %v975_v32, 5  ;;  %v414_v60 = vshrl.u32 %v394_v54, 16 }
  0x25   : > { %2017 = vmatprep.subr.msk.bf16.mxu1 %vm225_vm0, %v2183_v10  ;;  %1919 = vmatpush3.bf16.msra.mxu0 %v2144_v15  ;;  %v982_v41 = vrot.slane %v980_v35, 4  ;;  %v985_v42 = vrot.slane %v983_v36, 5  ;;  %v950_v43 = vsel %vm2164_vm4, %v945_v37, %v949_v20  ;;  %v972_v45 = vor.u32 %v971_v38, %v968_v34  ;;  %v2042_v15 = vld [vmem:[%s2124_s25 + $0x30] ss:$8 sps:$4 sm:$0xff]   ;;  %v399_v6 = vld [vmem:[%s2124_s25 + $0x14] sm:$0x1] }
  0x26   : > { %2022 = vmatprep.subr.msk.bf16.mxu0 %vm225_vm0, %v2195_v23  ;;  %1874 = vmatprep.mubr.msk.bf16.mxu1 %vm212_vm1, %v2041_v16  ;;  %v964_v47 = vsel %vm2164_vm4, %v959_v40, %v963_v30  ;;  %v991_v49 = vrot.slane %v989_v39, 5  ;;  %v417_v61 = vshll.u32 %v394_v54, 16  ;;  %v423_v62 = vshll.u32 %v395_v56, 16  ;;  %v398_v63 = vld [vmem:[%s2124_s25 + $0x10] sm:$0xf] }
  0x27   : > { %v986_v48 = vor.u32 %v985_v42, %v982_v41  ;;  %v1744_v50 = vcombine.low %v950_v43, %v964_v47  ;;  %v973_v51 = vrot.slane %v972_v45, 4  ;;  %v428_v2 = vshrl.u32 %v396_v57, 16  ;;  %v400_v11 = vld [vmem:[%s2124_s25 + $0x18] sm:$0xf]  ;;  %v401_v18 = vld [vmem:[%s2124_s25 + $0x1c] sm:$0x1] }
  0x28   : > { %v431_v4 = vshll.u32 %v396_v57, 16  ;;  %v437_v5 = vshll.u32 %v397_v58, 16  ;;  %v416_v7 = vrot.slane %v414_v60, 4  ;;  %v419_v8 = vrot.slane %v417_v61, 5  ;;  %v2044_v29 = vld [vmem:[%s2124_s25 + $0x18] ss:$8 sps:$4 sm:$0xff]  }
  0x29   : > { %v987_v52 = vrot.slane %v986_v48, 4  ;;  %1914 = vmatprep.mubr.msk.bf16.mxu0 %vm212_vm1, %v1744_v50  ;;  %v978_v55 = vsel %vm2164_vm4, %v973_v51, %v977_v46  ;;  %v425_v9 = vrot.slane %v423_v62, 5  ;;  %v442_v12 = vshrl.u32 %v398_v63, 16  ;;  %v2045_v37 = vld [vmem:[%s2124_s25 + $0x28] ss:$8 sps:$4 sm:$0xff]  }
  0x2a   : > { %v430_v13 = vrot.slane %v428_v2, 4  ;;  %v433_v14 = vrot.slane %v431_v4, 5  ;;  %v439_v17 = vrot.slane %v437_v5, 5  ;;  %v445_v19 = vshll.u32 %v398_v63, 16  ;;  %v402_v40 = vld [vmem:[%s2124_s25 + $0x20] sm:$0xf] }
  0x2b   : > { %1875 = vmatmul.mubr.msk.bf16.gmra.mrb[4].mxu1 %vm212_vm1, %v2042_v15  ;;  %v992_v59 = vsel %vm2164_vm4, %v987_v52, %v991_v49  ;;  %v420_v20 = vor.u32 %v419_v8, %v416_v7  ;;  %v444_v21 = vrot.slane %v442_v12, 4  ;;  %v451_v22 = vshll.u32 %v399_v6, 16  ;;  %v403_v45 = vld [vmem:[%s2124_s25 + $0x24] sm:$0x1]  ;;  %v404_v46 = vld [vmem:[%s2124_s25 + $0x28] sm:$0xf] }
  0x2c   : > { %v1745_v0 = vcombine.low %v978_v55, %v992_v59  ;;  %v456_v24 = vshrl.u32 %v400_v11, 16  ;;  %v434_v25 = vor.u32 %v433_v14, %v430_v13  ;;  %v447_v26 = vrot.slane %v445_v19, 5  ;;  %v405_v48 = vld [vmem:[%s2124_s25 + $0x2c] sm:$0x1]  ;;  %v406_v55 = vld [vmem:[%s2124_s25 + $0x30] sm:$0xf] }
  0x2d   : > { %v459_v27 = vshll.u32 %v400_v11, 16  ;;  %v465_v28 = vshll.u32 %v401_v18, 16  ;;  %v1258_v30 = vsel %vm225_vm0, %v2195_v23, 0  ;;  %v421_v31 = vrot.slane %v420_v20, 4  ;;  %v2242_v23 = vld [vmem:[%s2357_s1 + $0x20] sm:$0xf] }
  0x2e   : > { %1915 = vmatmul.mubr.msk.bf16.gmra.mrb[4].mxu0 %vm212_vm1, %v1745_v0  ;;  %v453_v32 = vrot.slane %v451_v22, 5  ;;  %v458_v33 = vrot.slane %v456_v24, 4  ;;  %v435_v34 = vrot.slane %v434_v25, 4  ;;  %v448_v35 = vor.u32 %v447_v26, %v444_v21  ;;  %v407_v60 = vld [vmem:[%s2124_s25 + $0x34] sm:$0x1] }
  0x2f   : > { %1920 = vmatprep.mubr.msk.bf16.mxu0 %vm212_vm1, %v2043_v53  ;;  %v461_v36 = vrot.slane %v459_v27, 5  ;;  %v426_v38 = vsel %vm2164_vm4, %v421_v31, %v425_v9  ;;  %v467_v39 = vrot.slane %v465_v28, 5  ;;  %v671_v16 = vsel %vm225_vm0, %v2183_v10, 0  ;;  %v2046_v62 = vld [vmem:[%s2124_s25 + $0x38] ss:$8 sps:$4 sm:$0xff]  }
  0x30   : > { %v440_v41 = vsel %vm2164_vm4, %v435_v34, %v439_v17  ;;  %v449_v42 = vrot.slane %v448_v35, 4  ;;  %v470_v15 = vshrl.u32 %v402_v40, 16  ;;  %v473_v49 = vshll.u32 %v402_v40, 16  ;;  %v408_v0 = vld [vmem:[%s2124_s25 + $0x38] sm:$0xf] }
  0x31   : > { %v462_v43 = vor.u32 %v461_v36, %v458_v33  ;;  %v1683_v47 = vcombine.low %v426_v38, %v440_v41  ;;  %v479_v10 = vshll.u32 %v403_v45, 16  ;;  %v484_v50 = vshrl.u32 %v404_v46, 16  ;;  %v409_v2 = vld [vmem:[%s2124_s25 + $0x3c] sm:$0x1]  ;;  %v2047_v14 = vld [vmem:[%s2124_s25 + $0x50] ss:$8 sps:$4 sm:$0xff]  }
  0x32   : > { %v454_v51 = vsel %vm2164_vm4, %v449_v42, %v453_v32  ;;  %v472_v53 = vrot.slane %v470_v15, 4  ;;  %v487_v54 = vshll.u32 %v404_v46, 16  ;;  %v475_v56 = vrot.slane %v473_v49, 5  ;;  %v2048_v35 = vld [vmem:[%s2124_s25 + $0x60] ss:$8 sps:$4 sm:$0xff]  }
  0x33   : > { %v463_v52 = vrot.slane %v462_v43, 4  ;;  %1880 = vmatprep.mubr.msk.bf16.mxu1 %vm212_vm1, %v1683_v47  ;;  %v481_v57 = vrot.slane %v479_v10, 5  ;;  %v486_v58 = vrot.slane %v484_v50, 4  ;;  %v493_v59 = vshll.u32 %v405_v48, 16  ;;  %v1785_v40 = vld [vmem:[%s2124_s25 + $0xc] sm:$0x1] }
  0x34   : > { %v489_v63 = vrot.slane %v487_v54, 5  ;;  %v498_v4 = vshrl.u32 %v406_v55, 16  ;;  %v476_v6 = vor.u32 %v475_v56, %v472_v53  ;;  %v501_v8 = vshll.u32 %v406_v55, 16  ;;  %v1786_v41 = vld [vmem:[%s2124_s25 + $0x10] sm:$0xf] }
  0x35   : > { %v468_v61 = vsel %vm2164_vm4, %v463_v52, %v467_v39  ;;  %v495_v7 = vrot.slane %v493_v59, 5  ;;  %v507_v12 = vshll.u32 %v407_v60, 16  ;;  %v512_v13 = vshrl.u32 %v408_v0, 16  ;;  %v2051_v39 = vld [vmem:[%s2124_s25 + $0x70] ss:$8 sps:$4 sm:$0xff]  }
  0x36   : > { %1921 = vmatmul.mubr.msk.bf16.vlgmr.msra.gmra.mrb[0].mxu0 %vm212_vm1, %v2044_v29  ;;  %v1684_v5 = vcombine.low %v454_v51, %v468_v61  ;;  %v490_v9 = vor.u32 %v489_v63, %v486_v58  ;;  %v500_v11 = vrot.slane %v498_v4, 4  ;;  %v477_v17 = vrot.slane %v476_v6, 4  ;;  %v1787_v42 = vld [vmem:[%s2124_s25 + $0x14] sm:$0x1]  ;;  %v1788_v48 = vld [vmem:[%s2124_s25 + $0x18] sm:$0xf] }
  0x37   : > { %1929 = vmatpush3.bf16.msra.mxu0 %v1258_v30  ;;  %1924 = vmatprep.mubr.msk.bf16.mxu0 %vm212_vm1, %v2045_v37  ;;  %v503_v18 = vrot.slane %v501_v8, 5  ;;  %v515_v19 = vshll.u32 %v408_v0, 16  ;;  %v521_v20 = vshll.u32 %v409_v2, 16  ;;  %v514_v22 = vrot.slane %v512_v13, 4  ;;  %v2049_v37 = vld [vmem:[%s2124_s25 + $0x90] ss:$8 sps:$4 sm:$0xff]  }
  0x38   : > { %2023 = vmatprep.subr.msk.bf16.mxu0 %vm225_vm0, %v2242_v23  ;;  %1881 = vmatmul.mubr.msk.bf16.vlgmr.msra.gmra.mrb[0].mxu1 %vm212_vm1, %v1684_v5  ;;  %v491_v21 = vrot.slane %v490_v9, 4  ;;  %v482_v24 = vsel %vm2164_vm4, %v477_v17, %v481_v57  ;;  %v509_v26 = vrot.slane %v507_v12, 5  ;;  %v1488_v34 = vsel %vm225_vm0, %v2242_v23, 0  ;;  %v1789_v50 = vld [vmem:[%s2124_s25 + $0x1c] sm:$0x1] }
  0x39   : > { %1889 = vmatpush3.bf16.msra.mxu1 %v671_v16  ;;  %v504_v25 = vor.u32 %v503_v18, %v500_v11  ;;  %v517_v27 = vrot.slane %v515_v19, 5  ;;  %v523_v32 = vrot.slane %v521_v20, 5  ;;  %v1784_v16 = vld [vmem:[%s2124_s25 + $0x8] sm:$0xf]  ;;  %v1359_v23 = vshll.u32 %v1785_v40, 16 }
  0x3a   : > { %2019 = vmatprep.subr.msk.bf16.mxu1 %vm225_vm0, %v2099_v1  ;;  %v496_v28 = vsel %vm2164_vm4, %v491_v21, %v495_v7  ;;  %v1350_v43 = vshrl.u32 %v1784_v16, 16  ;;  %v1353_v45 = vshll.u32 %v1784_v16, 16  ;;  %v1364_v46 = vshrl.u32 %v1786_v41, 16  ;;  %v1790_v51 = vld [vmem:[%s2124_s25 + $0x20] sm:$0xf] }
  0x3b   : > { %v1685_v29 = vcombine.low %v482_v24, %v496_v28  ;;  %v505_v30 = vrot.slane %v504_v25, 4  ;;  %v518_v31 = vor.u32 %v517_v27, %v514_v22  ;;  %v1367_v15 = vshll.u32 %v1786_v41, 16  ;;  %v2050_v52 = vld [vmem:[%s2124_s25 + $0xa0] ss:$8 sps:$4 sm:$0xff]   ;;  %v1791_v58 = vld [vmem:[%s2124_s25 + $0x24] sm:$0x1] }
  0x3c   : > { %v1373_v47 = vshll.u32 %v1787_v42, 16  ;;  %v1352_v49 = vrot.slane %v1350_v43, 4  ;;  %v1355_v10 = vrot.slane %v1353_v45, 5  ;;  %v2052_v53 = vld [vmem:[%s2124_s25 + $0x80] ss:$8 sps:$4 sm:$0xff]   ;;  %v1361_v54 = vrot.slane %v1359_v23, 5 }
  0x3d   : > { %1884 = vmatprep.mubr.msk.bf16.mxu1 %vm212_vm1, %v1685_v29  ;;  %v510_v1 = vsel %vm2164_vm4, %v505_v30, %v509_v26  ;;  %v519_v33 = vrot.slane %v518_v31, 4  ;;  %v1366_v55 = vrot.slane %v1364_v46, 4  ;;  %v1369_v56 = vrot.slane %v1367_v15, 5  ;;  %v2053_v5 = vld [vmem:[%s2124_s25 + $0xb0] ss:$8 sps:$4 sm:$0xff]  }
  0x3e   : > { %1925 = vmatmul.mubr.msk.bf16.gmra.mrb[4].mxu0 %vm212_vm1, %v2046_v62  ;;  %v1375_v57 = vrot.slane %v1373_v47, 5  ;;  %v1356_v59 = vor.u32 %v1355_v10, %v1352_v49  ;;  %v1378_v60 = vshrl.u32 %v1788_v48, 16  ;;  %v1381_v61 = vshll.u32 %v1788_v48, 16  ;;  %v1792_v17 = vld [vmem:[%s2124_s25 + $0x28] sm:$0xf] }
  0x3f   : > { %1930 = vmatprep.mubr.msk.bf16.mxu0 %vm212_vm1, %v2047_v14  ;;  %v524_v36 = vsel %vm2164_vm4, %v519_v33, %v523_v32  ;;  %v1387_v62 = vshll.u32 %v1789_v50, 16  ;;  %v1370_v63 = vor.u32 %v1369_v56, %v1366_v55  ;;  %v1392_v0 = vshrl.u32 %v1790_v51, 16  ;;  %v1793_v20 = vld [vmem:[%s2124_s25 + $0x2c] sm:$0x1]  ;;  %v1794_v21 = vld [vmem:[%s2124_s25 + $0x30] sm:$0xf] }
  0x40   : > { %v1686_v38 = vcombine.low %v510_v1, %v524_v36  ;;  %v1395_v2 = vshll.u32 %v1790_v51, 16  ;;  %v1401_v4 = vshll.u32 %v1791_v58, 16  ;;  %v1357_v6 = vrot.slane %v1356_v59, 4  ;;  %v1795_v22 = vld [vmem:[%s2124_s25 + $0x34] sm:$0x1] }
  0x41   : > { %v1380_v7 = vrot.slane %v1378_v60, 4  ;;  %v1383_v8 = vrot.slane %v1381_v61, 5  ;;  %v1389_v9 = vrot.slane %v1387_v62, 5  ;;  %v1371_v11 = vrot.slane %v1370_v63, 4  ;;  %v2054_v32 = vld [vmem:[%s2124_s25 + $0xc0] ss:$8 sps:$4 sm:$0xff]  }
  0x42   : > { %1885 = vmatmul.mubr.msk.bf16.gmra.mrb[4].mxu1 %vm212_vm1, %v1686_v38  ;;  %v1394_v12 = vrot.slane %v1392_v0, 4  ;;  %v1397_v13 = vrot.slane %v1395_v2, 5  ;;  %v1403_v14 = vrot.slane %v1401_v4, 5  ;;  %v1362_v18 = vsel %vm2164_vm4, %v1357_v6, %v1361_v54  ;;  %v1796_v36 = vld [vmem:[%s2124_s25 + $0x38] sm:$0xf] }
  0x43   : > { %1890 = vmatprep.mubr.msk.bf16.mxu1 %vm212_vm1, %v2049_v37  ;;  %v1384_v19 = vor.u32 %v1383_v8, %v1380_v7  ;;  %v1376_v24 = vsel %vm2164_vm4, %v1371_v11, %v1375_v57  ;;  %v1406_v26 = vshrl.u32 %v1792_v17, 16  ;;  %v1409_v27 = vshll.u32 %v1792_v17, 16  ;;  %v1797_v16 = vld [vmem:[%s2124_s25 + $0x3c] sm:$0x1]  ;;  %v1798_v43 = vld [vmem:[%s2124_s25 + $0x40] sm:$0xf] }
  0x44   : > { %v1398_v25 = vor.u32 %v1397_v13, %v1394_v12  ;;  %v1801_v28 = vcombine.low %v1362_v18, %v1376_v24  ;;  %v1415_v30 = vshll.u32 %v1793_v20, 16  ;;  %v1420_v31 = vshrl.u32 %v1794_v21, 16  ;;  %v1799_v45 = vld [vmem:[%s2124_s25 + $0x44] sm:$0x1]  ;;  %v2055_v15 = vld [vmem:[%s2124_s25 + $0xf8] ss:$8 sps:$4 sm:$0xff]  }
  0x45   : > { %v1385_v29 = vrot.slane %v1384_v19, 4  ;;  %v1408_v33 = vrot.slane %v1406_v26, 4  ;;  %v1434_v23 = vshrl.u32 %v1796_v36, 16  ;;  %v1437_v48 = vshll.u32 %v1796_v36, 16  ;;  %v2056_v8 = vld [vmem:[%s2124_s25 + $0x108] ss:$8 sps:$4 sm:$0xff]  }
  0x46   : > { %1931 = vmatmul.mubr.msk.bf16.vlgmr.msra.gmra.mrb[0].mxu0 %vm212_vm1, %v2048_v35  ;;  %v1399_v1 = vrot.slane %v1398_v25, 4  ;;  %v1423_v35 = vshll.u32 %v1794_v21, 16  ;;  %v1417_v37 = vrot.slane %v1415_v30, 5  ;;  %v1422_v38 = vrot.slane %v1420_v31, 4  ;;  %v1809_v18 = vld [vmem:[%s2358_s2] ss:$0 sm:$0xff] }
  0x47   : > { %1939 = vmatpush3.bf16.msra.mxu0 %v1488_v34  ;;  %1934 = vmatprep.mubr.msk.bf16.mxu0 %vm212_vm1, %v2051_v39  ;;  %v1411_v34 = vrot.slane %v1409_v27, 5  ;;  %v1429_v39 = vshll.u32 %v1795_v22, 16  ;;  %v1443_v49 = vshll.u32 %v1797_v16, 16  ;;  %v1436_v51 = vrot.slane %v1434_v23, 4 }
  0x48   : > { %v1404_v40 = vsel %vm2164_vm4, %v1399_v1, %v1403_v14  ;;  %v1425_v42 = vrot.slane %v1423_v35, 5  ;;  %v1451_v54 = vshll.u32 %v1798_v43, 16  ;;  %v1457_v55 = vshll.u32 %v1799_v45, 16 }
  0x49   : > { %v1412_v41 = vor.u32 %v1411_v34, %v1408_v33  ;;  %v1431_v47 = vrot.slane %v1429_v39, 5  ;;  %v1445_v60 = vrot.slane %v1443_v49, 5 }
  0x4a   : > { %1891 = vmatmul.mubr.msk.bf16.vlgmr.msra.gmra.mrb[0].mxu1 %vm212_vm1, %v2050_v52  ;;  %v1426_v50 = vor.u32 %v1425_v42, %v1422_v38  ;;  %v1448_v52 = vshrl.u32 %v1798_v43, 16  ;;  %v1453_v61 = vrot.slane %v1451_v54, 5  ;;  %v1459_v4 = vrot.slane %v1457_v55, 5 }
  0x4b   : > { %1949 = vmatpush3.bf16.msra.mxu1 %v2107_v3  ;;  %1894 = vmatprep.mubr.msk.bf16.mxu1 %vm212_vm1, %v2053_v5  ;;  %v1390_v3 = vsel %vm2164_vm4, %v1385_v29, %v1389_v9  ;;  %v1413_v10 = vrot.slane %v1412_v41, 4 }
  0x4c   : > { %v1802_v46 = vcombine.low %v1390_v3, %v1404_v40  ;;  %v1427_v57 = vrot.slane %v1426_v50, 4  ;;  %v1450_v58 = vrot.slane %v1448_v52, 4 }
  0x4d   : > { %v1418_v56 = vsel %vm2164_vm4, %v1413_v10, %v1417_v37 }
  0x4e   : > { %1935 = vmatmul.mubr.msk.bf16.gmra.mrb[4].mxu0 %vm212_vm1, %v2052_v53  ;;  %v1439_v53 = vrot.slane %v1437_v48, 5  ;;  %v1432_v62 = vsel %vm2164_vm4, %v1427_v57, %v1431_v47  ;;  %v1454_v2 = vor.u32 %v1453_v61, %v1450_v58 }
  0x4f   : > { %1940 = vmatprep.mubr.msk.bf16.mxu0 %vm212_vm1, %v1801_v28  ;;  %v1803_v63 = vcombine.low %v1418_v56, %v1432_v62 }
  0x50   : > { %v1440_v59 = vor.u32 %v1439_v53, %v1436_v51  ;;  %v1455_v6 = vrot.slane %v1454_v2, 4 }
  0x52   : > { %1895 = vmatmul.mubr.msk.bf16.gmra.mrb[4].mxu1 %vm212_vm1, %v2054_v32  ;;  %v1441_v0 = vrot.slane %v1440_v59, 4  ;;  %v1460_v7 = vsel %vm2164_vm4, %v1455_v6, %v1459_v4 }
  0x53   : > { %1904 = vmatprep.mubr.msk.bf16.mxu1 %vm212_vm1, %v2055_v15 }
  0x54   : > { %v1446_v5 = vsel %vm2164_vm4, %v1441_v0, %v1445_v60 }
  0x55   : > { %v1804_v9 = vcombine.low %v1446_v5, %v1460_v7 }
  0x56   : > { %1941 = vmatmul.mubr.msk.bf16.vlgmr.msra.gmra.mrb[0].mxu0 %vm212_vm1, %v1802_v46 }
  0x57   : > { %1944 = vmatprep.mubr.msk.bf16.mxu0 %vm212_vm1, %v1803_v63 }
  0x5e   : > { %1945 = vmatmul.mubr.msk.bf16.gmra.mrb[4].mxu0 %vm212_vm1, %v1804_v9  ;;  %1905 = vmatmul.mubr.msk.bf16.vlgmr.msra.gmra.mrb[4].mxu1 %vm212_vm1, %v2056_v8 }
 0x11d   : > { %v1892_v11 = vpop.f32.mrb[0].mxu1 }
 0x11e   : > { %v707_v12 = vpop.f32.mrb[1].mxu1 }
 0x11f   : > { %v1893_v13 = vpop.f32.mrb[2].mxu1 }
 0x120   : > { %v710_v14 = vpop.f32.mrb[3].mxu1 }
 0x129   : > { %v1942_v17 = vpop.f32.mrb[0].mxu0 }
 0x12a   : > { %v1950_v19 = vadd.f32 %v1942_v17, %v1892_v11  ;;  %v1524_v20 = vpop.f32.mrb[1].mxu0 }
 0x12b   : > { %v1951_v44 = vadd.f32 %v1524_v20, %v707_v12  ;;  %v1943_v21 = vpop.f32.mrb[2].mxu0 }
 0x12c   : > { %v1572_v22 = vadd.f32 %v1950_v19, %v1809_v18  ;;  %v1952_v24 = vadd.f32 %v1943_v21, %v1893_v13  ;;  %v1527_v25 = vpop.f32.mrb[3].mxu0 }
 0x12d   : > { %v1570_v26 = vadd.f32 %v1951_v44, %v1809_v18  ;;  %v1953_v27 = vadd.f32 %v1527_v25, %v710_v14 }
 0x12e   : > { %v1580_v28 = vmax.f32 %v1572_v22, 0.0  ;;  %v1573_v29 = vadd.f32 %v1952_v24, %v1809_v18 }
 0x12f   : > { %v1578_v30 = vmax.f32 %v1570_v26, 0.0  ;;  %v1571_v31 = vadd.f32 %v1953_v27, %v1809_v18 }
 0x130   : > { %1588 = vst [vmem:[%s2343_s16 + $0x10] sm:$0xff] %v1580_v28  ;;  %v1581_v32 = vmax.f32 %v1573_v29, 0.0 }
 0x131   : > { %1586 = vst [vmem:[%s2343_s16] sm:$0xff] %v1578_v30  ;;  %v1579_v1 = vmax.f32 %v1571_v31, 0.0  ;;  %v1946_v33 = vpop.f32.mrb[4].mxu0  ;;  %v1906_v35 = vpop.f32.mrb[4].mxu1 }
 0x132   : > { %1589 = vst [vmem:[%s2343_s16 + $0x18] sm:$0xff] %v1581_v32  ;;  %v1540_v34 = vpop.f32.mrb[5].mxu0  ;;  %v1954_v3 = vadd.f32 %v1946_v33, %v1906_v35  ;;  %v842_v37 = vpop.f32.mrb[5].mxu1 }
 0x133   : > { %1587 = vst [vmem:[%s2343_s16 + $0x8] sm:$0xff] %v1579_v1  ;;  %v1947_v36 = vpop.f32.mrb[6].mxu0  ;;  %v1955_v39 = vadd.f32 %v1540_v34, %v842_v37  ;;  %v1907_v16 = vpop.f32.mrb[6].mxu1 }
 0x134   : > { %v1543_v38 = vpop.f32.mrb[7].mxu0  ;;  %v1576_v40 = vadd.f32 %v1954_v3, %v1809_v18  ;;  %v1956_v41 = vadd.f32 %v1947_v36, %v1907_v16  ;;  %v845_v42 = vpop.f32.mrb[7].mxu1 }
 0x135   : > { %v1574_v43 = vadd.f32 %v1955_v39, %v1809_v18  ;;  %v1957_v45 = vadd.f32 %v1543_v38, %v845_v42 }
 0x136   : > { %v1584_v23 = vmax.f32 %v1576_v40, 0.0  ;;  %v1577_v46 = vadd.f32 %v1956_v41, %v1809_v18 }
 0x137   : > { %v1582_v15 = vmax.f32 %v1574_v43, 0.0  ;;  %v1575_v47 = vadd.f32 %v1957_v45, %v1809_v18 }
 0x138   : > { %1592 = vst [vmem:[%s2343_s16 + $0x30] sm:$0xff] %v1584_v23  ;;  %v1585_v48 = vmax.f32 %v1577_v46, 0.0 }
 0x139   : > { %1590 = vst [vmem:[%s2343_s16 + $0x20] sm:$0xff] %v1582_v15  ;;  %v1583_v49 = vmax.f32 %v1575_v47, 0.0 }
 0x13a   : > { %1593 = vst [vmem:[%s2343_s16 + $0x38] sm:$0xff] %v1585_v48 }
 0x13b   : > { %1591 = vst [vmem:[%s2343_s16 + $0x28] sm:$0xff] %v1583_v49 }
 0x13c PF: > { %s13_s12 = sadd.s32 1, %s2063_s12  }
 0x13d   : > { %p10_p4 = scmp.ge.s32.totalorder %s13_s12, 4  }
 0x13f   :  { %12 = sbr.rel (!%p10_p4) target bundleno = 1 (0x1), region = 75 }

// kernel: _forward.3
= control target key start
LH: loop header
LB: loop body
LE: loop exit
PB: predicated region body
PF: predicated region fallthrough
CT: control target
= control target key end

     0   :  { %s6298_s12 = smov 0   ;;  %s8117_s0 = inlined_call_operand.vmem [shape: bf16[2,18,18,3], index: 0, kind: input, shape index: {}]   ;;  %s8118_s1 = inlined_call_operand.vmem [shape: bf16[9,3,128], index: 1, kind: input, shape index: {}]   ;;  %s8119_s2 = inlined_call_operand.vmem [shape: f32[1,128], index: 2, kind: input, shape index: {}]   ;;  %s8120_s3 = inlined_call_operand.vmem [shape: f32[2,16,16,128], index: 3, kind: output, shape index: {}]  }
   0x1 LB: > { %s4892_s13 = sadd.s32 4294967295, %s6275_s12   ;;  %p4896_p0 = scmp.ge.s32.totalorder %s6275_s12, 1  ;;  %s6275_s12 = sphi %s6298_s12, %s13_s12  }
   0x2   : > { %p137_p1 = scmp.lt.s32.totalorder %s6275_s12, 3 }
   0x4   : > { %p138_p2 = pnand %p4896_p0, %p137_p1 }
   0x6   : > { %141 = sbr.rel (%p138_p2) target bundleno = 587 (0x24b), region = 32 }
   0xd   : > { %v4900_v0 = vld [vmem:[%s8118_s1 + $0x2] sm:$0x3]  ;;  %vm707_vm0 = vcmask 1040384   ;;  %vm708_vm1 = vcmask 1041408   ;;  %p161_p3 = scmp.lt.s32.totalorder %s4892_s13, 1  ;;  %v6277_v1 = vmov 65535  }
   0xe   : > { %v709_v2 = vsel %vm707_vm0, 4294967295, %v6277_v1  ;;  %v5127_v3 = vld [vmem:[%s8118_s1 + $0x8] sm:$0x3]  ;;  %v204_v5 = vld [vmem:[%s8118_s1] sm:$0x3]  ;;  %vm658_vm4 = vcmask 23552  }
   0xf   : > { %v6312_v4 = vsel %vm708_vm1, %v709_v2, 0  ;;  %s8199_s13 = smov (!%p161_p3, %s4892_s13), 1  ;;  %v5192_v9 = vld [vmem:[%s8118_s1 + $0xa] sm:$0x3]  ;;  %vm221_vm2 = vsmask.f32 3328 }
  0x10   : > { %v712_v6 = vand.u32 %v4900_v0, %v6312_v4  ;;  %v6321_v7 = vand.u32 %v5127_v3, %v6312_v4  ;;  %v6324_v8 = vand.u32 %v6312_v4, %v204_v5  ;;  %s6157_s22 = smul.u32 216, %s8199_s13  ;;  %v6331_v10 = vand.u32 %v5192_v9, %v6312_v4  ;;  %v5257_v26 = vld [vmem:[%s8118_s1 + $0xc] sm:$0x3]  ;;  %v4981_v31 = vld [vmem:[%s8118_s1 + $0x4] sm:$0x3]  ;;  %s5439_s11 = sshll.u32 %s8199_s13, 8 }
  0x11   : > { %vm222_vm3 = vsmask.f32 7440  ;;  %v6370_v42 = vand.u32 %v5257_v26, %v6312_v4  ;;  %v6373_v46 = vand.u32 %v4981_v31, %v6312_v4  ;;  %vm1215_vm6 = vcmask 1042432   ;;  %s8045_s16 = scalar_lea.vmem %s8120_s3, %s5439_s11 }
  0x12   : > { %8137 = vst [vmem:[#allocation2_spill] sm:$0xff] %v6321_v7  ;;  %5593 = vmatprep.subr.bf16.mxu1 %v712_v6  ;;  %5729 = vmatprep.subr.bf16.mxu0 %v6321_v7  ;;  %s6338_s25 = scalar_lea.vmem %s8117_s0, %s6157_s22  ;;  %vm6364_vm5 = vmor %vm221_vm2, %vm222_vm3  ;;  %vm1216_vm7 = vcmask 1046532  }
  0x13   : > { %5594 = vmatpush3.bf16.msra.mxu1 %v712_v6  ;;  %5730 = vmatpush3.bf16.msra.mxu0 %v6321_v7  ;;  %v172_v11 = vld [vmem:[%s6338_s25] sm:$0xf]  ;;  %v173_v12 = vld [vmem:[%s6338_s25 + $0x4] sm:$0xf]  ;;  %v205_v13 = vld [vmem:[%s6338_s25 + $0x8] sm:$0x1] }
  0x14   : > { %5627 = vmatprep.subr.bf16.mxu1 %v6324_v8  ;;  %5763 = vmatprep.subr.bf16.mxu0 %v6331_v10  ;;  %v225_v14 = vshrl.u32 %v172_v11, 16  ;;  %v228_v15 = vshll.u32 %v172_v11, 16  ;;  %v234_v16 = vshll.u32 %v173_v12, 16  ;;  %v238_v17 = vshrl.u32 %v173_v12, 16  ;;  %v5079_v18 = vld [vmem:[%s6338_s25 + $0xc] sm:$0xf]  ;;  %vm6585_vm8 = vmor %vm1215_vm6, %vm1216_vm7 }
  0x15   : > { %v244_v19 = vshll.u32 %v205_v13, 16  ;;  %v6347_v20 = vld [vmem:[%s6338_s25 + $0x10] sm:$0xf]  ;;  %v6350_v21 = vld [vmem:[%s6338_s25 + $0x14] sm:$0x1]  ;;  %v2032_v28 = vshrl.u32 %v5079_v18, 16 }
  0x16   : > { %v227_v22 = vrot.slane %v225_v14, 4  ;;  %v230_v23 = vrot.slane %v228_v15, 5  ;;  %v236_v24 = vrot.slane %v234_v16, 5  ;;  %v240_v25 = vrot.slane %v238_v17, 4  ;;  %v174_v36 = vld [vmem:[%s6338_s25 + $0xc] sm:$0xf] }
  0x17   : > { %v246_v27 = vrot.slane %v244_v19, 5  ;;  %v2035_v29 = vshll.u32 %v5079_v18, 16  ;;  %v2041_v30 = vshll.u32 %v6347_v20, 16  ;;  %v2045_v34 = vshrl.u32 %v6347_v20, 16  ;;  %v175_v41 = vld [vmem:[%s6338_s25 + $0x10] sm:$0xf] }
  0x18   : > { %v231_v32 = vor.u32 %v230_v23, %v227_v22  ;;  %v241_v33 = vor.u32 %v240_v25, %v236_v24  ;;  %v2051_v35 = vshll.u32 %v6350_v21, 16  ;;  %v2034_v38 = vrot.slane %v2032_v28, 4  ;;  %v206_v49 = vld [vmem:[%s6338_s25 + $0x14] sm:$0x1]  ;;  %v5082_v60 = vld [vmem:[%s6338_s25 + $0x18] sm:$0xf] }
  0x19   : > { %v2037_v39 = vrot.slane %v2035_v29, 5  ;;  %v2043_v40 = vrot.slane %v2041_v30, 5  ;;  %v2047_v45 = vrot.slane %v2045_v34, 4  ;;  %v249_v50 = vshrl.u32 %v174_v36, 16  ;;  %v6382_v1 = vld [vmem:[%s6338_s25 + $0x1c] sm:$0xf] }
  0x1a   : > { %v232_v43 = vrot.slane %v231_v32, 4  ;;  %v242_v44 = vrot.slane %v241_v33, 4  ;;  %v2053_v48 = vrot.slane %v2051_v35, 5  ;;  %v252_v51 = vshll.u32 %v174_v36, 16  ;;  %v6390_v9 = vld [vmem:[%s6338_s25 + $0x20] sm:$0x1] }
  0x1b   : > { %v2038_v47 = vor.u32 %v2037_v39, %v2034_v38  ;;  %v2048_v54 = vor.u32 %v2047_v45, %v2043_v40  ;;  %v258_v55 = vshll.u32 %v175_v41, 16  ;;  %v251_v58 = vrot.slane %v249_v50, 4  ;;  %v176_v25 = vld [vmem:[%s6338_s25 + $0x18] sm:$0xf]  ;;  %v177_v30 = vld [vmem:[%s6338_s25 + $0x1c] sm:$0xf] }
  0x1c   : > { %v237_v52 = vsel %vm6364_vm5, %v232_v43, %v236_v24  ;;  %v247_v53 = vsel %vm6364_vm5, %v242_v44, %v246_v27  ;;  %v254_v59 = vrot.slane %v252_v51, 5  ;;  %v262_v63 = vshrl.u32 %v175_v41, 16  ;;  %v207_v38 = vld [vmem:[%s6338_s25 + $0x20] sm:$0x1] }
  0x1d   : > { %v4901_v56 = vcombine.low %v237_v52, %v247_v53  ;;  %v2039_v57 = vrot.slane %v2038_v47, 4  ;;  %v2049_v61 = vrot.slane %v2048_v54, 4  ;;  %v260_v62 = vrot.slane %v258_v55, 5  ;;  %v5085_v47 = vld [vmem:[%s6338_s25 + $0x24] sm:$0xf] }
  0x1e   : > { %v268_v0 = vshll.u32 %v206_v49, 16  ;;  %v2775_v3 = vrot.slane %v6347_v20, 5  ;;  %v2778_v5 = vrot.slane %v6350_v21, 5  ;;  %v255_v6 = vor.u32 %v254_v59, %v251_v58  ;;  %v6413_v52 = vld [vmem:[%s6338_s25 + $0x28] sm:$0xf] }
  0x1f   : > { %5595 = vmatprep.mubr.msk.bf16.mxu1 %vm658_vm4, %v4901_v56  ;;  %v2044_v2 = vsel %vm6364_vm5, %v2039_v57, %v2043_v40  ;;  %v2054_v11 = vsel %vm6364_vm5, %v2049_v61, %v2053_v48  ;;  %v264_v12 = vrot.slane %v262_v63, 4  ;;  %v2056_v14 = vshrl.u32 %v5082_v60, 16  ;;  %v6419_v59 = vld [vmem:[%s6338_s25 + $0x2c] sm:$0x1]  ;;  %v6618_v21 = vld [vmem:[%s6338_s25 + $0x7c] sm:$0xf] }
  0x20   : > { %v270_v13 = vrot.slane %v268_v0, 5  ;;  %v5128_v15 = vcombine.low %v2044_v2, %v2054_v11  ;;  %v256_v16 = vrot.slane %v255_v6, 4  ;;  %v2059_v17 = vshll.u32 %v5082_v60, 16  ;;  %v178_v6 = vld [vmem:[%s6338_s25 + $0x24] sm:$0xf] }
  0x21   : > { %v2065_v18 = vshll.u32 %v6382_v1, 16  ;;  %v265_v19 = vor.u32 %v264_v12, %v260_v62  ;;  %v2058_v22 = vrot.slane %v2056_v14, 4  ;;  %v2069_v23 = vshrl.u32 %v6382_v1, 16 }
  0x22   : > { %v2075_v24 = vshll.u32 %v6390_v9, 16  ;;  %5731 = vmatprep.mubr.msk.bf16.mxu0 %vm658_vm4, %v5128_v15  ;;  %v261_v26 = vsel %vm6364_vm5, %v256_v16, %v260_v62  ;;  %v2061_v27 = vrot.slane %v2059_v17, 5  ;;  %v2782_v29 = vrot.slane %v6382_v1, 5  ;;  %v179_v15 = vld [vmem:[%s6338_s25 + $0x28] sm:$0xf] }
  0x23   : > { %v2067_v28 = vrot.slane %v2065_v18, 5  ;;  %v266_v31 = vrot.slane %v265_v19, 4  ;;  %v2071_v32 = vrot.slane %v2069_v23, 4  ;;  %v2785_v34 = vrot.slane %v6390_v9, 5  ;;  %v208_v23 = vld [vmem:[%s6338_s25 + $0x2c] sm:$0x1] }
  0x24   : > { %v2077_v33 = vrot.slane %v2075_v24, 5  ;;  %v2062_v35 = vor.u32 %v2061_v27, %v2058_v22  ;;  %v6406_v36 = vrot.slane %v2782_v29, 4  ;;  %v273_v39 = vshrl.u32 %v176_v25, 16 }
  0x25   : > { %v276_v40 = vshll.u32 %v176_v25, 16  ;;  %v271_v41 = vsel %vm6364_vm5, %v266_v31, %v270_v13  ;;  %v2072_v43 = vor.u32 %v2071_v32, %v2067_v28  ;;  %v282_v44 = vshll.u32 %v177_v30, 16  ;;  %v5088_v31 = vld [vmem:[%s6338_s25 + $0x30] sm:$0xf] }
  0x26   : > { %v286_v45 = vshrl.u32 %v177_v30, 16  ;;  %v4902_v48 = vcombine.low %v261_v26, %v271_v41  ;;  %v2063_v49 = vrot.slane %v2062_v35, 4  ;;  %v275_v50 = vrot.slane %v273_v39, 4  ;;  %v6439_v39 = vld [vmem:[%s6338_s25 + $0x34] sm:$0xf] }
  0x27   : > { %v278_v51 = vrot.slane %v276_v40, 5  ;;  %v2073_v53 = vrot.slane %v2072_v43, 4  ;;  %v284_v54 = vrot.slane %v282_v44, 5  ;;  %v292_v56 = vshll.u32 %v207_v38, 16 }
  0x28   : > { %v288_v55 = vrot.slane %v286_v45, 4  ;;  %5596 = vmatmul.mubr.msk.bf16.vlgmr.msra.gmra.mrb[0].mxu1 %vm658_vm4, %v4902_v48  ;;  %v2068_v57 = vsel %vm6364_vm5, %v2063_v49, %v2067_v28  ;;  %v2080_v60 = vshrl.u32 %v5085_v47, 16  ;;  %v2083_v61 = vshll.u32 %v5085_v47, 16  ;;  %v6446_v47 = vld [vmem:[%s6338_s25 + $0x38] sm:$0x1] }
  0x29   : > { %v279_v58 = vor.u32 %v278_v51, %v275_v50  ;;  %5628 = vmatpush3.bf16.msra.mxu1 %v6324_v8  ;;  %v2078_v62 = vsel %vm6364_vm5, %v2073_v53, %v2077_v33  ;;  %v294_v0 = vrot.slane %v292_v56, 5  ;;  %v2089_v2 = vshll.u32 %v6413_v52, 16 }
  0x2a   : > { %v289_v63 = vor.u32 %v288_v55, %v284_v54  ;;  %v5129_v11 = vcombine.low %v2068_v57, %v2078_v62  ;;  %v2082_v13 = vrot.slane %v2080_v60, 4  ;;  %v2085_v14 = vrot.slane %v2083_v61, 5  ;;  %5661 = vmatprep.subr.bf16.mxu1 %v6373_v46  ;;  %v180_v60 = vld [vmem:[%s6338_s25 + $0x30] sm:$0xf] }
  0x2b   : > { %v280_v12 = vrot.slane %v279_v58, 4  ;;  %v2091_v17 = vrot.slane %v2089_v2, 5  ;;  %v2093_v8 = vshrl.u32 %v6413_v52, 16  ;;  %v2099_v18 = vshll.u32 %v6419_v59, 16  ;;  %v181_v2 = vld [vmem:[%s6338_s25 + $0x34] sm:$0xf] }
  0x2c   : > { %v290_v16 = vrot.slane %v289_v63, 4  ;;  %5732 = vmatmul.mubr.msk.bf16.vlgmr.msra.gmra.mrb[0].mxu0 %vm658_vm4, %v5129_v11  ;;  %v2086_v22 = vor.u32 %v2085_v14, %v2082_v13  ;;  %v297_v24 = vshrl.u32 %v178_v6, 16  ;;  %v300_v25 = vshll.u32 %v178_v6, 16  ;;  %v209_v14 = vld [vmem:[%s6338_s25 + $0x38] sm:$0x1] }
  0x2d   : > { %v285_v19 = vsel %vm6364_vm5, %v280_v12, %v284_v54  ;;  %5764 = vmatpush3.bf16.msra.mxu0 %v6331_v10  ;;  %v2095_v27 = vrot.slane %v2093_v8, 4  ;;  %v2101_v28 = vrot.slane %v2099_v18, 5  ;;  %v306_v30 = vshll.u32 %v179_v15, 16 }
  0x2e   : > { %v295_v26 = vsel %vm6364_vm5, %v290_v16, %v294_v0  ;;  %v2087_v33 = vrot.slane %v2086_v22, 4  ;;  %v299_v35 = vrot.slane %v297_v24, 4  ;;  %v302_v38 = vrot.slane %v300_v25, 5  ;;  %5797 = vmatprep.subr.bf16.mxu0 %v6370_v42  ;;  %v5091_v24 = vld [vmem:[%s6338_s25 + $0x3c] sm:$0xf] }
  0x2f   : > { %v4903_v32 = vcombine.low %v285_v19, %v295_v26  ;;  %v2096_v40 = vor.u32 %v2095_v27, %v2091_v17  ;;  %v308_v41 = vrot.slane %v306_v30, 5  ;;  %v310_v43 = vshrl.u32 %v179_v15, 16  ;;  %v6463_v30 = vld [vmem:[%s6338_s25 + $0x40] sm:$0xf] }
  0x30   : > { %v316_v10 = vshll.u32 %v208_v23, 16  ;;  %v2092_v44 = vsel %vm6364_vm5, %v2087_v33, %v2091_v17  ;;  %v303_v45 = vor.u32 %v302_v38, %v299_v35  ;;  %v2104_v48 = vshrl.u32 %v5088_v31, 16 }
  0x31   : > { %5599 = vmatprep.mubr.msk.bf16.mxu1 %vm658_vm4, %v4903_v32  ;;  %v2107_v49 = vshll.u32 %v5088_v31, 16  ;;  %v2097_v50 = vrot.slane %v2096_v40, 4  ;;  %v312_v51 = vrot.slane %v310_v43, 4  ;;  %v2113_v54 = vshll.u32 %v6439_v39, 16  ;;  %v6468_v43 = vld [vmem:[%s6338_s25 + $0x44] sm:$0x1] }
  0x32   : > { %v318_v53 = vrot.slane %v316_v10, 5  ;;  %v304_v55 = vrot.slane %v303_v45, 4  ;;  %v2106_v56 = vrot.slane %v2104_v48, 4  ;;  %v2117_v58 = vshrl.u32 %v6439_v39, 16 }
  0x33   : > { %v2109_v57 = vrot.slane %v2107_v49, 5  ;;  %v2102_v61 = vsel %vm6364_vm5, %v2097_v50, %v2101_v28  ;;  %v313_v62 = vor.u32 %v312_v51, %v308_v41  ;;  %v2115_v63 = vrot.slane %v2113_v54, 5  ;;  %v182_v50 = vld [vmem:[%s6338_s25 + $0x3c] sm:$0xf] }
  0x34   : > { %v2123_v0 = vshll.u32 %v6446_v47, 16  ;;  %v5130_v6 = vcombine.low %v2092_v44, %v2102_v61  ;;  %v309_v11 = vsel %vm6364_vm5, %v304_v55, %v308_v41  ;;  %v2119_v13 = vrot.slane %v2117_v58, 4 }
  0x35   : > { %v2110_v12 = vor.u32 %v2109_v57, %v2106_v56  ;;  %v314_v15 = vrot.slane %v313_v62, 4  ;;  %v321_v17 = vshrl.u32 %v180_v60, 16  ;;  %v324_v8 = vshll.u32 %v180_v60, 16  ;;  %v183_v56 = vld [vmem:[%s6338_s25 + $0x40] sm:$0xf] }
  0x36   : > { %v2125_v16 = vrot.slane %v2123_v0, 5  ;;  %5735 = vmatprep.mubr.msk.bf16.mxu0 %vm658_vm4, %v5130_v6  ;;  %v2120_v19 = vor.u32 %v2119_v13, %v2115_v63  ;;  %v330_v22 = vshll.u32 %v181_v2, 16  ;;  %v334_v23 = vshrl.u32 %v181_v2, 16  ;;  %v210_v13 = vld [vmem:[%s6338_s25 + $0x44] sm:$0x1] }
  0x37   : > { %v2111_v18 = vrot.slane %v2110_v12, 4  ;;  %v319_v25 = vsel %vm6364_vm5, %v314_v15, %v318_v53  ;;  %v323_v26 = vrot.slane %v321_v17, 4  ;;  %v326_v27 = vrot.slane %v324_v8, 5  ;;  %v5094_v15 = vld [vmem:[%s6338_s25 + $0x48] sm:$0xf] }
  0x38   : > { %v340_v28 = vshll.u32 %v209_v14, 16  ;;  %v4904_v31 = vcombine.low %v309_v11, %v319_v25  ;;  %v2121_v33 = vrot.slane %v2120_v19, 4  ;;  %v332_v35 = vrot.slane %v330_v22, 5  ;;  %v6486_v19 = vld [vmem:[%s6338_s25 + $0x4c] sm:$0xf] }
  0x39   : > { %v2116_v32 = vsel %vm6364_vm5, %v2111_v18, %v2115_v63  ;;  %v327_v38 = vor.u32 %v326_v27, %v323_v26  ;;  %v336_v40 = vrot.slane %v334_v23, 4  ;;  %v2128_v10 = vshrl.u32 %v5091_v24, 16 }
  0x3a   : > { %v342_v41 = vrot.slane %v340_v28, 5  ;;  %5600 = vmatmul.mubr.msk.bf16.gmra.mrb[4].mxu1 %vm658_vm4, %v4904_v31  ;;  %v2126_v44 = vsel %vm6364_vm5, %v2121_v33, %v2125_v16  ;;  %v2131_v45 = vshll.u32 %v5091_v24, 16  ;;  %v2137_v48 = vshll.u32 %v6463_v30, 16 }
  0x3b   : > { %v2141_v49 = vshrl.u32 %v6463_v30, 16  ;;  %v5131_v51 = vcombine.low %v2116_v32, %v2126_v44  ;;  %v328_v53 = vrot.slane %v327_v38, 4  ;;  %v337_v54 = vor.u32 %v336_v40, %v332_v35 }
  0x3c   : > { %v2130_v55 = vrot.slane %v2128_v10, 4  ;;  %v2133_v57 = vrot.slane %v2131_v45, 5  ;;  %v2139_v58 = vrot.slane %v2137_v48, 5  ;;  %v2147_v61 = vshll.u32 %v6468_v43, 16 }
  0x3d   : > { %v2143_v60 = vrot.slane %v2141_v49, 4  ;;  %5736 = vmatmul.mubr.msk.bf16.gmra.mrb[4].mxu0 %vm658_vm4, %v5131_v51  ;;  %v333_v62 = vsel %vm6364_vm5, %v328_v53, %v332_v35  ;;  %v338_v63 = vrot.slane %v337_v54, 4  ;;  %v345_v0 = vshrl.u32 %v182_v50, 16  ;;  %v6494_v35 = vld [vmem:[%s6338_s25 + $0x50] sm:$0x1] }
  0x3e   : > { %v348_v2 = vshll.u32 %v182_v50, 16  ;;  %v2134_v6 = vor.u32 %v2133_v57, %v2130_v55  ;;  %v2149_v12 = vrot.slane %v2147_v61, 5  ;;  %v354_v14 = vshll.u32 %v183_v56, 16  ;;  %v6501_v49 = vld [vmem:[%s6338_s25 + $0x4c] sm:$0xf] }
  0x3f   : > { %v2144_v11 = vor.u32 %v2143_v60, %v2139_v58  ;;  %v343_v16 = vsel %vm6364_vm5, %v338_v63, %v342_v41  ;;  %v347_v17 = vrot.slane %v345_v0, 4  ;;  %v358_v18 = vshrl.u32 %v183_v56, 16  ;;  %v6498_v41 = vld [vmem:[%s6338_s25 + $0x48] sm:$0xf] }
  0x40   : > { %v350_v8 = vrot.slane %v348_v2, 5  ;;  %v4905_v22 = vcombine.low %v333_v62, %v343_v16  ;;  %v2135_v23 = vrot.slane %v2134_v6, 4  ;;  %v356_v25 = vrot.slane %v354_v14, 5  ;;  %v5097_v2 = vld [vmem:[%s6338_s25 + $0x54] sm:$0xf] }
  0x41   : > { %v2145_v24 = vrot.slane %v2144_v11, 4  ;;  %v360_v27 = vrot.slane %v358_v18, 4  ;;  %v364_v28 = vshll.u32 %v210_v13, 16  ;;  %v2152_v31 = vshrl.u32 %v5094_v15, 16 }
  0x42   : > { %v351_v26 = vor.u32 %v350_v8, %v347_v17  ;;  %5603 = vmatprep.mubr.msk.bf16.mxu1 %vm658_vm4, %v4905_v22  ;;  %v2140_v32 = vsel %vm6364_vm5, %v2135_v23, %v2139_v58  ;;  %v2155_v38 = vshll.u32 %v5094_v15, 16  ;;  %v2161_v40 = vshll.u32 %v6486_v19, 16  ;;  %v211_v58 = vld [vmem:[%s6338_s25 + $0x50] sm:$0x1]  ;;  %v6517_v8 = vld [vmem:[%s6338_s25 + $0x58] sm:$0xf] }
  0x43   : > { %v2150_v33 = vsel %vm6364_vm5, %v2145_v24, %v2149_v12  ;;  %v361_v45 = vor.u32 %v360_v27, %v356_v25  ;;  %v366_v48 = vrot.slane %v364_v28, 5  ;;  %v2154_v50 = vrot.slane %v2152_v31, 4  ;;  %v6523_v28 = vld [vmem:[%s6338_s25 + $0x5c] sm:$0x1] }
  0x44   : > { %v5132_v10 = vcombine.low %v2140_v32, %v2150_v33  ;;  %v352_v44 = vrot.slane %v351_v26, 4  ;;  %v2157_v51 = vrot.slane %v2155_v38, 5  ;;  %v2163_v53 = vrot.slane %v2161_v40, 5 }
  0x45   : > { %v2165_v54 = vshrl.u32 %v6486_v19, 16  ;;  %v362_v56 = vrot.slane %v361_v45, 4  ;;  %v2171_v57 = vshll.u32 %v6494_v35, 16  ;;  %v369_v60 = vshrl.u32 %v6498_v41, 16 }
  0x46   : > { %5739 = vmatprep.mubr.msk.bf16.mxu0 %vm658_vm4, %v5132_v10  ;;  %v357_v55 = vsel %vm6364_vm5, %v352_v44, %v356_v25  ;;  %v2158_v61 = vor.u32 %v2157_v51, %v2154_v50  ;;  %v372_v63 = vshll.u32 %v6498_v41, 16  ;;  %v378_v0 = vshll.u32 %v6501_v49, 16  ;;  %v6527_v10 = vld [vmem:[%s6338_s25 + $0x54] sm:$0xf]  ;;  %v6533_v51 = vld [vmem:[%s6338_s25 + $0x58] sm:$0xf] }
  0x47   : > { %v2167_v62 = vrot.slane %v2165_v54, 4  ;;  %v367_v6 = vsel %vm6364_vm5, %v362_v56, %v366_v48  ;;  %v2173_v11 = vrot.slane %v2171_v57, 5  ;;  %v371_v12 = vrot.slane %v369_v60, 4 }
  0x48   : > { %v382_v13 = vshrl.u32 %v6501_v49, 16  ;;  %v4906_v14 = vcombine.low %v357_v55, %v367_v6  ;;  %v2159_v15 = vrot.slane %v2158_v61, 4  ;;  %v374_v17 = vrot.slane %v372_v63, 5  ;;  %v212_v61 = vld [vmem:[%s6338_s25 + $0x5c] sm:$0x1] }
  0x49   : > { %v2168_v16 = vor.u32 %v2167_v62, %v2163_v53  ;;  %v380_v18 = vrot.slane %v378_v0, 5  ;;  %v388_v23 = vshll.u32 %v211_v58, 16  ;;  %v2176_v24 = vshrl.u32 %v5097_v2, 16 }
  0x4a   : > { %v384_v22 = vrot.slane %v382_v13, 4  ;;  %5604 = vmatmul.mubr.msk.bf16.gmra.mrb[8].mxu1 %vm658_vm4, %v4906_v14  ;;  %v2164_v25 = vsel %vm6364_vm5, %v2159_v15, %v2163_v53  ;;  %v375_v27 = vor.u32 %v374_v17, %v371_v12  ;;  %v2179_v31 = vshll.u32 %v5097_v2, 16 }
  0x4b   : > { %v2169_v26 = vrot.slane %v2168_v16, 4  ;;  %v390_v33 = vrot.slane %v388_v23, 5  ;;  %v2178_v38 = vrot.slane %v2176_v24, 4  ;;  %v2185_v40 = vshll.u32 %v6517_v8, 16  ;;  %v6547_v16 = vld [vmem:[%s6338_s25 + $0x64] sm:$0xf] }
  0x4c   : > { %v385_v32 = vor.u32 %v384_v22, %v380_v18  ;;  %v376_v45 = vrot.slane %v375_v27, 4  ;;  %v2181_v48 = vrot.slane %v2179_v31, 5  ;;  %v2189_v50 = vshrl.u32 %v6517_v8, 16 }
  0x4d   : > { %v2174_v44 = vsel %vm6364_vm5, %v2169_v26, %v2173_v11  ;;  %v2187_v55 = vrot.slane %v2185_v40, 5  ;;  %v2195_v56 = vshll.u32 %v6523_v28, 16  ;;  %v393_v62 = vshrl.u32 %v6527_v10, 16  ;;  %v5100_v11 = vld [vmem:[%s6338_s25 + $0x60] sm:$0xf] }
  0x4e   : > { %v5133_v53 = vcombine.low %v2164_v25, %v2174_v44  ;;  %v386_v54 = vrot.slane %v385_v32, 4  ;;  %v381_v57 = vsel %vm6364_vm5, %v376_v45, %v380_v18  ;;  %v2182_v58 = vor.u32 %v2181_v48, %v2178_v38  ;;  %v6554_v26 = vld [vmem:[%s6338_s25 + $0x68] sm:$0x1]  ;;  %v6558_v44 = vld [vmem:[%s6338_s25 + $0x60] sm:$0xf] }
  0x4f   : > { %v2191_v60 = vrot.slane %v2189_v50, 4  ;;  %v2197_v0 = vrot.slane %v2195_v56, 5  ;;  %v396_v2 = vshll.u32 %v6527_v10, 16  ;;  %v402_v6 = vshll.u32 %v6533_v51, 16 }
  0x50   : > { %5740 = vmatmul.mubr.msk.bf16.gmra.mrb[8].mxu0 %vm658_vm4, %v5133_v53  ;;  %v391_v63 = vsel %vm6364_vm5, %v386_v54, %v390_v33  ;;  %v2183_v13 = vrot.slane %v2182_v58, 4  ;;  %v395_v15 = vrot.slane %v393_v62, 4  ;;  %v406_v22 = vshrl.u32 %v6533_v51, 16  ;;  %v6564_v54 = vld [vmem:[%s6338_s25 + $0x64] sm:$0xf] }
  0x51   : > { %v4907_v12 = vcombine.low %v381_v57, %v391_v63  ;;  %v2192_v14 = vor.u32 %v2191_v60, %v2187_v55  ;;  %v398_v17 = vrot.slane %v396_v2, 5  ;;  %v404_v18 = vrot.slane %v402_v6, 5  ;;  %v213_v6 = vld [vmem:[%s6338_s25 + $0x68] sm:$0x1] }
  0x52   : > { %v412_v23 = vshll.u32 %v212_v61, 16  ;;  %v2188_v24 = vsel %vm6364_vm5, %v2183_v13, %v2187_v55  ;;  %v2200_v27 = vshrl.u32 %v5100_v11, 16  ;;  %v2203_v31 = vshll.u32 %v5100_v11, 16 }
  0x53   : > { %5607 = vmatprep.mubr.msk.bf16.mxu1 %vm658_vm4, %v4907_v12  ;;  %v2193_v25 = vrot.slane %v2192_v14, 4  ;;  %v399_v32 = vor.u32 %v398_v17, %v395_v15  ;;  %v408_v33 = vrot.slane %v406_v22, 4  ;;  %v2209_v40 = vshll.u32 %v6547_v16, 16  ;;  %v5160_v22 = vld [vmem:[%s6338_s25 + $0xc] sm:$0xe] }
  0x54   : > { %v414_v38 = vrot.slane %v412_v23, 5  ;;  %v2202_v48 = vrot.slane %v2200_v27, 4  ;;  %v2205_v50 = vrot.slane %v2203_v31, 5  ;;  %v2213_v53 = vshrl.u32 %v6547_v16, 16 }
  0x55   : > { %v2198_v45 = vsel %vm6364_vm5, %v2193_v25, %v2197_v0  ;;  %v400_v56 = vrot.slane %v399_v32, 4  ;;  %v409_v57 = vor.u32 %v408_v33, %v404_v18  ;;  %v2211_v58 = vrot.slane %v2209_v40, 5 }
  0x56   : > { %v5134_v55 = vcombine.low %v2188_v24, %v2198_v45  ;;  %v2206_v60 = vor.u32 %v2205_v50, %v2202_v48  ;;  %v2215_v61 = vrot.slane %v2213_v53, 4  ;;  %v2219_v62 = vshll.u32 %v6554_v26, 16 }
  0x57   : > { %v417_v63 = vshrl.u32 %v6558_v44, 16  ;;  %v405_v0 = vsel %vm6364_vm5, %v400_v56, %v404_v18  ;;  %v410_v2 = vrot.slane %v409_v57, 4  ;;  %v420_v11 = vshll.u32 %v6558_v44, 16  ;;  %v6579_v18 = vld [vmem:[%s6338_s25 + $0x6c] sm:$0xf] }
  0x58   : > { %5743 = vmatprep.mubr.msk.bf16.mxu0 %vm658_vm4, %v5134_v55  ;;  %v426_v12 = vshll.u32 %v6564_v54, 16  ;;  %v2207_v13 = vrot.slane %v2206_v60, 4  ;;  %v2216_v14 = vor.u32 %v2215_v61, %v2211_v58  ;;  %v2221_v15 = vrot.slane %v2219_v62, 5  ;;  %v6592_v55 = vld [vmem:[%s6338_s25 + $0x70] sm:$0xf] }
  0x59   : > { %v419_v17 = vrot.slane %v417_v63, 4  ;;  %v415_v23 = vsel %vm6364_vm5, %v410_v2, %v414_v38  ;;  %v422_v24 = vrot.slane %v420_v11, 5  ;;  %v430_v27 = vshrl.u32 %v6564_v54, 16  ;;  %v214_v2 = vld [vmem:[%s6338_s25 + $0x74] sm:$0x1] }
  0x5a   : > { %v428_v25 = vrot.slane %v426_v12, 5  ;;  %v4908_v31 = vcombine.low %v405_v0, %v415_v23  ;;  %v2212_v32 = vsel %vm6364_vm5, %v2207_v13, %v2211_v58  ;;  %v2217_v33 = vrot.slane %v2216_v14, 4  ;;  %v215_v23 = vld [vmem:[%s6338_s25 + $0x80] sm:$0x1] }
  0x5b   : > { %v436_v40 = vshll.u32 %v213_v6, 16  ;;  %v423_v38 = vor.u32 %v422_v24, %v419_v17  ;;  %v432_v48 = vrot.slane %v430_v27, 4  ;;  %v5176_v50 = vrot.slane %v5160_v22, 9  ;;  %v5161_v6 = vld [vmem:[%s6338_s25 + $0x18] sm:$0xe] }
  0x5c   : > { %v2777_v53 = vrot.slane %v2775_v3, 4  ;;  %5608 = vmatmul.mubr.msk.bf16.gmra.mrb[12].mxu1 %vm658_vm4, %v4908_v31  ;;  %v2222_v56 = vsel %vm6364_vm5, %v2217_v33, %v2221_v15  ;;  %v441_v58 = vshrl.u32 %v6579_v18, 16  ;;  %v444_v60 = vshll.u32 %v6579_v18, 16  ;;  %v6611_v15 = vld [vmem:[%s6338_s25 + $0x78] sm:$0xf] }
  0x5d   : > { %v438_v57 = vrot.slane %v436_v40, 5  ;;  %v5135_v61 = vcombine.low %v2212_v32, %v2222_v56  ;;  %v424_v62 = vrot.slane %v423_v38, 4  ;;  %v433_v63 = vor.u32 %v432_v48, %v428_v25  ;;  %v5162_v38 = vld [vmem:[%s6338_s25 + $0x24] sm:$0xe] }
  0x5e   : > { %v2776_v0 = vsel %vm6585_vm8, %v5176_v50, %v2775_v3  ;;  %v2779_v11 = vsel %vm6585_vm8, %v2777_v53, %v2778_v5  ;;  %v443_v12 = vrot.slane %v441_v58, 4  ;;  %v446_v13 = vrot.slane %v444_v60, 5 }
  0x5f   : > { %v450_v14 = vshll.u32 %v6592_v55, 16  ;;  %5744 = vmatmul.mubr.msk.bf16.gmra.mrb[12].mxu0 %vm658_vm4, %v5135_v61  ;;  %v429_v20 = vsel %vm6364_vm5, %v424_v62, %v428_v25  ;;  %v434_v3 = vrot.slane %v433_v63, 4  ;;  %v5193_v17 = vcombine.low %v2776_v0, %v2779_v11  ;;  %v6637_v61 = vld [vmem:[%s6338_s25 + $0x84] sm:$0xf] }
  0x60   : > { %v454_v22 = vshrl.u32 %v6592_v55, 16  ;;  %v447_v5 = vor.u32 %v446_v13, %v443_v12  ;;  %v460_v27 = vshll.u32 %v214_v2, 16  ;;  %v5177_v31 = vrot.slane %v5161_v6, 9 }
  0x61   : > { %v452_v24 = vrot.slane %v450_v14, 5  ;;  %v439_v32 = vsel %vm6364_vm5, %v434_v3, %v438_v57  ;;  %5765 = vmatprep.mubr.msk.bf16.mxu0 %vm658_vm4, %v5193_v17  ;;  %v2786_v25 = vsel %vm6585_vm8, %v6406_v36, %v2785_v34  ;;  %v465_v40 = vshrl.u32 %v6611_v15, 16 }
  0x62   : > { %v456_v33 = vrot.slane %v454_v22, 4  ;;  %v4909_v48 = vcombine.low %v429_v20, %v439_v32  ;;  %v448_v50 = vrot.slane %v447_v5, 4  ;;  %v462_v53 = vrot.slane %v460_v27, 5  ;;  %v216_v20 = vld [vmem:[%s6338_s25 + $0x8c] sm:$0x1] }
  0x63   : > { %v2783_v56 = vsel %vm6585_vm8, %v5177_v31, %v2782_v29  ;;  %v467_v60 = vrot.slane %v465_v40, 4  ;;  %v468_v9 = vshll.u32 %v6611_v15, 16  ;;  %v474_v36 = vshll.u32 %v6618_v21, 16  ;;  %v6645_v29 = vld [vmem:[%s6338_s25 + $0x88] sm:$0xf] }
  0x64   : > { %v457_v57 = vor.u32 %v456_v33, %v452_v24  ;;  %v5194_v58 = vcombine.low %v2783_v56, %v2786_v25  ;;  %5611 = vmatprep.mubr.msk.bf16.mxu1 %vm658_vm4, %v4909_v48  ;;  %v453_v34 = vsel %vm6364_vm5, %v448_v50, %v452_v24  ;;  %v478_v1 = vshrl.u32 %v6618_v21, 16  ;;  %v5163_v5 = vld [vmem:[%s6338_s25 + $0x30] sm:$0xe] }
  0x65   : > { %v484_v62 = vshll.u32 %v215_v23, 16  ;;  %v470_v0 = vrot.slane %v468_v9, 5  ;;  %v5178_v2 = vrot.slane %v5162_v38, 9  ;;  %v2789_v6 = vrot.slane %v6413_v52, 5  ;;  %v6664_v40 = vld [vmem:[%s6338_s25 + $0x90] sm:$0xf] }
  0x66   : > { %v458_v63 = vrot.slane %v457_v57, 4  ;;  %v476_v11 = vrot.slane %v474_v36, 5  ;;  %v480_v12 = vrot.slane %v478_v1, 4  ;;  %v2792_v14 = vrot.slane %v6419_v59, 5  ;;  %v6674_v1 = vld [vmem:[%s6338_s25 + $0x94] sm:$0xf] }
  0x67   : > { %v486_v13 = vrot.slane %v484_v62, 5  ;;  %5766 = vmatmul.mubr.msk.bf16.vlgmr.msra.gmra.mrb[0].mxu0 %vm658_vm4, %v5194_v58  ;;  %v471_v17 = vor.u32 %v470_v0, %v467_v60  ;;  %v2790_v22 = vsel %vm6585_vm8, %v5178_v2, %v2789_v6  ;;  %v2791_v23 = vrot.slane %v2789_v6, 4  ;;  %v217_v62 = vld [vmem:[%s6338_s25 + $0x98] sm:$0x1] }
  0x68   : > { %v463_v3 = vsel %vm6364_vm5, %v458_v63, %v462_v53  ;;  %5798 = vmatpush3.bf16.msra.mxu0 %v6370_v42  ;;  %v481_v52 = vor.u32 %v480_v12, %v476_v11  ;;  %v489_v27 = vshrl.u32 %v6637_v61, 16  ;;  %v492_v59 = vshll.u32 %v6637_v61, 16 }
  0x69   : > { %v4910_v24 = vcombine.low %v453_v34, %v463_v3  ;;  %v472_v31 = vrot.slane %v471_v17, 4  ;;  %v2793_v32 = vsel %vm6585_vm8, %v2791_v23, %v2792_v14  ;;  %v498_v33 = vshll.u32 %v6645_v29, 16  ;;  %v6683_v3 = vld [vmem:[%s6338_s25 + $0x9c] sm:$0xf] }
  0x6a   : > { %v502_v25 = vshrl.u32 %v6645_v29, 16  ;;  %v482_v42 = vrot.slane %v481_v52, 4  ;;  %v5195_v38 = vcombine.low %v2790_v22, %v2793_v32  ;;  %v491_v48 = vrot.slane %v489_v27, 4  ;;  %v6694_v27 = vld [vmem:[%s6338_s25 + $0xa0] sm:$0xf] }
  0x6b   : > { %5612 = vmatmul.mubr.msk.bf16.gmra.mrb[16].mxu1 %vm658_vm4, %v4910_v24  ;;  %v494_v50 = vrot.slane %v492_v59, 5  ;;  %v477_v53 = vsel %vm6364_vm5, %v472_v31, %v476_v11  ;;  %v500_v56 = vrot.slane %v498_v33, 5  ;;  %v508_v58 = vshll.u32 %v216_v20, 16  ;;  %v5164_v11 = vld [vmem:[%s6338_s25 + $0x3c] sm:$0xe] }
  0x6c   : > { %v504_v57 = vrot.slane %v502_v25, 4  ;;  %v487_v60 = vsel %vm6364_vm5, %v482_v42, %v486_v13  ;;  %5769 = vmatprep.mubr.msk.bf16.mxu0 %vm658_vm4, %v5195_v38  ;;  %v5179_v34 = vrot.slane %v5163_v5, 9  ;;  %v2796_v36 = vrot.slane %v6439_v39, 5 }
  0x6d   : > { %v495_v9 = vor.u32 %v494_v50, %v491_v48  ;;  %v4911_v63 = vcombine.low %v477_v53, %v487_v60  ;;  %v510_v2 = vrot.slane %v508_v58, 5  ;;  %v2799_v6 = vrot.slane %v6446_v47, 5  ;;  %v218_v50 = vld [vmem:[%s6338_s25 + $0xa4] sm:$0x1]  ;;  %v5165_v53 = vld [vmem:[%s6338_s25 + $0x48] sm:$0xe] }
  0x6e   : > { %v505_v0 = vor.u32 %v504_v57, %v500_v56  ;;  %v2797_v13 = vsel %vm6585_vm8, %v5179_v34, %v2796_v36  ;;  %v2798_v14 = vrot.slane %v2796_v36, 4  ;;  %v513_v20 = vshrl.u32 %v6664_v40, 16 }
  0x6f   : > { %v496_v12 = vrot.slane %v495_v9, 4  ;;  %5615 = vmatprep.mubr.msk.bf16.mxu1 %vm658_vm4, %v4911_v63  ;;  %v516_v17 = vshll.u32 %v6664_v40, 16  ;;  %v522_v22 = vshll.u32 %v6674_v1, 16  ;;  %v526_v47 = vshrl.u32 %v6674_v1, 16 }
  0x70   : > { %v506_v39 = vrot.slane %v505_v0, 4  ;;  %v2800_v5 = vsel %vm6585_vm8, %v2798_v14, %v2799_v6  ;;  %v515_v24 = vrot.slane %v513_v20, 4  ;;  %v532_v52 = vshll.u32 %v217_v62, 16 }
  0x71   : > { %v501_v23 = vsel %vm6364_vm5, %v496_v12, %v500_v56  ;;  %v5196_v31 = vcombine.low %v2797_v13, %v2800_v5  ;;  %v518_v32 = vrot.slane %v516_v17, 5  ;;  %v524_v33 = vrot.slane %v522_v22, 5  ;;  %v6715_v17 = vld [vmem:[%s6338_s25 + $0xa8] sm:$0xf] }
  0x72   : > { %v511_v59 = vsel %vm6364_vm5, %v506_v39, %v510_v2  ;;  %v528_v42 = vrot.slane %v526_v47, 4  ;;  %v534_v38 = vrot.slane %v532_v52, 5  ;;  %v5180_v48 = vrot.slane %v5164_v11, 9 }
  0x73   : > { %v4912_v25 = vcombine.low %v501_v23, %v511_v59  ;;  %5770 = vmatmul.mubr.msk.bf16.gmra.mrb[4].mxu0 %vm658_vm4, %v5196_v31  ;;  %v519_v56 = vor.u32 %v518_v32, %v515_v24  ;;  %v2803_v57 = vrot.slane %v6463_v30, 5  ;;  %v2806_v58 = vrot.slane %v6468_v43, 5  ;;  %v6720_v24 = vld [vmem:[%s6338_s25 + $0xac] sm:$0xf] }
  0x74   : > { %v537_v60 = vshrl.u32 %v6683_v3, 16  ;;  %v529_v9 = vor.u32 %v528_v42, %v524_v33  ;;  %v540_v34 = vshll.u32 %v6683_v3, 16  ;;  %v546_v36 = vshll.u32 %v6694_v27, 16 }
  0x75   : > { %5616 = vmatmul.mubr.msk.bf16.gmra.mrb[20].mxu1 %vm658_vm4, %v4912_v25  ;;  %v550_v62 = vshrl.u32 %v6694_v27, 16  ;;  %v520_v63 = vrot.slane %v519_v56, 4  ;;  %v2804_v0 = vsel %vm6585_vm8, %v5180_v48, %v2803_v57  ;;  %v2805_v30 = vrot.slane %v2803_v57, 4  ;;  %v5166_v25 = vld [vmem:[%s6338_s25 + $0x54] sm:$0xe] }
  0x76   : > { %v539_v2 = vrot.slane %v537_v60, 4  ;;  %v530_v43 = vrot.slane %v529_v9, 4  ;;  %v542_v6 = vrot.slane %v540_v34, 5  ;;  %v548_v11 = vrot.slane %v546_v36, 5  ;;  %v6735_v57 = vld [vmem:[%s6338_s25 + $0xb4] sm:$0xf] }
  0x77   : > { %v552_v12 = vrot.slane %v550_v62, 4  ;;  %v525_v13 = vsel %vm6364_vm5, %v520_v63, %v524_v33  ;;  %v2807_v14 = vsel %vm6585_vm8, %v2805_v30, %v2806_v58  ;;  %v556_v20 = vshll.u32 %v218_v50, 16  ;;  %v219_v33 = vld [vmem:[%s6338_s25 + $0xb0] sm:$0x1]  ;;  %v6744_v30 = vld [vmem:[%s6338_s25 + $0xb8] sm:$0xf] }
  0x78   : > { %v5181_v39 = vrot.slane %v5165_v53, 9  ;;  %v535_v22 = vsel %vm6364_vm5, %v530_v43, %v534_v38  ;;  %v5197_v47 = vcombine.low %v2804_v0, %v2807_v14  ;;  %v543_v23 = vor.u32 %v542_v6, %v539_v2 }
  0x79   : > { %v553_v5 = vor.u32 %v552_v12, %v548_v11  ;;  %v4913_v52 = vcombine.low %v525_v13, %v535_v22  ;;  %v558_v59 = vrot.slane %v556_v20, 5  ;;  %v2810_v31 = vrot.slane %v6486_v19, 5  ;;  %v6750_v20 = vld [vmem:[%s6338_s25 + $0xbc] sm:$0x1] }
  0x7a   : > { %v2813_v32 = vrot.slane %v6494_v35, 5  ;;  %5773 = vmatprep.mubr.msk.bf16.mxu0 %vm658_vm4, %v5197_v47  ;;  %v544_v42 = vrot.slane %v543_v23, 4  ;;  %v561_v38 = vshrl.u32 %v6715_v17, 16  ;;  %v564_v50 = vshll.u32 %v6715_v17, 16 }
  0x7b   : > { %v554_v48 = vrot.slane %v553_v5, 4  ;;  %5619 = vmatprep.mubr.msk.bf16.mxu1 %vm658_vm4, %v4913_v52  ;;  %v2811_v53 = vsel %vm6585_vm8, %v5181_v39, %v2810_v31  ;;  %v2812_v56 = vrot.slane %v2810_v31, 4  ;;  %v570_v19 = vshll.u32 %v6720_v24, 16  ;;  %v5167_v52 = vld [vmem:[%s6338_s25 + $0x60] sm:$0xe] }
  0x7c   : > { %v574_v35 = vshrl.u32 %v6720_v24, 16  ;;  %v549_v58 = vsel %vm6364_vm5, %v544_v42, %v548_v11  ;;  %v563_v9 = vrot.slane %v561_v38, 4  ;;  %v566_v34 = vrot.slane %v564_v50, 5 }
  0x7d   : > { %v559_v60 = vsel %vm6364_vm5, %v554_v48, %v558_v59  ;;  %v2814_v62 = vsel %vm6585_vm8, %v2812_v56, %v2813_v32  ;;  %v572_v63 = vrot.slane %v570_v19, 5  ;;  %v580_v6 = vshll.u32 %v219_v33, 16  ;;  %v5168_v48 = vld [vmem:[%s6338_s25 + $0x6c] sm:$0xe]  ;;  %v5104_v19 = vld [vmem:[%s6338_s25 + $0x70] sm:$0xf] }
  0x7e   : > { %v4914_v36 = vcombine.low %v549_v58, %v559_v60  ;;  %v576_v0 = vrot.slane %v574_v35, 4  ;;  %v5198_v2 = vcombine.low %v2811_v53, %v2814_v62  ;;  %v567_v43 = vor.u32 %v566_v34, %v563_v9  ;;  %v5105_v35 = vld [vmem:[%s6338_s25 + $0x74] sm:$0x1] }
  0x7f   : > { %v5182_v12 = vrot.slane %v5166_v25, 9  ;;  %v2817_v13 = vrot.slane %v6517_v8, 5  ;;  %v2820_v14 = vrot.slane %v6523_v28, 5  ;;  %v585_v39 = vshrl.u32 %v6735_v57, 16 }
  0x80   : > { %5620 = vmatmul.mubr.msk.bf16.gmra.mrb[24].mxu1 %vm658_vm4, %v4914_v36  ;;  %v577_v11 = vor.u32 %v576_v0, %v572_v63  ;;  %5774 = vmatmul.mubr.msk.bf16.gmra.mrb[8].mxu0 %vm658_vm4, %v5198_v2  ;;  %v568_v22 = vrot.slane %v567_v43, 4  ;;  %v582_v47 = vrot.slane %v580_v6, 5  ;;  %v588_v23 = vshll.u32 %v6735_v57, 16 }
  0x81   : > { %v594_v5 = vshll.u32 %v6744_v30, 16  ;;  %v2818_v8 = vsel %vm6585_vm8, %v5182_v12, %v2817_v13  ;;  %v2819_v28 = vrot.slane %v2817_v13, 4  ;;  %v587_v31 = vrot.slane %v585_v39, 4  ;;  %v5169_v13 = vld [vmem:[%s6338_s25 + $0x78] sm:$0xe] }
  0x82   : > { %v578_v59 = vrot.slane %v577_v11, 4  ;;  %v573_v32 = vsel %vm6364_vm5, %v568_v22, %v572_v63  ;;  %v590_v33 = vrot.slane %v588_v23, 5  ;;  %v598_v42 = vshrl.u32 %v6744_v30, 16  ;;  %v6215_v23 = vld [vmem:[%s6338_s25] sm:$0xf] }
  0x83   : > { %v596_v25 = vrot.slane %v594_v5, 5  ;;  %v2821_v50 = vsel %vm6585_vm8, %v2819_v28, %v2820_v14  ;;  %v604_v53 = vshll.u32 %v6750_v20, 16  ;;  %v5183_v56 = vrot.slane %v5167_v52, 9  ;;  %v6785_v5 = vld [vmem:[%s6338_s25 + $0x4] sm:$0xf] }
  0x84   : > { %v583_v38 = vsel %vm6364_vm5, %v578_v59, %v582_v47  ;;  %v5199_v60 = vcombine.low %v2818_v8, %v2821_v50  ;;  %v591_v9 = vor.u32 %v590_v33, %v587_v31  ;;  %v600_v34 = vrot.slane %v598_v42, 4  ;;  %v6789_v59 = vld [vmem:[%s6338_s25 + $0x7c] sm:$0xf]  ;;  %v6792_v8 = vld [vmem:[%s6338_s25 + $0x80] sm:$0x1] }
  0x85   : > { %v4915_v58 = vcombine.low %v573_v32, %v583_v38  ;;  %v606_v36 = vrot.slane %v604_v53, 5  ;;  %v2824_v62 = vrot.slane %v6547_v16, 5  ;;  %v2827_v63 = vrot.slane %v6554_v26, 5  ;;  %v5170_v28 = vld [vmem:[%s6338_s25 + $0x84] sm:$0xe] }
  0x86   : > { %v5184_v0 = vrot.slane %v5168_v48, 9  ;;  %5777 = vmatprep.mubr.msk.bf16.mxu0 %vm658_vm4, %v5199_v60  ;;  %v592_v2 = vrot.slane %v591_v9, 4  ;;  %v601_v43 = vor.u32 %v600_v34, %v596_v25  ;;  %v2831_v6 = vrot.slane %v5104_v19, 5  ;;  %v5110_v42 = vld [vmem:[%s6338_s25 + $0x88] sm:$0xf] }
  0x87   : > { %5623 = vmatprep.mubr.msk.bf16.mxu1 %vm658_vm4, %v4915_v58  ;;  %v2834_v12 = vrot.slane %v5105_v35, 5  ;;  %v2825_v11 = vsel %vm6585_vm8, %v5183_v56, %v2824_v62  ;;  %v2826_v16 = vrot.slane %v2824_v62, 4  ;;  %v4933_v52 = vcombine.low %v6215_v23, %v6785_v5  ;;  %v5111_v48 = vld [vmem:[%s6338_s25 + $0x8c] sm:$0x1]  ;;  %v5113_v53 = vld [vmem:[%s6338_s25 + $0x94] sm:$0xf] }
  0x88   : > { %v597_v26 = vsel %vm6364_vm5, %v592_v2, %v596_v25  ;;  %v602_v14 = vrot.slane %v601_v43, 4  ;;  %v2832_v39 = vsel %vm6585_vm8, %v5184_v0, %v2831_v6  ;;  %v2833_v22 = vrot.slane %v2831_v6, 4  ;;  %v5114_v9 = vld [vmem:[%s6338_s25 + $0x98] sm:$0x1]  ;;  %v5171_v34 = vld [vmem:[%s6338_s25 + $0x90] sm:$0xe] }
  0x89   : > { %v2828_v47 = vsel %vm6585_vm8, %v2826_v16, %v2827_v63  ;;  %v5185_v25 = vrot.slane %v5169_v13, 9  ;;  %v2838_v56 = vrot.slane %v6789_v59, 5  ;;  %v2841_v19 = vrot.slane %v6792_v8, 5  ;;  %v5116_v0 = vld [vmem:[%s6338_s25 + $0xa0] sm:$0xf] }
  0x8a   : > { %v607_v31 = vsel %vm6364_vm5, %v602_v14, %v606_v36  ;;  %v5200_v32 = vcombine.low %v2825_v11, %v2828_v47  ;;  %v2835_v33 = vsel %vm6585_vm8, %v2833_v22, %v2834_v12  ;;  %v5186_v35 = vrot.slane %v5170_v28, 9  ;;  %v5117_v6 = vld [vmem:[%s6338_s25 + $0xa4] sm:$0x1]  ;;  %v5172_v12 = vld [vmem:[%s6338_s25 + $0x9c] sm:$0xe] }
  0x8b   : > { %v4916_v38 = vcombine.low %v597_v26, %v607_v31  ;;  %v5201_v50 = vcombine.low %v2832_v39, %v2835_v33  ;;  %v2845_v58 = vrot.slane %v5110_v42, 5  ;;  %v2848_v60 = vrot.slane %v5111_v48, 5  ;;  %v6217_v11 = vld [vmem:[%s6338_s25 + $0xc] sm:$0xf]  ;;  %v6819_v16 = vld [vmem:[%s6338_s25 + $0x10] sm:$0xf] }
  0x8c   : > { %5778 = vmatmul.mubr.msk.bf16.gmra.mrb[12].mxu0 %vm658_vm4, %v5200_v32  ;;  %v2839_v36 = vsel %vm6585_vm8, %v5185_v25, %v2838_v56  ;;  %v2840_v62 = vrot.slane %v2838_v56, 4  ;;  %v2852_v63 = vrot.slane %v5113_v53, 5  ;;  %v4934_v13 = vcombine.low %v6217_v11, %v6819_v16  ;;  %v6219_v28 = vld [vmem:[%s6338_s25 + $0x18] sm:$0xf]  ;;  %v6828_v31 = vld [vmem:[%s6338_s25 + $0x1c] sm:$0xf] }
  0x8d   : > { %5624 = vmatmul.mubr.msk.bf16.gmra.mrb[28].mxu1 %vm658_vm4, %v4916_v38  ;;  %5781 = vmatprep.mubr.msk.bf16.mxu0 %vm658_vm4, %v5201_v50  ;;  %v2846_v2 = vsel %vm6585_vm8, %v5186_v35, %v2845_v58  ;;  %v2847_v43 = vrot.slane %v2845_v58, 4  ;;  %v5187_v14 = vrot.slane %v5171_v34, 9  ;;  %v2855_v39 = vrot.slane %v5114_v9, 5  ;;  %v5119_v48 = vld [vmem:[%s6338_s25 + $0xac] sm:$0xf] }
  0x8e   : > { %5629 = vmatprep.mubr.msk.bf16.mxu1 %vm658_vm4, %v4933_v52  ;;  %v2842_v26 = vsel %vm6585_vm8, %v2840_v62, %v2841_v19  ;;  %v2854_v23 = vrot.slane %v2852_v63, 4  ;;  %v2859_v52 = vrot.slane %v5116_v0, 5  ;;  %v4935_v32 = vcombine.low %v6219_v28, %v6828_v31  ;;  %v5122_v50 = vld [vmem:[%s6338_s25 + $0xb8] sm:$0xf]  ;;  %v5120_v53 = vld [vmem:[%s6338_s25 + $0xb0] sm:$0x1] }
  0x8f   : > { %v5202_v22 = vcombine.low %v2839_v36, %v2842_v26  ;;  %v2849_v47 = vsel %vm6585_vm8, %v2847_v43, %v2848_v60  ;;  %v5188_v25 = vrot.slane %v5172_v12, 9  ;;  %v2862_v42 = vrot.slane %v5117_v6, 5  ;;  %v5173_v56 = vld [vmem:[%s6338_s25 + $0xa8] sm:$0xe]  ;;  %v5338_v60 = vld [vmem:[%s8118_s1 + $0xe] sm:$0x3] }
  0x90   : > { %v5203_v33 = vcombine.low %v2846_v2, %v2849_v47  ;;  %v2861_v38 = vrot.slane %v2859_v52, 4  ;;  %v2853_v19 = vsel %vm6585_vm8, %v5187_v14, %v2852_v63  ;;  %v2856_v35 = vsel %vm6585_vm8, %v2854_v23, %v2855_v39  ;;  %v5174_v36 = vld [vmem:[%s6338_s25 + $0xb4] sm:$0xe]  ;;  %v5123_v63 = vld [vmem:[%s6338_s25 + $0xbc] sm:$0x1] }
  0x91   : > { %v2866_v58 = vrot.slane %v5119_v48, 5  ;;  %v2860_v9 = vsel %vm6585_vm8, %v5188_v25, %v2859_v52  ;;  %v2873_v62 = vrot.slane %v5122_v50, 5  ;;  %v6221_v0 = vld [vmem:[%s6338_s25 + $0x24] sm:$0xf]  ;;  %v6855_v2 = vld [vmem:[%s6338_s25 + $0x28] sm:$0xf]  ;;  %v5204_v6 = vcombine.low %v2853_v19, %v2856_v35 }
  0x92   : > { %v2863_v34 = vsel %vm6585_vm8, %v2861_v38, %v2862_v42  ;;  %v4936_v43 = vcombine.low %v6221_v0, %v6855_v2  ;;  %v5125_v12 = vld [vmem:[%s6338_s25 + $0xc4] sm:$0xf]  ;;  %v6860_v11 = vand.u32 %v5338_v60, %v6312_v4  ;;  %v2869_v14 = vrot.slane %v5120_v53, 5  ;;  %v6223_v47 = vld [vmem:[%s6338_s25 + $0x30] sm:$0xf] }
  0x93   : > { %v2868_v26 = vrot.slane %v2866_v58, 4  ;;  %v5190_v39 = vrot.slane %v5174_v36, 9  ;;  %v6867_v23 = vld [vmem:[%s6338_s25 + $0x34] sm:$0xf]  ;;  %v2875_v28 = vrot.slane %v2873_v62, 4  ;;  %v2880_v48 = vrot.slane %v5125_v12, 5 }
  0x94   : > { %5782 = vmatmul.mubr.msk.bf16.gmra.mrb[16].mxu0 %vm658_vm4, %v5202_v22  ;;  %v5046_v22 = vld [vmem:[%s8118_s1 + $0x6] sm:$0x3]  ;;  %v4937_v52 = vcombine.low %v6223_v47, %v6867_v23  ;;  %5831 = vmatprep.subr.bf16.mxu0 %v6860_v11  ;;  %v5126_v53 = vld [vmem:[%s6338_s25 + $0xc8] sm:$0x1]  ;;  %v6225_v19 = vld [vmem:[%s6338_s25 + $0x3c] sm:$0xf] }
  0x95   : > { %5630 = vmatmul.mubr.msk.bf16.vlgmr.msra.gmra.mrb[0].mxu1 %vm658_vm4, %v4934_v13  ;;  %5785 = vmatprep.mubr.msk.bf16.mxu0 %vm658_vm4, %v5203_v33  ;;  %v5205_v13 = vcombine.low %v2860_v9, %v2863_v34  ;;  %v6873_v33 = vand.u32 %v5046_v22, %v6312_v4  ;;  %v2870_v42 = vsel %vm6585_vm8, %v2868_v26, %v2869_v14  ;;  %v6891_v35 = vld [vmem:[%s6338_s25 + $0x40] sm:$0xf]  ;;  %v2882_v36 = vrot.slane %v2880_v48, 4  ;;  %v6176_v12 = vld [vmem:[%s6338_s25 + $0x18] sm:$0xff]   ;;  %v6227_v47 = vld [vmem:[%s6338_s25 + $0x8] sm:$0x1] }
  0x96   : > { %5662 = vmatpush3.bf16.msra.mxu1 %v6373_v46  ;;  %5633 = vmatprep.mubr.msk.bf16.mxu1 %vm658_vm4, %v4935_v32  ;;  %v5189_v46 = vrot.slane %v5173_v56, 9  ;;  %v2876_v32 = vrot.slane %v5123_v63, 5  ;;  %v2874_v38 = vsel %vm6585_vm8, %v5190_v39, %v2873_v62  ;;  %v5175_v56 = vld [vmem:[%s6338_s25 + $0xc0] sm:$0xe]  ;;  %v2883_v63 = vrot.slane %v5126_v53, 5 }
  0x97   : > { %5695 = vmatprep.subr.bf16.mxu1 %v6873_v33  ;;  %v5191_v34 = vrot.slane %v5175_v56, 9  ;;  %v4939_v62 = vcombine.low %v6498_v41, %v6501_v49  ;;  %v2261_v41 = vshrl.u32 %v6789_v59, 16  ;;  %v4941_v26 = vcombine.low %v6558_v44, %v6564_v54  ;;  %v1167_v22 = vld [vmem:[%s6338_s25] sm:$0xe]  ;;  %v6228_v44 = vld [vmem:[%s6338_s25 + $0x14] sm:$0x1] }
  0x98   : > { %v2867_v25 = vsel %vm6585_vm8, %v5189_v46, %v2866_v58  ;;  %v2877_v50 = vsel %vm6585_vm8, %v2875_v28, %v2876_v32  ;;  %v4938_v58 = vcombine.low %v6225_v19, %v6891_v35  ;;  %v4940_v46 = vcombine.low %v6527_v10, %v6533_v51  ;;  %v1169_v51 = vld [vmem:[%s6338_s25 + $0x18] sm:$0xe]  ;;  %v1171_v53 = vld [vmem:[%s6338_s25 + $0x30] sm:$0xe] }
  0x99   : > { %v5206_v60 = vcombine.low %v2867_v25, %v2870_v42  ;;  %v5207_v9 = vcombine.low %v2874_v38, %v2877_v50  ;;  %v2881_v0 = vsel %vm6585_vm8, %v5191_v34, %v2880_v48  ;;  %v2263_v39 = vrot.slane %v2261_v41, 4  ;;  %v1170_v25 = vld [vmem:[%s6338_s25 + $0x24] sm:$0xe]  ;;  %v6180_v56 = vld [vmem:[%s6338_s25 + $0x30] sm:$0xff]  }
  0x9a   : > { %v1220_v10 = vrot.slane %v6785_v5, 5  ;;  %v1230_v54 = vrot.slane %v6228_v44, 5  ;;  %v4965_v28 = vrot.slane %v1167_v22, 9  ;;  %v1234_v32 = vrot.slane %v6828_v31, 5  ;;  %v6178_v38 = vld [vmem:[%s6338_s25 + $0x24] sm:$0xff]  }
  0x9b   : > { %v4942_v48 = vcombine.low %v6579_v18, %v6592_v55  ;;  %v1241_v50 = vrot.slane %v6855_v2, 5  ;;  %v4944_v31 = vcombine.low %v6637_v61, %v6645_v29  ;;  %v5403_v18 = vld [vmem:[%s8118_s1 + $0x10] sm:$0x3]  ;;  %v4967_v2 = vrot.slane %v1169_v51, 9  ;;  %v6232_v22 = vld [vmem:[%s6338_s25 + $0x4c] sm:$0xf] }
  0x9c   : > { %5786 = vmatmul.mubr.msk.bf16.gmra.mrb[20].mxu0 %vm658_vm4, %v5204_v6  ;;  %v2257_v6 = vshll.u32 %v6789_v59, 16  ;;  %v1168_v59 = vld [vmem:[%s6338_s25 + $0xc] sm:$0xe]  ;;  %v1222_v55 = vrot.slane %v1220_v10, 4  ;;  %v4968_v34 = vrot.slane %v1170_v25, 9  ;;  %v6182_v25 = vld [vmem:[%s6338_s25 + $0x3c] sm:$0xff]  }
  0x9d   : > { %5634 = vmatmul.mubr.msk.bf16.gmra.mrb[4].mxu1 %vm658_vm4, %v4936_v43  ;;  %5789 = vmatprep.mubr.msk.bf16.mxu0 %vm658_vm4, %v5205_v13  ;;  %v2884_v43 = vsel %vm6585_vm8, %v2882_v36, %v2883_v63  ;;  %v1227_v13 = vrot.slane %v6819_v16, 5  ;;  %v2267_v16 = vshll.u32 %v6792_v8, 16  ;;  %v4966_v5 = vrot.slane %v1168_v59, 9  ;;  %v1172_v63 = vld [vmem:[%s6338_s25 + $0x3c] sm:$0xe] }
  0x9e   : > { %5637 = vmatprep.mubr.msk.bf16.mxu1 %vm658_vm4, %v4937_v52  ;;  %v5208_v49 = vcombine.low %v2881_v0, %v2884_v43  ;;  %v6912_v14 = vrot.slane %v2257_v6, 5  ;;  %v1223_v52 = vrot.slane %v6227_v47, 5  ;;  %v4943_v8 = vcombine.low %v6611_v15, %v6618_v21  ;;  %v6230_v6 = vld [vmem:[%s6338_s25 + $0x2c] sm:$0x1]  ;;  %v6238_v61 = vld [vmem:[%s6338_s25 + $0x68] sm:$0x1] }
  0x9f   : > { %v1229_v19 = vrot.slane %v1227_v13, 4  ;;  %v4945_v15 = vcombine.low %v6664_v40, %v6674_v1  ;;  %v6947_v21 = vsel %vm6585_vm8, %v4965_v28, %v1220_v10  ;;  %v1236_v36 = vrot.slane %v1234_v32, 4 }
  0xa0   : > { %8142 = vst [vmem:[#allocation3_spill] sm:$0xff] %v6912_v14  ;;  %v2264_v42 = vor.u32 %v2263_v39, %v6912_v14  ;;  %v6953_v0 = vsel %vm6585_vm8, %v4966_v5, %v1227_v13  ;;  %v1243_v43 = vrot.slane %v1241_v50, 4  ;;  %v1244_v41 = vrot.slane %v6230_v6, 5  ;;  %v6234_v5 = vld [vmem:[%s6338_s25 + $0x50] sm:$0x1] }
  0xa1   : > { %v1255_v39 = vrot.slane %v6891_v35, 5  ;;  %v1262_v59 = vrot.slane %v6232_v22, 5  ;;  %v6963_v47 = vrot.slane %v2267_v16, 5  ;;  %v6973_v13 = vsel %vm6585_vm8, %v1229_v19, %v1230_v54  ;;  %v6233_v16 = vld [vmem:[%s6338_s25 + $0x44] sm:$0x1] }
  0xa2   : > { %v6977_v35 = vsel %vm6585_vm8, %v4967_v2, %v1234_v32  ;;  %v6979_v10 = vrot.slane %v2264_v42, 4  ;;  %v6997_v44 = vsel %vm6585_vm8, %v1243_v43, %v1244_v41  ;;  %v4970_v54 = vrot.slane %v1172_v63, 9 }
  0xa3   : > { %8143 = vst [vmem:[#allocation4_spill] sm:$0xff] %v6963_v47  ;;  %v1258_v28 = vrot.slane %v6233_v16, 5  ;;  %v1279_v29 = vrot.slane %v6238_v61, 5  ;;  %v6188_v61 = vld [vmem:[%s6338_s25 + $0x60] sm:$0xff]  }
  0xa4   : > { %5790 = vmatmul.mubr.msk.bf16.gmra.mrb[24].mxu0 %vm658_vm4, %v5206_v60  ;;  %v6229_v60 = vld [vmem:[%s6338_s25 + $0x20] sm:$0x1]  ;;  %8144 = vst [vmem:[#allocation5_spill] sm:$0xff] %v6979_v10  ;;  %v7031_v6 = vsel %vm6585_vm8, %v4970_v54, %v1255_v39  ;;  %v5293_v54 = vld [vmem:[%s6338_s25 + $0x24] sm:$0xf] }
  0xa5   : > { %5638 = vmatmul.mubr.msk.bf16.gmra.mrb[8].mxu1 %vm658_vm4, %v4938_v58  ;;  %5793 = vmatprep.mubr.msk.bf16.mxu0 %vm658_vm4, %v5207_v9  ;;  %v1248_v58 = vrot.slane %v6867_v23, 5  ;;  %v1237_v9 = vrot.slane %v6229_v60, 5  ;;  %v4969_v23 = vrot.slane %v1171_v53, 9  ;;  %v6184_v53 = vld [vmem:[%s6338_s25 + $0x48] sm:$0xff]   ;;  %v3614_v40 = vshll.u32 %v5293_v54, 16 }
  0xa6   : > { %5641 = vmatprep.mubr.msk.bf16.mxu1 %vm658_vm4, %v4939_v62  ;;  %v1173_v62 = vld [vmem:[%s6338_s25 + $0x48] sm:$0xe]  ;;  %v1178_v10 = vld [vmem:[%s6338_s25 + $0x84] sm:$0xe] }
  0xa7   : > { %v6993_v51 = vsel %vm6585_vm8, %v4969_v23, %v1248_v58  ;;  %v4971_v32 = vrot.slane %v1173_v62, 9  ;;  %v6236_v23 = vld [vmem:[%s6338_s25 + $0x64] sm:$0xf]  ;;  %v6239_v62 = vld [vmem:[%s6338_s25 + $0x70] sm:$0xf] }
  0xa8   : > { %v1276_v63 = vrot.slane %v6236_v23, 5 }
  0xa9   : > { %v7035_v41 = vsel %vm6585_vm8, %v4971_v32, %v1262_v59 }
  0xac   : > { %5794 = vmatmul.mubr.msk.bf16.gmra.mrb[28].mxu0 %vm658_vm4, %v5208_v49  ;;  %v6957_v49 = vand.u32 %v5403_v18, %v6312_v4  ;;  %v6969_v4 = vsel %vm6585_vm8, %v1222_v55, %v1223_v52  ;;  %v6989_v52 = vsel %vm6585_vm8, %v4968_v34, %v1241_v50  ;;  %v1265_v50 = vrot.slane %v6234_v5, 5  ;;  %v5290_v55 = vld [vmem:[%s6338_s25 + $0x18] sm:$0xf]  ;;  %v1174_v34 = vld [vmem:[%s6338_s25 + $0x54] sm:$0xe] }
  0xad   : > { %5642 = vmatmul.mubr.msk.bf16.gmra.mrb[12].mxu1 %vm658_vm4, %v4940_v46  ;;  %5799 = vmatprep.mubr.msk.bf16.mxu0 %vm658_vm4, %v6176_v12  ;;  %v1250_v46 = vrot.slane %v1248_v58, 4  ;;  %v6231_v12 = vld [vmem:[%s6338_s25 + $0x38] sm:$0x1]  ;;  %v3590_v22 = vshll.u32 %v5290_v55, 16  ;;  %v5292_v5 = vld [vmem:[%s6338_s25 + $0x20] sm:$0x1] }
  0xae   : > { %5645 = vmatprep.mubr.msk.bf16.mxu1 %vm658_vm4, %v4941_v26  ;;  %v1251_v26 = vrot.slane %v6231_v12, 5  ;;  %v6235_v58 = vld [vmem:[%s6338_s25 + $0x58] sm:$0xf] }
  0xaf   : > { %v1269_v18 = vrot.slane %v6235_v58, 5 }
  0xb0   : > { %v7004_v42 = vsel %vm6585_vm8, %v1250_v46, %v1251_v26  ;;  %v5291_v46 = vld [vmem:[%s6338_s25 + $0x1c] sm:$0xf] }
  0xb1   : > { %v1271_v16 = vrot.slane %v1269_v18, 4 }
  0xb4   : > { %5800 = vmatmul.mubr.msk.bf16.vlgmr.msra.gmra.mrb[0].mxu0 %vm658_vm4, %v6178_v38  ;;  %v1264_v38 = vrot.slane %v1262_v59, 4  ;;  %v4972_v59 = vrot.slane %v1174_v34, 9  ;;  %v3611_v34 = vshrl.u32 %v5293_v54, 16  ;;  %v1176_v54 = vld [vmem:[%s6338_s25 + $0x6c] sm:$0xe] }
  0xb5   : > { %5646 = vmatmul.mubr.msk.bf16.gmra.mrb[16].mxu1 %vm658_vm4, %v4942_v48  ;;  %5832 = vmatpush3.bf16.msra.mxu0 %v6860_v11  ;;  %v6985_v11 = vsel %vm6585_vm8, %v1236_v36, %v1237_v9  ;;  %v1257_v48 = vrot.slane %v1255_v39, 4  ;;  %v1175_v36 = vld [vmem:[%s6338_s25 + $0x60] sm:$0xe]  ;;  %v3587_v39 = vshrl.u32 %v5290_v55, 16  ;;  %v5295_v9 = vld [vmem:[%s6338_s25 + $0x2c] sm:$0x1] }
  0xb6   : > { %5649 = vmatprep.mubr.msk.bf16.mxu1 %vm658_vm4, %v4943_v8  ;;  %5803 = vmatprep.mubr.msk.bf16.mxu0 %vm658_vm4, %v6180_v56  ;;  %v4946_v8 = vcombine.low %v6683_v3, %v6694_v27  ;;  %v4947_v56 = vcombine.low %v6715_v17, %v6720_v24  ;;  %v7045_v26 = vsel %vm6585_vm8, %v1264_v38, %v1265_v50  ;;  %v1278_v38 = vrot.slane %v1276_v63, 4 }
  0xb7   : > { %5865 = vmatprep.subr.bf16.mxu0 %v6957_v49  ;;  %v7041_v12 = vsel %vm6585_vm8, %v1257_v48, %v1258_v28  ;;  %v6237_v28 = vld [vmem:[%s6338_s25 + $0x5c] sm:$0x1]  ;;  %v5294_v48 = vld [vmem:[%s6338_s25 + $0x28] sm:$0xf]  ;;  %v3600_v50 = vshrl.u32 %v5291_v46, 16  ;;  %v3589_v1 = vrot.slane %v3587_v39, 4 }
  0xb8   : > { %v1272_v32 = vrot.slane %v6237_v28, 5  ;;  %v3624_v23 = vshrl.u32 %v5294_v48, 16  ;;  %v5296_v28 = vld [vmem:[%s6338_s25 + $0x30] sm:$0xf]  ;;  %v3606_v39 = vshll.u32 %v5292_v5, 16  ;;  %v3613_v60 = vrot.slane %v3611_v34, 4 }
  0xb9   : > { %v3602_v43 = vrot.slane %v3600_v50, 4  ;;  %v3638_v2 = vshll.u32 %v5296_v28, 16  ;;  %v3630_v34 = vshll.u32 %v5295_v9, 16  ;;  %v7119_v9 = vld [vmem:[%s6338_s25 + $0x38] sm:$0x1] }
  0xba   : > { %v7074_v58 = vsel %vm6585_vm8, %v1271_v16, %v1272_v32  ;;  %v3616_v16 = vrot.slane %v3614_v40, 5  ;;  %v3635_v32 = vshrl.u32 %v5296_v28, 16  ;;  %v5299_v40 = vld [vmem:[%s6338_s25 + $0x3c] sm:$0xf]  ;;  %8145 = vst [vmem:[#allocation6_spill] sm:$0xff] %v7119_v9  ;;  %v3654_v14 = vshll.u32 %v7119_v9, 16 }
  0xbb   : > { %v6197_v9 = vld [vmem:[%s6338_s25 + $0xc0] sm:$0xff]  }
  0xbc   : > { %5804 = vmatmul.mubr.msk.bf16.gmra.mrb[4].mxu0 %vm658_vm4, %v6182_v25  ;;  %v4973_v25 = vrot.slane %v1175_v36, 9  ;;  %v3620_v36 = vshll.u32 %v5294_v48, 16  ;;  %v3637_v28 = vrot.slane %v3635_v32, 4  ;;  %v3662_v32 = vshll.u32 %v5299_v40, 16 }
  0xbd   : > { %5650 = vmatmul.mubr.msk.bf16.gmra.mrb[20].mxu1 %vm658_vm4, %v4944_v31  ;;  %5807 = vmatprep.mubr.msk.bf16.mxu0 %vm658_vm4, %v6184_v53  ;;  %v3596_v31 = vshll.u32 %v5291_v46, 16  ;;  %v6186_v53 = vld [vmem:[%s6338_s25 + $0x54] sm:$0xff]   ;;  %v7070_v46 = vsel %vm6585_vm8, %v4972_v59, %v1269_v18  ;;  %v1283_v18 = vrot.slane %v6239_v62, 5  ;;  %v6242_v62 = vld [vmem:[%s6338_s25 + $0x80] sm:$0x1] }
  0xbe   : > { %5653 = vmatprep.mubr.msk.bf16.mxu1 %vm658_vm4, %v4945_v15  ;;  %v3592_v15 = vrot.slane %v3590_v22, 5  ;;  %v7078_v55 = vsel %vm6585_vm8, %v4973_v25, %v1276_v63  ;;  %v7083_v22 = vsel %vm6585_vm8, %v1278_v38, %v1279_v29  ;;  %v5297_v59 = vld [vmem:[%s6338_s25 + $0x34] sm:$0xf]  ;;  %v4974_v25 = vrot.slane %v1176_v54, 9  ;;  %v6190_v54 = vld [vmem:[%s6338_s25 + $0x6c] sm:$0xff]  }
  0xbf   : > { %v7085_v48 = vrot.slane %v3596_v31, 5  ;;  %v7091_v5 = vrot.slane %v3620_v36, 5  ;;  %v3626_v38 = vrot.slane %v3624_v23, 4  ;;  %v3644_v31 = vshll.u32 %v5297_v59, 16  ;;  %v6241_v36 = vld [vmem:[%s6338_s25 + $0x7c] sm:$0xf] }
  0xc0   : > { %v3593_v63 = vor.u32 %v3592_v15, %v3589_v1  ;;  %v3648_v50 = vshrl.u32 %v5297_v59, 16  ;;  %v1285_v27 = vrot.slane %v1283_v18, 4  ;;  %v3617_v1 = vor.u32 %v3616_v16, %v3613_v60  ;;  %v1177_v15 = vld [vmem:[%s6338_s25 + $0x78] sm:$0xe]  ;;  %v7124_v16 = vld [vmem:[%s6338_s25 + $0x40] sm:$0xf] }
  0xc1   : > { %v3603_v3 = vor.u32 %v3602_v43, %v7085_v48  ;;  %v1290_v23 = vrot.slane %v6241_v36, 5  ;;  %v6191_v59 = vld [vmem:[%s6338_s25 + $0x78] sm:$0xff]   ;;  %v7115_v43 = vsel %vm6585_vm8, %v4974_v25, %v1283_v18  ;;  %v7121_v29 = vrot.slane %v3644_v31, 5  ;;  %8146 = vst [vmem:[#allocation7_spill] sm:$0xff] %v7124_v16 }
  0xc2   : > { %v3594_v17 = vrot.slane %v3593_v63, 4  ;;  %v3650_v60 = vrot.slane %v3648_v50, 4  ;;  %v3632_v63 = vrot.slane %v3630_v34, 5  ;;  %v4975_v18 = vrot.slane %v1177_v15, 9 }
  0xc3   : > { %v3604_v36 = vrot.slane %v3603_v3, 4  ;;  %v3618_v25 = vrot.slane %v3617_v1, 4  ;;  %v1293_v19 = vrot.slane %v6242_v62, 5  ;;  %v3668_v3 = vshll.u32 %v7124_v16, 16 }
  0xc4   : > { %5808 = vmatmul.mubr.msk.bf16.gmra.mrb[8].mxu0 %vm658_vm4, %v6186_v53  ;;  %v3651_v62 = vor.u32 %v3650_v60, %v7121_v29  ;;  %v3664_v15 = vrot.slane %v3662_v32, 5  ;;  %v6192_v60 = vld [vmem:[%s6338_s25 + $0x84] sm:$0xff]  }
  0xc5   : > { %5654 = vmatmul.mubr.msk.bf16.gmra.mrb[24].mxu1 %vm658_vm4, %v4946_v8  ;;  %5811 = vmatprep.mubr.msk.bf16.mxu0 %vm658_vm4, %v6188_v61  ;;  %v6240_v8 = vld [vmem:[%s6338_s25 + $0x74] sm:$0x1]  ;;  %v3640_v61 = vrot.slane %v3638_v2, 5  ;;  %v3659_v2 = vshrl.u32 %v5299_v40, 16  ;;  %v3672_v40 = vshrl.u32 %v7124_v16, 16  ;;  %v7172_v32 = vrot.slane %v3668_v3, 5 }
  0xc6   : > { %5657 = vmatprep.mubr.msk.bf16.mxu1 %vm658_vm4, %v4947_v56  ;;  %v1286_v53 = vrot.slane %v6240_v8, 5  ;;  %v3608_v56 = vrot.slane %v3606_v39, 5  ;;  %v3627_v8 = vor.u32 %v3626_v38, %v7091_v5  ;;  %v1292_v38 = vrot.slane %v1290_v23, 4 }
  0xc7   : > { %v3641_v31 = vor.u32 %v3640_v61, %v3637_v28  ;;  %v3661_v1 = vrot.slane %v3659_v2, 4  ;;  %v8148_v28 = vcombine.low %v6947_v21, %v6969_v4  ;;  %v3623_v21 = vsel %vm6364_vm5, %v3618_v25, %v7091_v5  ;;  %v6193_v5 = vld [vmem:[%s6338_s25 + $0x90] sm:$0xff]   ;;  %v6244_v25 = vld [vmem:[%s6338_s25 + $0x8c] sm:$0x1] }
  0xc8   : > { %v7128_v39 = vsel %vm6585_vm8, %v1285_v27, %v1286_v53  ;;  %v3628_v50 = vrot.slane %v3627_v8, 4  ;;  %v8147_v27 = vcombine.low %v6735_v57, %v6744_v30  ;;  %v6243_v53 = vld [vmem:[%s6338_s25 + $0x88] sm:$0xf]  ;;  %v3599_v57 = vsel %vm6364_vm5, %v3594_v17, %v7085_v48 }
  0xc9   : > { %v1297_v34 = vrot.slane %v6243_v53, 5  ;;  %v3609_v61 = vsel %vm6364_vm5, %v3604_v36, %v3608_v56  ;;  %v7163_v4 = vsel %vm6585_vm8, %v1292_v38, %v1293_v19  ;;  %v3642_v48 = vrot.slane %v3641_v31, 4  ;;  %v7166_v56 = vld [vmem:[%s6338_s25 + $0x44] sm:$0x1]  ;;  %v5302_v8 = vld [vmem:[%s6338_s25 + $0x48] sm:$0xf] }
  0xca   : > { %v4976_v17 = vrot.slane %v1178_v10, 9  ;;  %8149 = vst [vmem:[#allocation8_spill] sm:$0xff] %v7166_v56  ;;  %v3656_v2 = vrot.slane %v3654_v14, 5  ;;  %v3674_v36 = vrot.slane %v3672_v40, 4  ;;  %v1300_v38 = vrot.slane %v6244_v25, 5 }
  0xcb   : > { %v1299_v19 = vrot.slane %v1297_v34, 4  ;;  %v3665_v10 = vor.u32 %v3664_v15, %v3661_v1  ;;  %v7177_v31 = vld [vmem:[%s6338_s25 + $0x4c] sm:$0xf]  ;;  %v3678_v53 = vshll.u32 %v7166_v56, 16  ;;  %v3683_v14 = vshrl.u32 %v5302_v8, 16 }
  0xcc   : > { %5812 = vmatmul.mubr.msk.bf16.gmra.mrb[12].mxu0 %vm658_vm4, %v6190_v54  ;;  %v7192_v1 = vsel %vm6585_vm8, %v4976_v17, %v1297_v34  ;;  %v5305_v15 = vld [vmem:[%s6338_s25 + $0x54] sm:$0xf] }
  0xcd   : > { %5658 = vmatmul.mubr.msk.bf16.gmra.mrb[28].mxu1 %vm658_vm4, %v8147_v27  ;;  %5815 = vmatprep.mubr.msk.bf16.mxu0 %vm658_vm4, %v6191_v59  ;;  %v7156_v59 = vsel %vm6585_vm8, %v4975_v18, %v1290_v23  ;;  %v3633_v23 = vsel %vm6364_vm5, %v3628_v50, %v3632_v63  ;;  %v3652_v18 = vrot.slane %v3651_v62, 4  ;;  %v7179_v27 = vcombine.low %v3599_v57, %v3609_v61  ;;  %v1179_v63 = vld [vmem:[%s6338_s25 + $0x90] sm:$0xe]  ;;  %v6245_v57 = vld [vmem:[%s6338_s25 + $0x94] sm:$0xf] }
  0xce   : > { %5663 = vmatprep.mubr.msk.bf16.mxu1 %vm658_vm4, %v8148_v28  ;;  %v3686_v50 = vshll.u32 %v5302_v8, 16  ;;  %v7183_v3 = vcombine.low %v3623_v21, %v3633_v23  ;;  %v3647_v62 = vsel %vm6364_vm5, %v3642_v48, %v7121_v29  ;;  %v3675_v28 = vor.u32 %v3674_v36, %v7172_v32  ;;  %v7201_v23 = vld [vmem:[%s6338_s25 + $0x58] sm:$0xf] }
  0xcf   : > { %v1304_v61 = vrot.slane %v6245_v57, 5  ;;  %v3692_v21 = vshll.u32 %v7177_v31, 16  ;;  %v3696_v8 = vshrl.u32 %v7177_v31, 16  ;;  %v8150_v29 = vcombine.low %v6953_v0, %v6973_v13  ;;  %v6246_v36 = vld [vmem:[%s6338_s25 + $0x98] sm:$0x1] }
  0xd0   : > { %v3657_v34 = vsel %vm6364_vm5, %v3652_v18, %v3656_v2  ;;  %v7212_v48 = vsel %vm6585_vm8, %v1299_v19, %v1300_v38  ;;  %v7214_v17 = vrot.slane %v3665_v10, 4  ;;  %v8151_v0 = vcombine.low %v6977_v35, %v6985_v11  ;;  %v5308_v10 = vld [vmem:[%s6338_s25 + $0x60] sm:$0xf] }
  0xd1   : > { %v7221_v13 = vrot.slane %v3678_v53, 5  ;;  %v1307_v2 = vrot.slane %v6246_v36, 5  ;;  %v3688_v18 = vrot.slane %v3686_v50, 5  ;;  %v3707_v19 = vshrl.u32 %v5305_v15, 16  ;;  %v6194_v35 = vld [vmem:[%s6338_s25 + $0x9c] sm:$0xff]   ;;  %v6195_v50 = vld [vmem:[%s6338_s25 + $0xa8] sm:$0xff]  }
  0xd2   : > { %v3710_v25 = vshll.u32 %v5305_v15, 16  ;;  %v3716_v38 = vshll.u32 %v7201_v23, 16  ;;  %v7229_v11 = vrot.slane %v3675_v28, 4  ;;  %v1306_v53 = vrot.slane %v1304_v61, 4  ;;  %v7247_v28 = vld [vmem:[%s6338_s25 + $0x50] sm:$0x1] }
  0xd3   : > { %v7234_v57 = vcombine.low %v3647_v62, %v3657_v34  ;;  %v6247_v36 = vld [vmem:[%s6338_s25 + $0xa0] sm:$0xf]  ;;  %v7252_v34 = vld [vmem:[%s6338_s25 + $0x64] sm:$0xf]  ;;  %v3731_v15 = vshrl.u32 %v5308_v10, 16  ;;  %v3734_v40 = vshll.u32 %v5308_v10, 16 }
  0xd4   : > { %5816 = vmatmul.mubr.msk.bf16.gmra.mrb[16].mxu0 %vm658_vm4, %v6192_v60  ;;  %v4977_v60 = vrot.slane %v1179_v63, 9  ;;  %v7231_v63 = vrot.slane %v3692_v21, 5  ;;  %v1180_v21 = vld [vmem:[%s6338_s25 + $0x9c] sm:$0xe]  ;;  %v1311_v62 = vrot.slane %v6247_v36, 5  ;;  %8152 = vst [vmem:[#allocation9_spill] sm:$0xff] %v7252_v34 }
  0xd5   : > { %5664 = vmatmul.mubr.msk.bf16.vlgmr.msra.gmra.mrb[0].mxu1 %vm658_vm4, %v8150_v29  ;;  %5819 = vmatprep.mubr.msk.bf16.mxu0 %vm658_vm4, %v6193_v5  ;;  %v3685_v5 = vrot.slane %v3683_v14, 4  ;;  %v3698_v14 = vrot.slane %v3696_v8, 4  ;;  %v3709_v54 = vrot.slane %v3707_v19, 4  ;;  %v3712_v56 = vrot.slane %v3710_v25, 5  ;;  %v7268_v19 = vld [vmem:[%s6338_s25 + $0x5c] sm:$0x1] }
  0xd6   : > { %5696 = vmatpush3.bf16.msra.mxu1 %v6873_v33  ;;  %5667 = vmatprep.mubr.msk.bf16.mxu1 %vm658_vm4, %v8151_v0  ;;  %v3720_v33 = vshrl.u32 %v7201_v23, 16  ;;  %v7244_v0 = vsel %vm6585_vm8, %v4977_v60, %v1304_v61  ;;  %v7254_v16 = vrot.slane %v3716_v38, 5  ;;  %v3681_v61 = vsel %vm6364_vm5, %v7229_v11, %v7221_v13  ;;  %v1181_v13 = vld [vmem:[%s6338_s25 + $0xa8] sm:$0xe] }
  0xd7   : > { %5899 = vmatprep.subr.bf16.mxu1 %v6321_v7  ;;  %v3689_v8 = vor.u32 %v3688_v18, %v3685_v5  ;;  %v7263_v60 = vsel %vm6585_vm8, %v1306_v53, %v1307_v2  ;;  %v3699_v5 = vor.u32 %v3698_v14, %v7231_v63  ;;  %v3702_v18 = vshll.u32 %v7247_v28, 16  ;;  %v7291_v7 = vld [vmem:[%s6338_s25 + $0x68] sm:$0x1] }
  0xd8   : > { %v3722_v29 = vrot.slane %v3720_v33, 4  ;;  %v8153_v25 = vcombine.low %v6989_v52, %v6997_v44  ;;  %v4978_v38 = vrot.slane %v1180_v21, 9  ;;  %v1318_v2 = vrot.slane %v6720_v24, 5  ;;  %v6248_v44 = vld [vmem:[%s6338_s25 + $0xa4] sm:$0x1]  ;;  %8155 = vst [vmem:[#allocation10_spill] sm:$0xff] %v7291_v7 }
  0xd9   : > { %v3740_v33 = vshll.u32 %v7252_v34, 16  ;;  %v3744_v10 = vshrl.u32 %v7252_v34, 16  ;;  %v3690_v52 = vrot.slane %v3689_v8, 4  ;;  %v1314_v11 = vrot.slane %v6248_v44, 5 }
  0xda   : > { %v3733_v53 = vrot.slane %v3731_v15, 4  ;;  %v3736_v14 = vrot.slane %v3734_v40, 5  ;;  %v1313_v21 = vrot.slane %v1311_v62, 4  ;;  %v3713_v24 = vor.u32 %v3712_v56, %v3709_v54  ;;  %v6249_v40 = vld [vmem:[%s6338_s25 + $0xb0] sm:$0x1] }
  0xdb   : > { %v3723_v36 = vor.u32 %v3722_v29, %v7254_v16  ;;  %v3704_v8 = vrot.slane %v3702_v18, 5  ;;  %v1320_v15 = vrot.slane %v1318_v2, 4  ;;  %v1321_v44 = vrot.slane %v6249_v40, 5  ;;  %v1182_v56 = vld [vmem:[%s6338_s25 + $0xb4] sm:$0xe] }
  0xdc   : > { %5820 = vmatmul.mubr.msk.bf16.gmra.mrb[20].mxu0 %vm658_vm4, %v6194_v35  ;;  %v8154_v35 = vcombine.low %v6993_v51, %v7004_v42  ;;  %v3700_v42 = vrot.slane %v3699_v5, 4  ;;  %v7294_v47 = vrot.slane %v3740_v33, 5  ;;  %v3746_v54 = vrot.slane %v3744_v10, 4 }
  0xdd   : > { %5668 = vmatmul.mubr.msk.bf16.gmra.mrb[4].mxu1 %vm658_vm4, %v8153_v25  ;;  %5823 = vmatprep.mubr.msk.bf16.mxu0 %vm658_vm4, %v6195_v50  ;;  %v6196_v50 = vld [vmem:[%s6338_s25 + $0xb4] sm:$0xff]   ;;  %v3726_v25 = vshll.u32 %v7268_v19, 16  ;;  %v3695_v29 = vsel %vm6364_vm5, %v3690_v52, %v7231_v63  ;;  %v7302_v34 = vsel %vm6585_vm8, %v4978_v38, %v1311_v62  ;;  %v3737_v5 = vor.u32 %v3736_v14, %v3733_v53 }
  0xde   : > { %5671 = vmatprep.mubr.msk.bf16.mxu1 %vm658_vm4, %v8154_v35  ;;  %v4979_v35 = vrot.slane %v1181_v13, 9  ;;  %v1325_v18 = vrot.slane %v6744_v30, 5  ;;  %v5311_v13 = vld [vmem:[%s6338_s25 + $0x6c] sm:$0xf]  ;;  %v7308_v40 = vsel %vm6585_vm8, %v1313_v21, %v1314_v11  ;;  %v7310_v33 = vrot.slane %v3713_v24, 4 }
  0xdf   : > { %8156 = vst [vmem:[#allocation11_spill] sm:$0xff] %v7308_v40  ;;  %v7312_v10 = vrot.slane %v3723_v36, 4  ;;  %v7314_v51 = vrot.slane %v3726_v25, 5  ;;  %v3705_v63 = vsel %vm6364_vm5, %v3700_v42, %v3704_v8  ;;  %v3750_v62 = vshll.u32 %v7291_v7, 16  ;;  %v6198_v25 = vld [vmem:[%s6338_s25 + $0xcc] sm:$0xff]  }
  0xe0   : > { %v7321_v30 = vsel %vm6585_vm8, %v4979_v35, %v1318_v2  ;;  %v4980_v38 = vrot.slane %v1182_v56, 9  ;;  %v8158_v52 = vcombine.low %v7031_v6, %v7041_v12  ;;  %v7331_v11 = vsel %vm6585_vm8, %v1320_v15, %v1321_v44  ;;  %v7335_v2 = vld [vmem:[%s6338_s25 + $0x70] sm:$0xf]  ;;  %v7378_v44 = vld [vmem:[%s6338_s25 + $0x7c] sm:$0xf] }
  0xe1   : > { %8157 = vst [vmem:[#allocation12_spill] sm:$0xff] %v7321_v30  ;;  %8159 = vst [vmem:[#allocation13_spill] sm:$0xff] %v7331_v11  ;;  %v3747_v53 = vor.u32 %v3746_v54, %v7294_v47  ;;  %v3755_v14 = vshrl.u32 %v5311_v13, 16  ;;  %v8161_v21 = vcombine.low %v7035_v41, %v7045_v26  ;;  %v8162_v6 = vsel %vm6364_vm5, %v7214_v17, %v7172_v32  ;;  %v7365_v17 = vld [vmem:[%s6338_s25 + $0x74] sm:$0x1] }
  0xe2   : > { %8160 = vst [vmem:[#allocation14_spill] sm:$0xff] %v7335_v2  ;;  %v7346_v12 = vcombine.low %v8162_v6, %v3681_v61  ;;  %v1327_v24 = vrot.slane %v1325_v18, 4  ;;  %v1328_v36 = vrot.slane %v6750_v20, 5  ;;  %v7352_v42 = vcombine.low %v3695_v29, %v3705_v63  ;;  %8163 = vst [vmem:[#allocation15_spill] sm:$0xff] %v7365_v17  ;;  %v5314_v20 = vld [vmem:[%s6338_s25 + $0x78] sm:$0xf] }
  0xe3   : > { %v7370_v8 = vrot.slane %v3750_v62, 5  ;;  %v7374_v35 = vsel %vm6585_vm8, %v4980_v38, %v1325_v18  ;;  %v3764_v15 = vshll.u32 %v7335_v2, 16  ;;  %8164 = vst [vmem:[#allocation16_spill] sm:$0xff] %v7378_v44  ;;  %v5317_v54 = vld [vmem:[%s6338_s25 + $0x84] sm:$0xf]  ;;  %v7381_v56 = vrot.slane %v3747_v53, 4 }
  0xe4   : > { %5824 = vmatmul.mubr.msk.bf16.gmra.mrb[24].mxu0 %vm658_vm4, %v6196_v50  ;;  %v3758_v50 = vshll.u32 %v5311_v13, 16  ;;  %v7383_v29 = vrot.slane %v3755_v14, 4  ;;  %v3768_v13 = vshrl.u32 %v7335_v2, 16  ;;  %v7389_v63 = vld [vmem:[%s6338_s25 + $0x88] sm:$0xf]  ;;  %v7397_v62 = vsel %vm6585_vm8, %v1327_v24, %v1328_v36 }
  0xe5   : > { %5672 = vmatmul.mubr.msk.bf16.gmra.mrb[8].mxu1 %vm658_vm4, %v8158_v52  ;;  %5827 = vmatprep.mubr.msk.bf16.mxu0 %vm658_vm4, %v6197_v9  ;;  %v7348_v9 = vrot.slane %v3737_v5, 4  ;;  %8165 = vst [vmem:[#allocation17_spill] sm:$0xff] %v7389_v63  ;;  %v3779_v38 = vshrl.u32 %v5314_v20, 16  ;;  %v3782_v52 = vshll.u32 %v5314_v20, 16  ;;  %v5320_v53 = vld [vmem:[%s6338_s25 + $0x90] sm:$0xf]  ;;  %v8167_v18 = vcombine.low %v7070_v46, %v7074_v58 }
  0xe6   : > { %5675 = vmatprep.mubr.msk.bf16.mxu1 %vm658_vm4, %v8161_v21  ;;  %v7385_v5 = vrot.slane %v3758_v50, 5  ;;  %v7401_v14 = vld [vmem:[%s6338_s25 + $0x94] sm:$0xf]  ;;  %v3788_v50 = vshll.u32 %v7378_v44, 16  ;;  %v3792_v21 = vshrl.u32 %v7378_v44, 16  ;;  %v3803_v6 = vshrl.u32 %v5317_v54, 16 }
  0xe7   : > { %8166 = vst [vmem:[#allocation18_spill] sm:$0xff] %v7401_v14  ;;  %v3806_v61 = vshll.u32 %v5317_v54, 16  ;;  %v7406_v41 = vrot.slane %v3764_v15, 5  ;;  %v3774_v24 = vshll.u32 %v7365_v17, 16  ;;  %v3812_v36 = vshll.u32 %v7389_v63, 16 }
  0xe8   : > { %v3816_v20 = vshrl.u32 %v7389_v63, 16  ;;  %v3827_v54 = vshrl.u32 %v5320_v53, 16  ;;  %v3836_v15 = vshll.u32 %v7401_v14, 16  ;;  %v3840_v26 = vshrl.u32 %v7401_v14, 16  ;;  %v5323_v32 = vld [vmem:[%s6338_s25 + $0x9c] sm:$0xf] }
  0xe9   : > { %v8168_v44 = vcombine.low %v7078_v55, %v7083_v22  ;;  %v3770_v46 = vrot.slane %v3768_v13, 4  ;;  %v7431_v63 = vrot.slane %v3788_v50, 5  ;;  %v3794_v14 = vrot.slane %v3792_v21, 4  ;;  %v7434_v55 = vld [vmem:[%s6338_s25 + $0x8c] sm:$0x1] }
  0xea   : > { %v3805_v17 = vrot.slane %v3803_v6, 4  ;;  %v3808_v2 = vrot.slane %v3806_v61, 5  ;;  %v7436_v22 = vrot.slane %v3812_v36, 5  ;;  %v3851_v7 = vshrl.u32 %v5323_v32, 16  ;;  %v7439_v58 = vld [vmem:[%s6338_s25 + $0x98] sm:$0x1] }
  0xeb   : > { %v3854_v11 = vshll.u32 %v5323_v32, 16  ;;  %v3829_v13 = vrot.slane %v3827_v54, 4  ;;  %v3842_v50 = vrot.slane %v3840_v26, 4  ;;  %v3761_v21 = vor.u32 %v7385_v5, %v7383_v29 }
  0xec   : > { %5828 = vmatmul.mubr.msk.bf16.gmra.mrb[28].mxu0 %vm658_vm4, %v6198_v25  ;;  %v3830_v25 = vshll.u32 %v5320_v53, 16  ;;  %v7429_v53 = vld [vmem:[%s6338_s25 + $0x80] sm:$0x1]  ;;  %v3771_v61 = vor.u32 %v3770_v46, %v7406_v41  ;;  %v7446_v6 = vrot.slane %v3774_v24, 5  ;;  %v3795_v32 = vor.u32 %v3794_v14, %v7431_v63 }
  0xed   : > { %5676 = vmatmul.mubr.msk.bf16.gmra.mrb[12].mxu1 %vm658_vm4, %v8167_v18  ;;  %5833 = vmatprep.mubr.msk.bf16.mxu0 %vm658_vm4, %v7179_v27  ;;  %v3781_v27 = vrot.slane %v3779_v38, 4  ;;  %v3784_v18 = vrot.slane %v3782_v52, 5  ;;  %v7441_v52 = vrot.slane %v3836_v15, 5  ;;  %v3798_v36 = vshll.u32 %v7429_v53, 16 }
  0xee   : > { %5679 = vmatprep.mubr.msk.bf16.mxu1 %vm658_vm4, %v8168_v44  ;;  %v3818_v44 = vrot.slane %v3816_v20, 4  ;;  %v3832_v38 = vrot.slane %v3830_v25, 5  ;;  %v7450_v20 = vld [vmem:[%s6338_s25 + $0xa0] sm:$0xf]  ;;  %v3809_v40 = vor.u32 %v3808_v2, %v3805_v17  ;;  %v3822_v54 = vshll.u32 %v7434_v55, 16 }
  0xef   : > { %8169 = vst [vmem:[#allocation19_spill] sm:$0xff] %v7450_v20  ;;  %v3785_v30 = vor.u32 %v3784_v18, %v3781_v27  ;;  %v5326_v25 = vld [vmem:[%s6338_s25 + $0xa8] sm:$0xf]  ;;  %v3846_v29 = vshll.u32 %v7439_v58, 16  ;;  %v3853_v5 = vrot.slane %v3851_v7, 4  ;;  %v3856_v24 = vrot.slane %v3854_v11, 5 }
  0xf0   : > { %v3819_v26 = vor.u32 %v3818_v44, %v7436_v22  ;;  %v8170_v15 = vcombine.low %v7115_v43, %v7128_v39  ;;  %v3833_v2 = vor.u32 %v3832_v38, %v3829_v13  ;;  %v3843_v17 = vor.u32 %v3842_v50, %v7441_v52 }
  0xf1   : > { %v3860_v14 = vshll.u32 %v7450_v20, 16  ;;  %v8171_v46 = vcombine.low %v7156_v59, %v7163_v4  ;;  %v3762_v7 = vrot.slane %v3761_v21, 4  ;;  %v3772_v43 = vrot.slane %v3771_v61, 4  ;;  %v7479_v21 = vld [vmem:[%s6338_s25 + $0xac] sm:$0xf] }
  0xf2   : > { %v3878_v39 = vshll.u32 %v5326_v25, 16  ;;  %v3786_v11 = vrot.slane %v3785_v30, 4  ;;  %v3796_v27 = vrot.slane %v3795_v32, 4  ;;  %v3800_v18 = vrot.slane %v3798_v36, 5  ;;  %v7488_v61 = vld [vmem:[%s6338_s25 + $0xb0] sm:$0x1] }
  0xf3   : > { %v3810_v44 = vrot.slane %v3809_v40, 4  ;;  %v3820_v13 = vrot.slane %v3819_v26, 4  ;;  %v3824_v38 = vrot.slane %v3822_v54, 5  ;;  %v3848_v50 = vrot.slane %v3846_v29, 5 }
  0xf4   : > { %5834 = vmatmul.mubr.msk.bf16.vlgmr.msra.gmra.mrb[0].mxu0 %vm658_vm4, %v7183_v3  ;;  %v3864_v3 = vshrl.u32 %v7450_v20, 16  ;;  %v3857_v59 = vor.u32 %v3856_v24, %v3853_v5  ;;  %v3834_v4 = vrot.slane %v3833_v2, 4  ;;  %v7476_v20 = vrot.slane %v3860_v14, 5 }
  0xf5   : > { %5680 = vmatmul.mubr.msk.bf16.gmra.mrb[16].mxu1 %vm658_vm4, %v8170_v15  ;;  %5866 = vmatpush3.bf16.msra.mxu0 %v6957_v49  ;;  %v3875_v49 = vshrl.u32 %v5326_v25, 16  ;;  %v7474_v15 = vld [vmem:[%s6338_s25 + $0xa4] sm:$0x1]  ;;  %v3767_v30 = vsel %vm6364_vm5, %v3762_v7, %v7406_v41  ;;  %v3777_v40 = vsel %vm6364_vm5, %v3772_v43, %v7446_v6  ;;  %v3880_v32 = vrot.slane %v3878_v39, 5 }
  0xf6   : > { %5683 = vmatprep.mubr.msk.bf16.mxu1 %vm658_vm4, %v8171_v46  ;;  %5837 = vmatprep.mubr.msk.bf16.mxu0 %vm658_vm4, %v7234_v57  ;;  %v3844_v46 = vrot.slane %v3843_v17, 4  ;;  %v3866_v57 = vrot.slane %v3864_v3, 4  ;;  %v3791_v54 = vsel %vm6364_vm5, %v3786_v11, %v7431_v63  ;;  %v3801_v25 = vsel %vm6364_vm5, %v3796_v27, %v3800_v18  ;;  %v5329_v3 = vld [vmem:[%s6338_s25 + $0xb4] sm:$0xf] }
  0xf7   : > { %v3877_v36 = vrot.slane %v3875_v49, 4  ;;  %v3815_v26 = vsel %vm6364_vm5, %v3810_v44, %v7436_v22  ;;  %v3870_v41 = vshll.u32 %v7474_v15, 16  ;;  %v3825_v6 = vsel %vm6364_vm5, %v3820_v13, %v3824_v38  ;;  %v5376_v11 = vld [vmem:[%s6338_s25 + $0x54] sm:$0xe]  ;;  %v5377_v38 = vld [vmem:[%s6338_s25 + $0x60] sm:$0xe] }
  0xf8   : > { %v7503_v29 = vrot.slane %v3857_v59, 4  ;;  %v3884_v63 = vshll.u32 %v7479_v21, 16  ;;  %v3888_v5 = vshrl.u32 %v7479_v21, 16  ;;  %v8172_v24 = vcombine.low %v7192_v1, %v7212_v48 }
  0xf9   : > { %v3849_v22 = vsel %vm6364_vm5, %v3844_v46, %v3848_v50  ;;  %v3867_v2 = vor.u32 %v3866_v57, %v7476_v20  ;;  %v3894_v17 = vshll.u32 %v7488_v61, 16  ;;  %v8173_v1 = vcombine.low %v7244_v0, %v7263_v60 }
  0xfa   : > { %v8174_v48 = vsel %vm6364_vm5, %v7312_v10, %v7314_v51  ;;  %v8176_v14 = vsel %vm6364_vm5, %v7381_v56, %v7370_v8  ;;  %v8177_v0 = vsel %vm6364_vm5, %v7348_v9, %v7294_v47  ;;  %v4997_v51 = vcombine.low %v7374_v35, %v7397_v62  ;;  %v7557_v56 = vld [vmem:[%s6338_s25 + $0xb8] sm:$0xf] }
  0xfb   : > { %v5345_v60 = vcombine.low %v8177_v0, %v8176_v14  ;;  %v3881_v10 = vor.u32 %v3880_v32, %v3877_v36  ;;  %v7550_v7 = vcombine.low %v3791_v54, %v3801_v25  ;;  %v7552_v43 = vcombine.low %v3815_v26, %v3825_v6  ;;  %v5378_v32 = vld [vmem:[%s6338_s25 + $0x6c] sm:$0xe] }
  0xfc   : > { %5838 = vmatmul.mubr.msk.bf16.gmra.mrb[4].mxu0 %vm658_vm4, %v7346_v12  ;;  %v3839_v12 = vsel %vm6364_vm5, %v3834_v4, %v7441_v52  ;;  %v7554_v8 = vrot.slane %v3870_v41, 5  ;;  %v3863_v47 = vsel %vm6364_vm5, %v7503_v29, %v7476_v20  ;;  %v7565_v9 = vrot.slane %v3884_v63, 5  ;;  %v8180_v63 = vld [vmem:[#allocation9_spill] sm:$0xff]  ;;  %v5335_v29 = vld [vmem:[%s6338_s25 + $0xcc] sm:$0xf] }
  0xfd   : > { %5684 = vmatmul.mubr.msk.bf16.gmra.mrb[20].mxu1 %vm658_vm4, %v8172_v24  ;;  %5841 = vmatprep.mubr.msk.bf16.mxu0 %vm658_vm4, %v7352_v42  ;;  %v8175_v42 = vsel %vm6364_vm5, %v7310_v33, %v7254_v16  ;;  %v5375_v16 = vld [vmem:[%s6338_s25 + $0x48] sm:$0xe]  ;;  %v7548_v33 = vcombine.low %v3767_v30, %v3777_v40  ;;  %v7559_v49 = vcombine.low %v3839_v12, %v3849_v22  ;;  %v3890_v39 = vrot.slane %v3888_v5, 4  ;;  %v8181_v24 = vld [vmem:[#allocation12_spill] sm:$0xff]  ;;  %v8182_v12 = vld [vmem:[#allocation13_spill] sm:$0xff] }
  0xfe   : > { %5687 = vmatprep.mubr.msk.bf16.mxu1 %vm658_vm4, %v8173_v1  ;;  %v5344_v52 = vcombine.low %v8175_v42, %v8174_v48  ;;  %v7568_v27 = vrot.slane %v3867_v2, 4  ;;  %v7570_v18 = vrot.slane %v3894_v17, 5  ;;  %v3899_v44 = vshrl.u32 %v5329_v3, 16  ;;  %v8184_v2 = vld [vmem:[#allocation10_spill] sm:$0xff] }
  0xff   : > { %v5391_v13 = vrot.slane %v5375_v16, 9  ;;  %v7573_v50 = vrot.slane %v3881_v10, 4  ;;  %v3902_v59 = vshll.u32 %v5329_v3, 16  ;;  %v3908_v4 = vshll.u32 %v7557_v56, 16  ;;  %v8185_v48 = vld [vmem:[#allocation14_spill] sm:$0xff] }
 0x100   : > { %v4358_v46 = vrot.slane %v7177_v31, 5  ;;  %v4361_v57 = vrot.slane %v7247_v28, 5  ;;  %v5392_v30 = vrot.slane %v5376_v11, 9  ;;  %v4365_v40 = vrot.slane %v7201_v23, 5  ;;  %v8178_v31 = vld [vmem:[#allocation11_spill] sm:$0xff] }
 0x101   : > { %v4368_v36 = vrot.slane %v7268_v19, 5  ;;  %v3891_v54 = vor.u32 %v3890_v39, %v7565_v9  ;;  %v5393_v41 = vrot.slane %v5377_v38, 9  ;;  %v8179_v28 = vcombine.low %v7302_v34, %v8178_v31  ;;  %v7620_v3 = vld [vmem:[%s6338_s25 + $0xbc] sm:$0x1] }
 0x102   : > { %v7585_v25 = vsel %vm6585_vm8, %v5391_v13, %v4358_v46  ;;  %v4360_v26 = vrot.slane %v4358_v46, 4  ;;  %v3912_v23 = vshrl.u32 %v7557_v56, 16  ;;  %v7595_v19 = vsel %vm6585_vm8, %v5392_v30, %v4365_v40  ;;  %v8186_v13 = vld [vmem:[#allocation15_spill] sm:$0xff] }
 0x103   : > { %v4367_v6 = vrot.slane %v4365_v40, 4  ;;  %v4372_v5 = vrot.slane %v8180_v63, 5  ;;  %v8183_v22 = vcombine.low %v8181_v24, %v8182_v12  ;;  %v4375_v17 = vrot.slane %v8184_v2, 5  ;;  %v7638_v40 = vld [vmem:[%s6338_s25 + $0xc4] sm:$0xf]  ;;  %v8187_v12 = vld [vmem:[#allocation16_spill] sm:$0xff] }
 0x104   : > { %5842 = vmatmul.mubr.msk.bf16.gmra.mrb[8].mxu0 %vm658_vm4, %v5344_v52  ;;  %v7604_v34 = vsel %vm6585_vm8, %v4360_v26, %v4361_v57  ;;  %v5394_v1 = vrot.slane %v5378_v32, 9  ;;  %v4379_v42 = vrot.slane %v8185_v48, 5  ;;  %v5332_v52 = vld [vmem:[%s6338_s25 + $0xc0] sm:$0xf]  ;;  %v4382_v38 = vrot.slane %v8186_v13, 5  ;;  %v6199_v26 = vld [vmem:[%s6338_s25 + $0xc] sm:$0xff]  }
 0x105   : > { %5688 = vmatmul.mubr.msk.bf16.gmra.mrb[24].mxu1 %vm658_vm4, %v8179_v28  ;;  %5845 = vmatprep.mubr.msk.bf16.mxu0 %vm658_vm4, %v5345_v60  ;;  %v5408_v14 = vcombine.low %v7585_v25, %v7604_v34  ;;  %v7613_v0 = vsel %vm6585_vm8, %v4367_v6, %v4368_v36  ;;  %v7617_v60 = vsel %vm6585_vm8, %v5393_v41, %v4372_v5  ;;  %v4374_v10 = vrot.slane %v4372_v5, 4  ;;  %v5379_v32 = vld [vmem:[%s6338_s25 + $0x78] sm:$0xe]  ;;  %v5380_v2 = vld [vmem:[%s6338_s25 + $0x84] sm:$0xe] }
 0x106   : > { %5691 = vmatprep.mubr.msk.bf16.mxu1 %vm658_vm4, %v8183_v22  ;;  %v5409_v16 = vcombine.low %v7595_v19, %v7613_v0  ;;  %v7626_v39 = vsel %vm6585_vm8, %v5394_v1, %v4379_v42  ;;  %v4381_v11 = vrot.slane %v4379_v42, 4  ;;  %v3873_v46 = vsel %vm6364_vm5, %v7568_v27, %v7554_v8  ;;  %v5106_v27 = vld [vmem:[%s6338_s25 + $0x78] sm:$0xf]  ;;  %v6260_v0 = vld [vmem:[%s6338_s25 + $0xa0] sm:$0xf] }
 0x107   : > { %v7633_v57 = vrot.slane %v3899_v44, 4  ;;  %v7635_v30 = vrot.slane %v3902_v59, 5  ;;  %v7642_v36 = vsel %vm6585_vm8, %v4374_v10, %v4375_v17  ;;  %v7646_v41 = vrot.slane %v3908_v4, 5  ;;  %v8189_v48 = vld [vmem:[#allocation5_spill] sm:$0xff] }
 0x108   : > { %v3923_v31 = vshrl.u32 %v5332_v52, 16  ;;  %v5410_v28 = vcombine.low %v7617_v60, %v7642_v36  ;;  %v7652_v8 = vsel %vm6585_vm8, %v4381_v11, %v4382_v38  ;;  %v7655_v44 = vrot.slane %v3891_v54, 4  ;;  %v8190_v38 = vld [vmem:[#allocation17_spill] sm:$0xff] }
 0x109   : > { %v3918_v59 = vshll.u32 %v7620_v3, 16  ;;  %v3926_v6 = vshll.u32 %v5332_v52, 16  ;;  %v5411_v63 = vcombine.low %v7626_v39, %v7652_v8  ;;  %v7662_v4 = vrot.slane %v3912_v23, 4  ;;  %v6263_v8 = vld [vmem:[%s6338_s25 + $0xac] sm:$0xf] }
 0x10a   : > { %v3932_v5 = vshll.u32 %v7638_v40, 16  ;;  %v5395_v24 = vrot.slane %v5379_v32, 9  ;;  %v4386_v22 = vrot.slane %v8187_v12, 5  ;;  %v3936_v54 = vshrl.u32 %v7638_v40, 16 }
 0x10b   : > { %v2248_v23 = vshrl.u32 %v5106_v27, 16  ;;  %v2251_v17 = vshll.u32 %v5106_v27, 16  ;;  %v3925_v1 = vrot.slane %v3923_v31, 4  ;;  %v5396_v10 = vrot.slane %v5380_v2, 9  ;;  %v6200_v31 = vld [vmem:[%s6338_s25 + $0x18] sm:$0xff]  }
 0x10c   : > { %5846 = vmatmul.mubr.msk.bf16.gmra.mrb[12].mxu0 %vm658_vm4, %v7548_v33  ;;  %v4389_v33 = vrot.slane %v7429_v53, 5  ;;  %v7678_v35 = vsel %vm6585_vm8, %v5395_v24, %v4386_v22  ;;  %v4388_v62 = vrot.slane %v4386_v22, 4  ;;  %v3928_v53 = vrot.slane %v3926_v6, 5  ;;  %v6201_v24 = vld [vmem:[%s6338_s25 + $0x24] sm:$0xff]  }
 0x10d   : > { %5692 = vmatmul.mubr.msk.bf16.gmra.mrb[28].mxu1 %vm658_vm4, %v4997_v51  ;;  %5849 = vmatprep.mubr.msk.bf16.mxu0 %vm658_vm4, %v7550_v7  ;;  %v8188_v51 = vld [vmem:[#allocation4_spill] sm:$0xff]  ;;  %v2250_v42 = vrot.slane %v2248_v23, 4  ;;  %v2253_v52 = vrot.slane %v2251_v17, 5  ;;  %v5350_v11 = vcombine.low %v3863_v47, %v3873_v46  ;;  %v4393_v32 = vrot.slane %v8190_v38, 5  ;;  %v8193_v38 = vld [vmem:[#allocation18_spill] sm:$0xff] }
 0x10e   : > { %5697 = vmatprep.mubr.msk.bf16.mxu1 %vm658_vm4, %v6199_v26  ;;  %v2270_v7 = vsel %vm6364_vm5, %v8189_v48, %v8188_v51  ;;  %v7691_v13 = vsel %vm6585_vm8, %v4388_v62, %v4389_v33  ;;  %v4396_v26 = vrot.slane %v7434_v55, 5  ;;  %v3887_v27 = vsel %vm6364_vm5, %v7573_v50, %v7565_v9  ;;  %v7704_v47 = vld [vmem:[%s6338_s25 + $0xd0] sm:$0xf]  ;;  %v8192_v51 = vld [vmem:[#allocation2_spill] sm:$0xff] }
 0x10f   : > { %v3905_v20 = vor.u32 %v7635_v30, %v7633_v57  ;;  %v5412_v46 = vcombine.low %v7678_v35, %v7691_v13  ;;  %v2254_v6 = vor.u32 %v2253_v52, %v2250_v42  ;;  %v7709_v12 = vrot.slane %v3932_v5, 5  ;;  %v5381_v9 = vld [vmem:[%s6338_s25 + $0x90] sm:$0xe]  ;;  %v7723_v30 = vld [vmem:[%s6338_s25 + $0xc8] sm:$0x1] }
 0x110   : > { %v3938_v55 = vrot.slane %v3936_v54, 4  ;;  %v7713_v22 = vsel %vm6585_vm8, %v5396_v10, %v4393_v32  ;;  %v4395_v2 = vrot.slane %v4393_v32, 4  ;;  %v3897_v50 = vsel %vm6364_vm5, %v7655_v44, %v7570_v18  ;;  %v8191_v44 = vld [vmem:[#allocation3_spill] sm:$0xff] }
 0x111   : > { %v3915_v57 = vor.u32 %v7662_v4, %v7646_v41  ;;  %v3929_v33 = vor.u32 %v3928_v53, %v3925_v1  ;;  %v2255_v5 = vrot.slane %v2254_v6, 4  ;;  %v3947_v54 = vshrl.u32 %v5335_v29, 16 }
 0x112   : > { %v3950_v23 = vshll.u32 %v5335_v29, 16  ;;  %v3956_v17 = vshll.u32 %v7704_v47, 16  ;;  %v7730_v62 = vsel %vm6585_vm8, %v4395_v2, %v4396_v26  ;;  %v3960_v18 = vshrl.u32 %v7704_v47, 16 }
 0x113   : > { %v2260_v4 = vsel %vm6364_vm5, %v2255_v5, %v8191_v44  ;;  %v5397_v1 = vrot.slane %v5381_v9, 9  ;;  %v3920_v48 = vrot.slane %v3918_v59, 5  ;;  %v3942_v53 = vshll.u32 %v7723_v30, 16  ;;  %v5382_v9 = vld [vmem:[%s6338_s25 + $0x9c] sm:$0xe]  ;;  %v8194_v44 = vld [vmem:[#allocation19_spill] sm:$0xff] }
 0x114   : > { %5850 = vmatmul.mubr.msk.bf16.gmra.mrb[16].mxu0 %vm658_vm4, %v7552_v43  ;;  %v5413_v43 = vcombine.low %v7713_v22, %v7730_v62  ;;  %v7745_v42 = vcombine.low %v2260_v4, %v2270_v7  ;;  %v5351_v52 = vcombine.low %v3887_v27, %v3897_v50  ;;  %v3906_v10 = vrot.slane %v3905_v20, 4  ;;  %v7752_v59 = vld [vmem:[%s6338_s25 + $0xd4] sm:$0x1]  ;;  %v6203_v20 = vld [vmem:[%s6338_s25 + $0x3c] sm:$0xff]  }
 0x115   : > { %5698 = vmatmul.mubr.msk.bf16.vlgmr.msra.gmra.mrb[0].mxu1 %vm658_vm4, %v6200_v31  ;;  %5853 = vmatprep.mubr.msk.bf16.mxu0 %vm658_vm4, %v7559_v49  ;;  %v3939_v49 = vor.u32 %v3938_v55, %v7709_v12  ;;  %v4400_v32 = vrot.slane %v8193_v38, 5  ;;  %v4403_v26 = vrot.slane %v7439_v58, 5  ;;  %v3916_v31 = vrot.slane %v3915_v57, 4  ;;  %v5383_v38 = vld [vmem:[%s6338_s25 + $0xa8] sm:$0xe] }
 0x116   : > { %5900 = vmatpush3.bf16.msra.mxu1 %v8192_v51  ;;  %5701 = vmatprep.mubr.msk.bf16.mxu1 %vm658_vm4, %v6201_v24  ;;  %v3930_v29 = vrot.slane %v3929_v33, 4  ;;  %v3949_v6 = vrot.slane %v3947_v54, 4  ;;  %v3952_v2 = vrot.slane %v3950_v23, 5  ;;  %v6202_v24 = vld [vmem:[%s6338_s25 + $0x30] sm:$0xff]   ;;  %v7754_v55 = vrot.slane %v3956_v17, 5 }
 0x117   : > { %v3962_v5 = vrot.slane %v3960_v18, 4  ;;  %v7758_v7 = vsel %vm6585_vm8, %v5397_v1, %v4400_v32  ;;  %v4402_v27 = vrot.slane %v4400_v32, 4  ;;  %v3940_v50 = vrot.slane %v3939_v49, 4  ;;  %v5371_v51 = vld [vmem:[%s6338_s25 + $0x18] sm:$0xe] }
 0x118   : > { %v3944_v58 = vrot.slane %v3942_v53, 5  ;;  %v3911_v57 = vsel %vm6364_vm5, %v3906_v10, %v7646_v41  ;;  %v5398_v54 = vrot.slane %v5382_v9, 9  ;;  %v3921_v23 = vsel %vm6364_vm5, %v3916_v31, %v3920_v48  ;;  %v6250_v53 = vld [vmem:[%s6338_s25 + $0x1c] sm:$0xf] }
 0x119   : > { %v7766_v33 = vsel %vm6585_vm8, %v4402_v27, %v4403_v26  ;;  %v3966_v17 = vshll.u32 %v7752_v59, 16  ;;  %v4407_v4 = vrot.slane %v8194_v44, 5  ;;  %v3935_v41 = vsel %vm6364_vm5, %v3930_v29, %v7709_v12  ;;  %v6204_v29 = vld [vmem:[%s6338_s25 + $0x48] sm:$0xff]  }
 0x11a   : > { %v5414_v18 = vcombine.low %v7758_v7, %v7766_v33  ;;  %v3963_v1 = vor.u32 %v3962_v5, %v7754_v55  ;;  %v4410_v48 = vrot.slane %v7474_v15, 5  ;;  %v3945_v49 = vsel %vm6364_vm5, %v3940_v50, %v3944_v58  ;;  %v6205_v5 = vld [vmem:[%s6338_s25 + $0x54] sm:$0xff]  }
 0x11b   : > { %v7789_v10 = vsel %vm6585_vm8, %v5398_v54, %v4407_v4  ;;  %v4409_v12 = vrot.slane %v4407_v4, 4  ;;  %v5352_v32 = vcombine.low %v3911_v57, %v3921_v23  ;;  %v3968_v26 = vrot.slane %v3966_v17, 5  ;;  %v5372_v23 = vld [vmem:[%s6338_s25 + $0x24] sm:$0xe]  ;;  %v6252_v4 = vld [vmem:[%s6338_s25 + $0x28] sm:$0xf] }
 0x11c   : > { %5854 = vmatmul.mubr.msk.bf16.gmra.mrb[20].mxu0 %vm658_vm4, %v5350_v11  ;;  %v3953_v11 = vor.u32 %v3952_v2, %v3949_v6  ;;  %v5387_v31 = vrot.slane %v5371_v51, 9  ;;  %v5353_v6 = vcombine.low %v3935_v41, %v3945_v49  ;;  %v3964_v9 = vrot.slane %v3963_v1, 4  ;;  %v6253_v49 = vld [vmem:[%s6338_s25 + $0x34] sm:$0xf] }
 0x11d   : > { %5702 = vmatmul.mubr.msk.bf16.gmra.mrb[4].mxu1 %vm658_vm4, %v6202_v24  ;;  %5857 = vmatprep.mubr.msk.bf16.mxu0 %vm658_vm4, %v5351_v52  ;;  %v4330_v52 = vrot.slane %v6250_v53, 5  ;;  %v7794_v15 = vsel %vm6585_vm8, %v4409_v12, %v4410_v48  ;;  %v5399_v58 = vrot.slane %v5383_v38, 9  ;;  %v4414_v57 = vrot.slane %v7479_v21, 5  ;;  %v5373_v48 = vld [vmem:[%s6338_s25 + $0x30] sm:$0xe] }
 0x11e   : > { %5705 = vmatprep.mubr.msk.bf16.mxu1 %vm658_vm4, %v6203_v20  ;;  %v3954_v2 = vrot.slane %v3953_v11, 4  ;;  %v5415_v24 = vcombine.low %v7789_v10, %v7794_v15  ;;  %v6251_v20 = vld [vmem:[%s6338_s25 + $0x20] sm:$0x1]  ;;  %v4417_v54 = vrot.slane %v7488_v61, 5  ;;  %v3969_v61 = vsel %vm6364_vm5, %v3964_v9, %v3968_v26  ;;  %v5384_v11 = vld [vmem:[%s6338_s25 + $0xb4] sm:$0xe] }
 0x11f   : > { %v4332_v27 = vrot.slane %v4330_v52, 4  ;;  %v4333_v50 = vrot.slane %v6251_v20, 5  ;;  %v7807_v17 = vsel %vm6585_vm8, %v5399_v58, %v4414_v57  ;;  %v4416_v44 = vrot.slane %v4414_v57, 4  ;;  %v6254_v26 = vld [vmem:[%s6338_s25 + $0x2c] sm:$0x1]  ;;  %v8195_v58 = vld [vmem:[#allocation6_spill] sm:$0xff] }
 0x120   : > { %v3959_v21 = vsel %vm6364_vm5, %v3954_v2, %v7754_v55  ;;  %v4337_v41 = vrot.slane %v6252_v4, 5  ;;  %v4331_v1 = vsel %vm6585_vm8, %v5387_v31, %v4330_v52  ;;  %v4344_v53 = vrot.slane %v6253_v49, 5  ;;  %v6207_v20 = vld [vmem:[%s6338_s25 + $0x6c] sm:$0xff]   ;;  %v6268_v10 = vld [vmem:[%s6338_s25 + $0xc8] sm:$0x1] }
 0x121   : > { %v4334_v51 = vsel %vm6585_vm8, %v4332_v27, %v4333_v50  ;;  %v7827_v55 = vsel %vm6585_vm8, %v4416_v44, %v4417_v54  ;;  %v5388_v12 = vrot.slane %v5372_v23, 9  ;;  %v5400_v52 = vrot.slane %v5384_v11, 9  ;;  %v5385_v44 = vld [vmem:[%s6338_s25 + $0xc0] sm:$0xe]  ;;  %v5374_v11 = vld [vmem:[%s6338_s25 + $0x3c] sm:$0xe] }
 0x122   : > { %v5416_v38 = vcombine.low %v7807_v17, %v7827_v55  ;;  %v4421_v31 = vrot.slane %v7557_v56, 5  ;;  %v5404_v2 = vcombine.low %v4331_v1, %v4334_v51  ;;  %v4339_v9 = vrot.slane %v4337_v41, 4  ;;  %v8196_v56 = vld [vmem:[#allocation7_spill] sm:$0xff] }
 0x123   : > { %v4424_v27 = vrot.slane %v7620_v3, 5  ;;  %v4346_v50 = vrot.slane %v4344_v53, 4  ;;  %v4347_v57 = vrot.slane %v8195_v58, 5  ;;  %v4338_v3 = vsel %vm6585_vm8, %v5388_v12, %v4337_v41 }
 0x124   : > { %5858 = vmatmul.mubr.msk.bf16.gmra.mrb[24].mxu0 %vm658_vm4, %v5352_v32  ;;  %v5354_v32 = vcombine.low %v3959_v21, %v3969_v61  ;;  %v7839_v54 = vsel %vm6585_vm8, %v5400_v52, %v4421_v31  ;;  %v4423_v23 = vrot.slane %v4421_v31, 4  ;;  %v4351_v21 = vrot.slane %v8196_v56, 5  ;;  %v8197_v31 = vld [vmem:[#allocation8_spill] sm:$0xff] }
 0x125   : > { %5706 = vmatmul.mubr.msk.bf16.gmra.mrb[8].mxu1 %vm658_vm4, %v6204_v29  ;;  %5861 = vmatprep.mubr.msk.bf16.mxu0 %vm658_vm4, %v5353_v6  ;;  %v4340_v29 = vrot.slane %v6254_v26, 5  ;;  %v6206_v6 = vld [vmem:[%s6338_s25 + $0x60] sm:$0xff]   ;;  %v5401_v49 = vrot.slane %v5385_v44, 9  ;;  %v4428_v41 = vrot.slane %v7638_v40, 5  ;;  %v4431_v12 = vrot.slane %v7723_v30, 5 }
 0x126   : > { %5709 = vmatprep.mubr.msk.bf16.mxu1 %vm658_vm4, %v6205_v5  ;;  %v5389_v5 = vrot.slane %v5373_v48, 9  ;;  %v7846_v61 = vsel %vm6585_vm8, %v4423_v23, %v4424_v27  ;;  %v4348_v48 = vsel %vm6585_vm8, %v4346_v50, %v4347_v57  ;;  %v4353_v52 = vrot.slane %v4351_v21, 4  ;;  %v6255_v56 = vld [vmem:[%s6338_s25 + $0x70] sm:$0xf] }
 0x127   : > { %v4341_v4 = vsel %vm6585_vm8, %v4339_v9, %v4340_v29  ;;  %v5417_v1 = vcombine.low %v7839_v54, %v7846_v61  ;;  %v5390_v29 = vrot.slane %v5374_v11, 9  ;;  %v6208_v9 = vld [vmem:[%s6338_s25 + $0x78] sm:$0xff]   ;;  %v4435_v11 = vrot.slane %v7704_v47, 5 }
 0x128   : > { %v4345_v51 = vsel %vm6585_vm8, %v5389_v5, %v4344_v53  ;;  %v5405_v26 = vcombine.low %v4338_v3, %v4341_v4  ;;  %v7870_v53 = vsel %vm6585_vm8, %v5401_v49, %v4428_v41  ;;  %v4430_v5 = vrot.slane %v4428_v41, 4 }
 0x129   : > { %v5406_v27 = vcombine.low %v4345_v51, %v4348_v48  ;;  %v4352_v57 = vsel %vm6585_vm8, %v5390_v29, %v4351_v21  ;;  %v2233_v3 = vshll.u32 %v6255_v56, 16  ;;  %v2237_v4 = vshrl.u32 %v6255_v56, 16 }
 0x12a   : > { %v7875_v40 = vsel %vm6585_vm8, %v4430_v5, %v4431_v12  ;;  %v4438_v21 = vrot.slane %v7752_v59, 5  ;;  %v6210_v12 = vld [vmem:[%s6338_s25 + $0x90] sm:$0xff]   ;;  %v6211_v59 = vld [vmem:[%s6338_s25 + $0x9c] sm:$0xff]   ;;  %v2411_v15 = vshll.u32 %v6268_v10, 16 }
 0x12b   : > { %v5418_v44 = vcombine.low %v7870_v53, %v7875_v40  ;;  %v2239_v29 = vrot.slane %v2237_v4, 4  ;;  %v6213_v4 = vld [vmem:[%s6338_s25 + $0xb4] sm:$0xff]  }
 0x12c   : > { %5862 = vmatmul.mubr.msk.bf16.gmra.mrb[28].mxu0 %vm658_vm4, %v5354_v32  ;;  %v5103_v32 = vld [vmem:[%s6338_s25 + $0x6c] sm:$0xf] }
 0x12d   : > { %5710 = vmatmul.mubr.msk.bf16.gmra.mrb[12].mxu1 %vm658_vm4, %v6206_v6  ;;  %5867 = vmatprep.mubr.msk.bf16.mxu0 %vm658_vm4, %v5404_v2  ;;  %v4354_v6 = vrot.slane %v8197_v31, 5  ;;  %v5386_v2 = vld [vmem:[%s6338_s25 + $0xcc] sm:$0xe]  ;;  %v2224_v50 = vshrl.u32 %v5103_v32, 16  ;;  %v2227_v58 = vshll.u32 %v5103_v32, 16  ;;  %v4437_v32 = vrot.slane %v4435_v11, 4 }
 0x12e   : > { %5713 = vmatprep.mubr.msk.bf16.mxu1 %vm658_vm4, %v6207_v20  ;;  %v6209_v20 = vld [vmem:[%s6338_s25 + $0x84] sm:$0xff]   ;;  %v5402_v30 = vrot.slane %v5386_v2, 9  ;;  %v6256_v2 = vld [vmem:[%s6338_s25 + $0x74] sm:$0x1] }
 0x12f   : > { %v4355_v23 = vsel %vm6585_vm8, %v4353_v52, %v4354_v6  ;;  %v2226_v51 = vrot.slane %v2224_v50, 4  ;;  %v2229_v48 = vrot.slane %v2227_v58, 5  ;;  %v7897_v47 = vsel %vm6585_vm8, %v4437_v32, %v4438_v21  ;;  %v5109_v52 = vld [vmem:[%s6338_s25 + $0x84] sm:$0xf] }
 0x130   : > { %v7892_v49 = vsel %vm6585_vm8, %v5402_v30, %v4435_v11  ;;  %v5407_v41 = vcombine.low %v4352_v57, %v4355_v23  ;;  %v2275_v5 = vshll.u32 %v5109_v52, 16  ;;  %v5112_v57 = vld [vmem:[%s6338_s25 + $0x90] sm:$0xf]  ;;  %v6212_v23 = vld [vmem:[%s6338_s25 + $0xa8] sm:$0xff]  }
 0x131   : > { %v5419_v31 = vcombine.low %v7892_v49, %v7897_v47  ;;  %v2230_v6 = vor.u32 %v2229_v48, %v2226_v51  ;;  %v2296_v51 = vshrl.u32 %v5112_v57, 16  ;;  %v2299_v48 = vshll.u32 %v5112_v57, 16 }
 0x133   : > { %v2231_v30 = vrot.slane %v2230_v6, 4  ;;  %v6259_v6 = vld [vmem:[%s6338_s25 + $0x8c] sm:$0x1]  ;;  %v2301_v60 = vrot.slane %v2299_v48, 5  ;;  %v6262_v48 = vld [vmem:[%s6338_s25 + $0xa4] sm:$0x1] }
 0x134   : > { %5868 = vmatmul.mubr.msk.bf16.vlgmr.msra.gmra.mrb[0].mxu0 %vm658_vm4, %v5405_v26  ;;  %v2235_v26 = vrot.slane %v2233_v3, 5  ;;  %v5115_v3 = vld [vmem:[%s6338_s25 + $0x9c] sm:$0xf]  ;;  %v2291_v19 = vshll.u32 %v6259_v6, 16 }
 0x135   : > { %5714 = vmatmul.mubr.msk.bf16.gmra.mrb[16].mxu1 %vm658_vm4, %v6208_v9  ;;  %5871 = vmatprep.mubr.msk.bf16.mxu0 %vm658_vm4, %v5406_v27  ;;  %v2243_v9 = vshll.u32 %v6256_v2, 16  ;;  %v2272_v27 = vshrl.u32 %v5109_v52, 16  ;;  %v2323_v52 = vshll.u32 %v5115_v3, 16 }
 0x136   : > { %5717 = vmatprep.mubr.msk.bf16.mxu1 %vm658_vm4, %v6209_v20  ;;  %v2240_v45 = vor.u32 %v2239_v29, %v2235_v26  ;;  %v6257_v20 = vld [vmem:[%s6338_s25 + $0x88] sm:$0xf]  ;;  %v2236_v32 = vsel %vm6364_vm5, %v2231_v30, %v2235_v26  ;;  %v2293_v30 = vrot.slane %v2291_v19, 5 }
 0x137   : > { %v2281_v50 = vshll.u32 %v6257_v20, 16  ;;  %v2285_v58 = vshrl.u32 %v6257_v20, 16  ;;  %v2245_v25 = vrot.slane %v2243_v9, 5  ;;  %v2274_v34 = vrot.slane %v2272_v27, 4 }
 0x138   : > { %v2241_v56 = vrot.slane %v2240_v45, 4  ;;  %v2333_v45 = vshrl.u32 %v6260_v0, 16  ;;  %v2298_v27 = vrot.slane %v2296_v51, 4  ;;  %v2325_v20 = vrot.slane %v2323_v52, 5 }
 0x139   : > { %v7916_v11 = vrot.slane %v2281_v50, 5  ;;  %v2287_v21 = vrot.slane %v2285_v58, 4  ;;  %v6214_v50 = vld [vmem:[%s6338_s25 + $0xc0] sm:$0xff]  }
 0x13a   : > { %v2246_v26 = vsel %vm6364_vm5, %v2241_v56, %v2245_v25  ;;  %v5118_v56 = vld [vmem:[%s6338_s25 + $0xa8] sm:$0xf] }
 0x13b   : > { %v2288_v9 = vor.u32 %v2287_v21, %v7916_v11  ;;  %v5136_v58 = vcombine.low %v2236_v32, %v2246_v26  ;;  %v2339_v32 = vshll.u32 %v6262_v48, 16  ;;  %v2347_v39 = vshll.u32 %v5118_v56, 16 }
 0x13c   : > { %5872 = vmatmul.mubr.msk.bf16.gmra.mrb[4].mxu0 %vm658_vm4, %v5407_v41  ;;  %v6258_v41 = vld [vmem:[%s6338_s25 + $0x94] sm:$0xf] }
 0x13d   : > { %5718 = vmatmul.mubr.msk.bf16.gmra.mrb[20].mxu1 %vm658_vm4, %v6210_v12  ;;  %5875 = vmatprep.mubr.msk.bf16.mxu0 %vm658_vm4, %v5408_v14  ;;  %v2277_v14 = vrot.slane %v2275_v5, 5  ;;  %v2305_v12 = vshll.u32 %v6258_v41, 16  ;;  %v2309_v29 = vshrl.u32 %v6258_v41, 16  ;;  %v2344_v41 = vshrl.u32 %v5118_v56, 16  ;;  %v5124_v56 = vld [vmem:[%s6338_s25 + $0xc0] sm:$0xf] }
 0x13e   : > { %5721 = vmatprep.mubr.msk.bf16.mxu1 %vm658_vm4, %v6211_v59  ;;  %v2320_v59 = vshrl.u32 %v5115_v3, 16  ;;  %v6261_v3 = vld [vmem:[%s6338_s25 + $0x98] sm:$0x1] }
 0x13f   : > { %v2278_v2 = vor.u32 %v2277_v14, %v2274_v34  ;;  %v7936_v36 = vrot.slane %v2305_v12, 5  ;;  %v2289_v34 = vrot.slane %v2288_v9, 4  ;;  %v2302_v14 = vor.u32 %v2301_v60, %v2298_v27  ;;  %v5121_v12 = vld [vmem:[%s6338_s25 + $0xb4] sm:$0xf] }
 0x140   : > { %v2322_v5 = vrot.slane %v2320_v59, 4  ;;  %v2357_v59 = vshrl.u32 %v6263_v8, 16  ;;  %v2368_v35 = vshrl.u32 %v5121_v12, 16  ;;  %v2371_v13 = vshll.u32 %v5121_v12, 16 }
 0x141   : > { %v2279_v25 = vrot.slane %v2278_v2, 4  ;;  %v2294_v26 = vsel %vm6364_vm5, %v2289_v34, %v2293_v30  ;;  %v2303_v6 = vrot.slane %v2302_v14, 4  ;;  %v2341_v9 = vrot.slane %v2339_v32, 5 }
 0x142   : > { %v2326_v51 = vor.u32 %v2325_v20, %v2322_v5  ;;  %v2346_v27 = vrot.slane %v2344_v41, 4  ;;  %v2359_v20 = vrot.slane %v2357_v59, 4  ;;  %v6267_v41 = vld [vmem:[%s6338_s25 + $0xbc] sm:$0x1] }
 0x143   : > { %v2284_v52 = vsel %vm6364_vm5, %v2279_v25, %v7916_v11  ;;  %v2308_v25 = vsel %vm6364_vm5, %v2303_v6, %v7936_v36  ;;  %v2387_v7 = vshll.u32 %v6267_v41, 16 }
 0x144   : > { %5876 = vmatmul.mubr.msk.bf16.gmra.mrb[8].mxu0 %vm658_vm4, %v5409_v16  ;;  %v2329_v16 = vshll.u32 %v6260_v0, 16  ;;  %v2327_v2 = vrot.slane %v2326_v51, 4  ;;  %v5138_v11 = vcombine.low %v2284_v52, %v2294_v26 }
 0x145   : > { %5722 = vmatmul.mubr.msk.bf16.gmra.mrb[24].mxu1 %vm658_vm4, %v6212_v23  ;;  %5879 = vmatprep.mubr.msk.bf16.mxu0 %vm658_vm4, %v5410_v28  ;;  %v2311_v28 = vrot.slane %v2309_v29, 4  ;;  %v2335_v23 = vrot.slane %v2333_v45, 4 }
 0x146   : > { %5725 = vmatprep.mubr.msk.bf16.mxu1 %vm658_vm4, %v6213_v4  ;;  %v7939_v57 = vrot.slane %v2329_v16, 5  ;;  %v2315_v4 = vshll.u32 %v6261_v3, 16 }
 0x147   : > { %v2312_v21 = vor.u32 %v2311_v28, %v7936_v36  ;;  %v2349_v28 = vrot.slane %v2347_v39, 5  ;;  %v6265_v36 = vld [vmem:[%s6338_s25 + $0xb0] sm:$0x1] }
 0x148   : > { %v2336_v29 = vor.u32 %v2335_v23, %v7939_v57  ;;  %v2317_v19 = vrot.slane %v2315_v4, 5  ;;  %v2332_v14 = vsel %vm6364_vm5, %v2327_v2, %v7939_v57  ;;  %v2363_v3 = vshll.u32 %v6265_v36, 16 }
 0x149   : > { %v2313_v45 = vrot.slane %v2312_v21, 4  ;;  %v2350_v62 = vor.u32 %v2349_v28, %v2346_v27  ;;  %v2392_v4 = vshrl.u32 %v5124_v56, 16  ;;  %v2395_v57 = vshll.u32 %v5124_v56, 16  ;;  %v6266_v21 = vld [vmem:[%s6338_s25 + $0xc4] sm:$0xf] }
 0x14a   : > { %v2337_v60 = vrot.slane %v2336_v29, 4  ;;  %v2401_v51 = vshll.u32 %v6266_v21, 16  ;;  %v2405_v48 = vshrl.u32 %v6266_v21, 16  ;;  %v2365_v39 = vrot.slane %v2363_v3, 5 }
 0x14b   : > { %v2318_v34 = vsel %vm6364_vm5, %v2313_v45, %v2317_v19  ;;  %v2351_v12 = vrot.slane %v2350_v62, 4  ;;  %v2389_v19 = vrot.slane %v2387_v7, 5  ;;  %v2413_v2 = vrot.slane %v2411_v15, 5 }
 0x14c   : > { %5880 = vmatmul.mubr.msk.bf16.gmra.mrb[12].mxu0 %vm658_vm4, %v5411_v63  ;;  %v2353_v63 = vshll.u32 %v6263_v8, 16  ;;  %v2342_v22 = vsel %vm6364_vm5, %v2337_v60, %v2341_v9  ;;  %v5139_v33 = vcombine.low %v2308_v25, %v2318_v34  ;;  %v2394_v8 = vrot.slane %v2392_v4, 4 }
 0x14d   : > { %5726 = vmatmul.mubr.msk.bf16.gmra.mrb[28].mxu1 %vm658_vm4, %v6214_v50  ;;  %5883 = vmatprep.mubr.msk.bf16.mxu0 %vm658_vm4, %v5412_v46  ;;  %v6264_v46 = vld [vmem:[%s6338_s25 + $0xb8] sm:$0xf]  ;;  %v2370_v50 = vrot.slane %v2368_v35, 4  ;;  %v2403_v59 = vrot.slane %v2401_v51, 5  ;;  %v2407_v52 = vrot.slane %v2405_v48, 4 }
 0x14e   : > { %5747 = vmatprep.mubr.msk.bf16.mxu1 %vm658_vm4, %v5136_v58  ;;  %v2377_v0 = vshll.u32 %v6264_v46, 16  ;;  %v2381_v16 = vshrl.u32 %v6264_v46, 16  ;;  %v2355_v5 = vrot.slane %v2353_v63, 5  ;;  %v2373_v58 = vrot.slane %v2371_v13, 5 }
 0x14f   : > { %v2397_v63 = vrot.slane %v2395_v57, 5 }
 0x150   : > { %v2379_v30 = vrot.slane %v2377_v0, 5  ;;  %v2383_v23 = vrot.slane %v2381_v16, 4  ;;  %v2356_v35 = vsel %vm6364_vm5, %v2351_v12, %v2355_v5  ;;  %v2408_v0 = vor.u32 %v2407_v52, %v2403_v59 }
 0x151   : > { %v2398_v46 = vor.u32 %v2397_v63, %v2394_v8 }
 0x152   : > { %v2384_v32 = vor.u32 %v2383_v23, %v2379_v30  ;;  %v2409_v45 = vrot.slane %v2408_v0, 4  ;;  %v8038_v23 = vld [vmem:[%s8119_s2] ss:$0 sm:$0xff] }
 0x153   : > { %v2399_v16 = vrot.slane %v2398_v46, 4 }
 0x154   : > { %5884 = vmatmul.mubr.msk.bf16.gmra.mrb[16].mxu0 %vm658_vm4, %v5413_v43  ;;  %v2360_v43 = vor.u32 %v2359_v20, %v2355_v5  ;;  %v2385_v6 = vrot.slane %v2384_v32, 4  ;;  %v2414_v27 = vsel %vm6364_vm5, %v2409_v45, %v2413_v2 }
 0x155   : > { %5748 = vmatmul.mubr.msk.bf16.vlgmr.msra.gmra.mrb[16].mxu1 %vm658_vm4, %v7745_v42  ;;  %5887 = vmatprep.mubr.msk.bf16.mxu0 %vm658_vm4, %v5414_v18  ;;  %v2374_v42 = vor.u32 %v2373_v58, %v2370_v50  ;;  %v5140_v18 = vcombine.low %v2332_v14, %v2342_v22  ;;  %v2404_v9 = vsel %vm6364_vm5, %v2399_v16, %v2403_v59 }
 0x156   : > { %5751 = vmatprep.mubr.msk.bf16.mxu1 %vm658_vm4, %v5138_v11  ;;  %v2361_v29 = vrot.slane %v2360_v43, 4  ;;  %v2390_v17 = vsel %vm6364_vm5, %v2385_v6, %v2389_v19  ;;  %v5143_v60 = vcombine.low %v2404_v9, %v2414_v27 }
 0x157   : > { %v2375_v26 = vrot.slane %v2374_v42, 4 }
 0x158   : > { %v2366_v13 = vsel %vm6364_vm5, %v2361_v29, %v2365_v39 }
 0x159   : > { %v5141_v55 = vcombine.low %v2356_v35, %v2366_v13 }
 0x15c   : > { %5888 = vmatmul.mubr.msk.bf16.gmra.mrb[20].mxu0 %vm658_vm4, %v5415_v24  ;;  %v2380_v24 = vsel %vm6364_vm5, %v2375_v26, %v2379_v30 }
 0x15d   : > { %5752 = vmatmul.mubr.msk.bf16.gmra.mrb[20].mxu1 %vm658_vm4, %v5139_v33  ;;  %5891 = vmatprep.mubr.msk.bf16.mxu0 %vm658_vm4, %v5416_v38  ;;  %v5142_v38 = vcombine.low %v2380_v24, %v2390_v17 }
 0x15e   : > { %5755 = vmatprep.mubr.msk.bf16.mxu1 %vm658_vm4, %v5140_v18 }
 0x164   : > { %5892 = vmatmul.mubr.msk.bf16.gmra.mrb[24].mxu0 %vm658_vm4, %v5417_v1 }
 0x165   : > { %5756 = vmatmul.mubr.msk.bf16.gmra.mrb[24].mxu1 %vm658_vm4, %v5141_v55  ;;  %5895 = vmatprep.mubr.msk.bf16.mxu0 %vm658_vm4, %v5418_v44 }
 0x166   : > { %5759 = vmatprep.mubr.msk.bf16.mxu1 %vm658_vm4, %v5142_v38 }
 0x16c   : > { %5896 = vmatmul.mubr.msk.bf16.gmra.mrb[28].mxu0 %vm658_vm4, %v5419_v31 }
 0x16d   : > { %5760 = vmatmul.mubr.msk.bf16.gmra.mrb[28].mxu1 %vm658_vm4, %v5143_v60 }
 0x1e8   : > { %v5699_v54 = vpop.f32.mrb[0].mxu1 }
 0x1e9   : > { %v1824_v61 = vpop.f32.mrb[1].mxu1 }
 0x1ea   : > { %v5700_v1 = vpop.f32.mrb[2].mxu1 }
 0x1eb   : > { %v1827_v53 = vpop.f32.mrb[3].mxu1 }
 0x1f0   : > { %v5703_v40 = vpop.f32.mrb[4].mxu1 }
 0x1f1   : > { %v1840_v44 = vpop.f32.mrb[5].mxu1 }
 0x1f2   : > { %v5704_v28 = vpop.f32.mrb[6].mxu1 }
 0x1f3   : > { %v1843_v5 = vpop.f32.mrb[7].mxu1 }
 0x1f8   : > { %v5707_v20 = vpop.f32.mrb[8].mxu1 }
 0x1f9   : > { %v1856_v37 = vpop.f32.mrb[9].mxu1 }
 0x1fa   : > { %v5708_v11 = vpop.f32.mrb[10].mxu1 }
 0x1fb   : > { %v1859_v50 = vpop.f32.mrb[11].mxu1 }
 0x200   : > { %v8027_v58 = vpop.f32.mrb[12].mxu1 }
 0x201   : > { %v8029_v49 = vpop.f32.mrb[13].mxu1 }
 0x202   : > { %v8031_v47 = vpop.f32.mrb[14].mxu1 }
 0x203   : > { %v8033_v31 = vpop.f32.mrb[15].mxu1 }
 0x207   : > { %v5869_v30 = vpop.f32.mrb[0].mxu0 }
 0x208   : > { %v5901_v56 = vadd.f32 %v5869_v30, %v5699_v54  ;;  %v4575_v25 = vpop.f32.mrb[1].mxu0 }
 0x209   : > { %v5902_v34 = vadd.f32 %v4575_v25, %v1824_v61  ;;  %v5870_v14 = vpop.f32.mrb[2].mxu0 }
 0x20a   : > { %v4743_v22 = vadd.f32 %v5901_v56, %v8038_v23  ;;  %v5903_v62 = vadd.f32 %v5870_v14, %v5700_v1  ;;  %v4578_v43 = vpop.f32.mrb[3].mxu0 }
 0x20b   : > { %v4741_v36 = vadd.f32 %v5902_v34, %v8038_v23  ;;  %v5904_v3 = vadd.f32 %v4578_v43, %v1827_v53 }
 0x20c   : > { %v4775_v4 = vmax.f32 %v4743_v22, 0.0  ;;  %v4744_v57 = vadd.f32 %v5903_v62, %v8038_v23 }
 0x20d   : > { %v4773_v21 = vmax.f32 %v4741_v36, 0.0  ;;  %v4742_v51 = vadd.f32 %v5904_v3, %v8038_v23 }
 0x20e   : > { %4807 = vst [vmem:[%s8045_s16 + $0x10] sm:$0xff] %v4775_v4  ;;  %v4776_v48 = vmax.f32 %v4744_v57, 0.0 }
 0x20f   : > { %4805 = vst [vmem:[%s8045_s16] sm:$0xff] %v4773_v21  ;;  %v4774_v42 = vmax.f32 %v4742_v51, 0.0  ;;  %v5873_v32 = vpop.f32.mrb[4].mxu0 }
 0x210   : > { %4808 = vst [vmem:[%s8045_s16 + $0x18] sm:$0xff] %v4776_v48  ;;  %v5905_v41 = vadd.f32 %v5873_v32, %v5703_v40  ;;  %v4591_v7 = vpop.f32.mrb[5].mxu0 }
 0x211   : > { %4806 = vst [vmem:[%s8045_s16 + $0x8] sm:$0xff] %v4774_v42  ;;  %v5906_v33 = vadd.f32 %v4591_v7, %v1840_v44  ;;  %v5874_v18 = vpop.f32.mrb[6].mxu0 }
 0x212   : > { %v4747_v12 = vadd.f32 %v5905_v41, %v8038_v23  ;;  %v5907_v29 = vadd.f32 %v5874_v18, %v5704_v28  ;;  %v4594_v39 = vpop.f32.mrb[7].mxu0 }
 0x213   : > { %v4745_v8 = vadd.f32 %v5906_v33, %v8038_v23  ;;  %v5908_v63 = vadd.f32 %v4594_v39, %v1843_v5 }
 0x214   : > { %v4779_v59 = vmax.f32 %v4747_v12, 0.0  ;;  %v4748_v52 = vadd.f32 %v5907_v29, %v8038_v23 }
 0x215   : > { %v4777_v26 = vmax.f32 %v4745_v8, 0.0  ;;  %v4746_v6 = vadd.f32 %v5908_v63, %v8038_v23 }
 0x216   : > { %4811 = vst [vmem:[%s8045_s16 + $0x30] sm:$0xff] %v4779_v59  ;;  %v4780_v19 = vmax.f32 %v4748_v52, 0.0 }
 0x217   : > { %4809 = vst [vmem:[%s8045_s16 + $0x20] sm:$0xff] %v4777_v26  ;;  %v4778_v35 = vmax.f32 %v4746_v6, 0.0  ;;  %v5877_v13 = vpop.f32.mrb[8].mxu0 }
 0x218   : > { %4812 = vst [vmem:[%s8045_s16 + $0x38] sm:$0xff] %v4780_v19  ;;  %v5909_v46 = vadd.f32 %v5877_v13, %v5707_v20  ;;  %v4607_v0 = vpop.f32.mrb[9].mxu0 }
 0x219   : > { %4810 = vst [vmem:[%s8045_s16 + $0x28] sm:$0xff] %v4778_v35  ;;  %v5910_v10 = vadd.f32 %v4607_v0, %v1856_v37  ;;  %v5878_v15 = vpop.f32.mrb[10].mxu0 }
 0x21a   : > { %v4751_v24 = vadd.f32 %v5909_v46, %v8038_v23  ;;  %v5911_v17 = vadd.f32 %v5878_v15, %v5708_v11  ;;  %v4610_v55 = vpop.f32.mrb[11].mxu0 }
 0x21b   : > { %v4749_v38 = vadd.f32 %v5910_v10, %v8038_v23  ;;  %v5912_v16 = vadd.f32 %v4610_v55, %v1859_v50 }
 0x21c   : > { %v4783_v45 = vmax.f32 %v4751_v24, 0.0  ;;  %v4752_v2 = vadd.f32 %v5911_v17, %v8038_v23 }
 0x21d   : > { %v4781_v9 = vmax.f32 %v4749_v38, 0.0  ;;  %v4750_v27 = vadd.f32 %v5912_v16, %v8038_v23 }
 0x21e   : > { %4815 = vst [vmem:[%s8045_s16 + $0x50] sm:$0xff] %v4783_v45  ;;  %v4784_v60 = vmax.f32 %v4752_v2, 0.0 }
 0x21f   : > { %4813 = vst [vmem:[%s8045_s16 + $0x40] sm:$0xff] %v4781_v9  ;;  %v4782_v54 = vmax.f32 %v4750_v27, 0.0  ;;  %v5881_v61 = vpop.f32.mrb[12].mxu0 }
 0x220   : > { %4816 = vst [vmem:[%s8045_s16 + $0x58] sm:$0xff] %v4784_v60  ;;  %v5913_v1 = vadd.f32 %v5881_v61, %v8027_v58  ;;  %v4623_v53 = vpop.f32.mrb[13].mxu0 }
 0x221   : > { %4814 = vst [vmem:[%s8045_s16 + $0x48] sm:$0xff] %v4782_v54  ;;  %v5914_v40 = vadd.f32 %v4623_v53, %v8029_v49  ;;  %v5882_v44 = vpop.f32.mrb[14].mxu0 }
 0x222   : > { %v4755_v28 = vadd.f32 %v5913_v1, %v8038_v23  ;;  %v5915_v5 = vadd.f32 %v5882_v44, %v8031_v47  ;;  %v4626_v20 = vpop.f32.mrb[15].mxu0 }
 0x223   : > { %v4753_v37 = vadd.f32 %v5914_v40, %v8038_v23  ;;  %v5916_v11 = vadd.f32 %v4626_v20, %v8033_v31 }
 0x224   : > { %v4787_v50 = vmax.f32 %v4755_v28, 0.0  ;;  %v4756_v58 = vadd.f32 %v5915_v5, %v8038_v23 }
 0x225   : > { %v4785_v30 = vmax.f32 %v4753_v37, 0.0  ;;  %v4754_v56 = vadd.f32 %v5916_v11, %v8038_v23 }
 0x226   : > { %4819 = vst [vmem:[%s8045_s16 + $0x70] sm:$0xff] %v4787_v50  ;;  %v4788_v49 = vmax.f32 %v4756_v58, 0.0 }
 0x227   : > { %4817 = vst [vmem:[%s8045_s16 + $0x60] sm:$0xff] %v4785_v30  ;;  %v4786_v25 = vmax.f32 %v4754_v56, 0.0  ;;  %v5885_v34 = vpop.f32.mrb[16].mxu0 }
 0x228   : > { %4820 = vst [vmem:[%s8045_s16 + $0x78] sm:$0xff] %v4788_v49  ;;  %v5749_v14 = vpop.f32.mrb[16].mxu1  ;;  %v4639_v47 = vpop.f32.mrb[17].mxu0 }
 0x229   : > { %4818 = vst [vmem:[%s8045_s16 + $0x68] sm:$0xff] %v4786_v25  ;;  %v5917_v22 = vadd.f32 %v5885_v34, %v5749_v14  ;;  %v2614_v62 = vpop.f32.mrb[17].mxu1  ;;  %v5886_v43 = vpop.f32.mrb[18].mxu0 }
 0x22a   : > { %v5918_v31 = vadd.f32 %v4639_v47, %v2614_v62  ;;  %v5750_v36 = vpop.f32.mrb[18].mxu1  ;;  %v4642_v3 = vpop.f32.mrb[19].mxu0 }
 0x22b   : > { %v4759_v4 = vadd.f32 %v5917_v22, %v8038_v23  ;;  %v5919_v57 = vadd.f32 %v5886_v43, %v5750_v36  ;;  %v2617_v21 = vpop.f32.mrb[19].mxu1 }
 0x22c   : > { %v4757_v51 = vadd.f32 %v5918_v31, %v8038_v23  ;;  %v5920_v48 = vadd.f32 %v4642_v3, %v2617_v21 }
 0x22d   : > { %v4791_v42 = vmax.f32 %v4759_v4, 0.0  ;;  %v4760_v32 = vadd.f32 %v5919_v57, %v8038_v23 }
 0x22e   : > { %v4789_v41 = vmax.f32 %v4757_v51, 0.0  ;;  %v4758_v7 = vadd.f32 %v5920_v48, %v8038_v23 }
 0x22f   : > { %4823 = vst [vmem:[%s8045_s16 + $0x90] sm:$0xff] %v4791_v42  ;;  %v4792_v33 = vmax.f32 %v4760_v32, 0.0  ;;  %v5889_v18 = vpop.f32.mrb[20].mxu0 }
 0x230   : > { %4821 = vst [vmem:[%s8045_s16 + $0x80] sm:$0xff] %v4789_v41  ;;  %v4790_v12 = vmax.f32 %v4758_v7, 0.0  ;;  %v5753_v29 = vpop.f32.mrb[20].mxu1  ;;  %v4655_v39 = vpop.f32.mrb[21].mxu0 }
 0x231   : > { %4824 = vst [vmem:[%s8045_s16 + $0x98] sm:$0xff] %v4792_v33  ;;  %v5921_v8 = vadd.f32 %v5889_v18, %v5753_v29  ;;  %v2630_v63 = vpop.f32.mrb[21].mxu1  ;;  %v5890_v59 = vpop.f32.mrb[22].mxu0 }
 0x232   : > { %4822 = vst [vmem:[%s8045_s16 + $0x88] sm:$0xff] %v4790_v12  ;;  %v5922_v52 = vadd.f32 %v4655_v39, %v2630_v63  ;;  %v5754_v26 = vpop.f32.mrb[22].mxu1  ;;  %v4658_v6 = vpop.f32.mrb[23].mxu0 }
 0x233   : > { %v4763_v19 = vadd.f32 %v5921_v8, %v8038_v23  ;;  %v5923_v35 = vadd.f32 %v5890_v59, %v5754_v26  ;;  %v2633_v13 = vpop.f32.mrb[23].mxu1 }
 0x234   : > { %v4761_v46 = vadd.f32 %v5922_v52, %v8038_v23  ;;  %v5924_v0 = vadd.f32 %v4658_v6, %v2633_v13 }
 0x235   : > { %v4795_v10 = vmax.f32 %v4763_v19, 0.0  ;;  %v4764_v15 = vadd.f32 %v5923_v35, %v8038_v23 }
 0x236   : > { %v4793_v24 = vmax.f32 %v4761_v46, 0.0  ;;  %v4762_v17 = vadd.f32 %v5924_v0, %v8038_v23 }
 0x237   : > { %4827 = vst [vmem:[%s8045_s16 + $0xb0] sm:$0xff] %v4795_v10  ;;  %v4796_v55 = vmax.f32 %v4764_v15, 0.0  ;;  %v5893_v38 = vpop.f32.mrb[24].mxu0 }
 0x238   : > { %4825 = vst [vmem:[%s8045_s16 + $0xa0] sm:$0xff] %v4793_v24  ;;  %v4794_v16 = vmax.f32 %v4762_v17, 0.0  ;;  %v5757_v45 = vpop.f32.mrb[24].mxu1  ;;  %v4671_v2 = vpop.f32.mrb[25].mxu0 }
 0x239   : > { %4828 = vst [vmem:[%s8045_s16 + $0xb8] sm:$0xff] %v4796_v55  ;;  %v5925_v9 = vadd.f32 %v5893_v38, %v5757_v45  ;;  %v2646_v27 = vpop.f32.mrb[25].mxu1  ;;  %v5894_v60 = vpop.f32.mrb[26].mxu0 }
 0x23a   : > { %4826 = vst [vmem:[%s8045_s16 + $0xa8] sm:$0xff] %v4794_v16  ;;  %v5926_v54 = vadd.f32 %v4671_v2, %v2646_v27  ;;  %v5758_v61 = vpop.f32.mrb[26].mxu1  ;;  %v4674_v1 = vpop.f32.mrb[27].mxu0 }
 0x23b   : > { %v4767_v53 = vadd.f32 %v5925_v9, %v8038_v23  ;;  %v5927_v40 = vadd.f32 %v5894_v60, %v5758_v61  ;;  %v2649_v44 = vpop.f32.mrb[27].mxu1 }
 0x23c   : > { %v4765_v28 = vadd.f32 %v5926_v54, %v8038_v23  ;;  %v5928_v5 = vadd.f32 %v4674_v1, %v2649_v44 }
 0x23d   : > { %v4799_v20 = vmax.f32 %v4767_v53, 0.0  ;;  %v4768_v37 = vadd.f32 %v5927_v40, %v8038_v23 }
 0x23e   : > { %v4797_v11 = vmax.f32 %v4765_v28, 0.0  ;;  %v4766_v50 = vadd.f32 %v5928_v5, %v8038_v23 }
 0x23f   : > { %4831 = vst [vmem:[%s8045_s16 + $0xd0] sm:$0xff] %v4799_v20  ;;  %v4800_v58 = vmax.f32 %v4768_v37, 0.0  ;;  %v5897_v30 = vpop.f32.mrb[28].mxu0 }
 0x240   : > { %4829 = vst [vmem:[%s8045_s16 + $0xc0] sm:$0xff] %v4797_v11  ;;  %v4798_v56 = vmax.f32 %v4766_v50, 0.0  ;;  %v5761_v49 = vpop.f32.mrb[28].mxu1  ;;  %v4687_v25 = vpop.f32.mrb[29].mxu0 }
 0x241   : > { %4832 = vst [vmem:[%s8045_s16 + $0xd8] sm:$0xff] %v4800_v58  ;;  %v5929_v34 = vadd.f32 %v5897_v30, %v5761_v49  ;;  %v2662_v14 = vpop.f32.mrb[29].mxu1  ;;  %v5898_v47 = vpop.f32.mrb[30].mxu0 }
 0x242   : > { %4830 = vst [vmem:[%s8045_s16 + $0xc8] sm:$0xff] %v4798_v56  ;;  %v5930_v22 = vadd.f32 %v4687_v25, %v2662_v14  ;;  %v5762_v62 = vpop.f32.mrb[30].mxu1  ;;  %v4690_v43 = vpop.f32.mrb[31].mxu0 }
 0x243   : > { %v4771_v31 = vadd.f32 %v5929_v34, %v8038_v23  ;;  %v5931_v36 = vadd.f32 %v5898_v47, %v5762_v62  ;;  %v2665_v3 = vpop.f32.mrb[31].mxu1 }
 0x244   : > { %v4769_v4 = vadd.f32 %v5930_v22, %v8038_v23  ;;  %v5932_v57 = vadd.f32 %v4690_v43, %v2665_v3 }
 0x245   : > { %v4803_v21 = vmax.f32 %v4771_v31, 0.0  ;;  %v4772_v51 = vadd.f32 %v5931_v36, %v8038_v23 }
 0x246   : > { %v4801_v48 = vmax.f32 %v4769_v4, 0.0  ;;  %v4770_v42 = vadd.f32 %v5932_v57, %v8038_v23 }
 0x247   : > { %4835 = vst [vmem:[%s8045_s16 + $0xf0] sm:$0xff] %v4803_v21  ;;  %v4804_v32 = vmax.f32 %v4772_v51, 0.0 }
 0x248   : > { %4833 = vst [vmem:[%s8045_s16 + $0xe0] sm:$0xff] %v4801_v48  ;;  %v4802_v41 = vmax.f32 %v4770_v42, 0.0 }
 0x249   : > { %4836 = vst [vmem:[%s8045_s16 + $0xf8] sm:$0xff] %v4804_v32 }
 0x24a   : > { %4834 = vst [vmem:[%s8045_s16 + $0xe8] sm:$0xff] %v4802_v41 }
 0x24b PF: > { %s13_s12 = sadd.s32 1, %s6275_s12  }
 0x24c   : > { %p10_p4 = scmp.ge.s32.totalorder %s13_s12, 4  }
 0x24e   :  { %12 = sbr.rel (!%p10_p4) target bundleno = 1 (0x1), region = 72 }

// kernel: _forward.5
= control target key start
LH: loop header
LB: loop body
LE: loop exit
PB: predicated region body
PF: predicated region fallthrough
CT: control target
= control target key end

     0   :  { %s2252_s12 = smov 0   ;;  %s2753_s0 = inlined_call_operand.vmem [shape: bf16[2,10,10,16], index: 0, kind: input, shape index: {}]   ;;  %s2754_s1 = inlined_call_operand.vmem [shape: bf16[9,16,128], index: 1, kind: input, shape index: {}]   ;;  %s2755_s2 = inlined_call_operand.vmem [shape: f32[1,128], index: 2, kind: input, shape index: {}]   ;;  %s2756_s3 = inlined_call_operand.vmem [shape: f32[2,8,8,128], index: 3, kind: output, shape index: {}]  }
   0x1 LB: > { %s1796_s13 = sadd.s32 4294967295, %s2230_s12   ;;  %p1800_p0 = scmp.ge.s32.totalorder %s2230_s12, 1  ;;  %s2230_s12 = sphi %s2252_s12, %s13_s12  }
   0x2   : > { %p137_p1 = scmp.lt.s32.totalorder %s2230_s12, 3 }
   0x4   : > { %p138_p2 = pnand %p1800_p0, %p137_p1 }
   0x5   : > { %v2203_v0 = vld [vmem:[%s2754_s1 + $0x8] sm:$0xff] (!%p138_p2)   ;;  %p161_p3 = scmp.lt.s32.totalorder (!%p138_p2), %s1796_s13, 1  ;;  %v2266_v1 = vld [vmem:[%s2754_s1 + $0x20] sm:$0xff] (!%p138_p2)   ;;  %vm190_vm0 = vsmask.f32 (!%p138_p2), 3328  ;;  %vm326_vm2 = vcmask (!%p138_p2), 130048  }
   0x6   : > { %141 = sbr.rel (%p138_p2) target bundleno = 337 (0x151), region = 32  ;;  %2038 = vmatprep.subr.bf16.mxu1 (!%p138_p2), %v2203_v0  ;;  %v2273_v2 = vld [vmem:[%s2754_s1] sm:$0xff] (!%p138_p2)   ;;  %2078 = vmatprep.subr.bf16.mxu0 (!%p138_p2), %v2266_v1  ;;  %v2282_v3 = vld [vmem:[%s2754_s1 + $0x28] sm:$0xff] (!%p138_p2)   ;;  %vm191_vm1 = vsmask.f32 (!%p138_p2), 7440  ;;  %vm531_vm4 = vcmask (!%p138_p2), 1042432  }
   0x7   : > { %2039 = vmatpush3.bf16.msra.mxu1 (!%p138_p2), %v2203_v0  ;;  %2079 = vmatpush3.bf16.msra.mxu0 (!%p138_p2), %v2266_v1  ;;  %vm2319_vm3 = vmor (!%p138_p2), %vm190_vm0, %vm191_vm1  ;;  %vm532_vm5 = vcmask (!%p138_p2), 1046532  }
   0x8   : > { %2048 = vmatprep.subr.bf16.mxu1 (!%p138_p2), %v2273_v2  ;;  %2088 = vmatprep.subr.bf16.mxu0 (!%p138_p2), %v2282_v3  ;;  %vm2429_vm6 = vmor (!%p138_p2), %vm531_vm4, %vm532_vm5 }
   0xd   : > { %s2762_s13 = smov (!%p161_p3, %s1796_s13), 1 }
   0xe   : > { %s2194_s20 = smul.u32 80, %s2762_s13  ;;  %s1992_s11 = sshll.u32 %s2762_s13, 6 }
   0xf   : > { %s2740_s16 = scalar_lea.vmem %s2756_s3, %s1992_s11 }
  0x10   : > { %s2287_s25 = scalar_lea.vmem %s2753_s0, %s2194_s20 }
  0x11   : > { %v2291_v4 = vld [vmem:[%s2287_s25] sm:$0xf]  ;;  %v2294_v5 = vld [vmem:[%s2287_s25 + $0x8] sm:$0xf]  ;;  %v2297_v6 = vld [vmem:[%s2287_s25 + $0x4] sm:$0x1] }
  0x12   : > { %v2300_v7 = vld [vmem:[%s2287_s25 + $0xc] sm:$0x1]  ;;  %v194_v8 = vshrl.u32 %v2291_v4, 16  ;;  %v197_v9 = vshll.u32 %v2291_v4, 16  ;;  %v203_v10 = vshll.u32 %v2297_v6, 16  ;;  %v208_v11 = vshrl.u32 %v2294_v5, 16 }
  0x13   : > { %v211_v12 = vshll.u32 %v2294_v5, 16  ;;  %v217_v13 = vshll.u32 %v2300_v7, 16  ;;  %v1862_v14 = vld [vmem:[%s2287_s25 + $0x8] sm:$0xf]  ;;  %v2310_v19 = vld [vmem:[%s2287_s25 + $0xc] sm:$0x1] }
  0x14   : > { %v196_v15 = vrot.slane %v194_v8, 4  ;;  %v199_v16 = vrot.slane %v197_v9, 5  ;;  %v205_v17 = vrot.slane %v203_v10, 5  ;;  %v210_v18 = vrot.slane %v208_v11, 4  ;;  %v1864_v22 = vld [vmem:[%s2287_s25 + $0x10] sm:$0xf] }
  0x15   : > { %v213_v20 = vrot.slane %v211_v12, 5  ;;  %v219_v21 = vrot.slane %v217_v13, 5  ;;  %v2314_v23 = vld [vmem:[%s2287_s25 + $0x14] sm:$0x1]  ;;  %v812_v25 = vshrl.u32 %v1862_v14, 16  ;;  %v815_v26 = vshll.u32 %v1862_v14, 16 }
  0x16   : > { %v200_v24 = vor.u32 %v199_v16, %v196_v15  ;;  %v821_v27 = vshll.u32 %v2310_v19, 16  ;;  %v826_v30 = vshrl.u32 %v1864_v22, 16  ;;  %v829_v31 = vshll.u32 %v1864_v22, 16  ;;  %v2325_v33 = vld [vmem:[%s2287_s25 + $0x10] sm:$0xf] }
  0x17   : > { %v214_v29 = vor.u32 %v213_v20, %v210_v18  ;;  %v835_v32 = vshll.u32 %v2314_v23, 16  ;;  %v536_v35 = vrot.slane %v2297_v6, 5  ;;  %v814_v36 = vrot.slane %v812_v25, 4  ;;  %v2329_v38 = vld [vmem:[%s2287_s25 + $0x18] sm:$0xf] }
  0x18   : > { %v201_v34 = vrot.slane %v200_v24, 4  ;;  %v817_v37 = vrot.slane %v815_v26, 5  ;;  %v540_v40 = vrot.slane %v2300_v7, 5  ;;  %v828_v41 = vrot.slane %v826_v30, 4  ;;  %v2333_v43 = vld [vmem:[%s2287_s25 + $0x14] sm:$0x1] }
  0x19   : > { %v215_v39 = vrot.slane %v214_v29, 4  ;;  %v831_v42 = vrot.slane %v829_v31, 5  ;;  %v823_v46 = vrot.slane %v821_v27, 5  ;;  %v837_v47 = vrot.slane %v835_v32, 5  ;;  %v2340_v50 = vld [vmem:[%s2287_s25 + $0x1c] sm:$0x1] }
  0x1a   : > { %v206_v44 = vsel %vm2319_vm3, %v201_v34, %v205_v17  ;;  %v818_v45 = vor.u32 %v817_v37, %v814_v36  ;;  %v222_v51 = vshrl.u32 %v2325_v33, 16  ;;  %v225_v52 = vshll.u32 %v2325_v33, 16  ;;  %v1866_v61 = vld [vmem:[%s2287_s25 + $0x18] sm:$0xf]  ;;  %v2354_v9 = vld [vmem:[%s2287_s25 + $0x1c] sm:$0x1] }
  0x1b   : > { %v220_v48 = vsel %vm2319_vm3, %v215_v39, %v219_v21  ;;  %v832_v49 = vor.u32 %v831_v42, %v828_v41  ;;  %v231_v55 = vshll.u32 %v2333_v43, 16  ;;  %v236_v56 = vshrl.u32 %v2329_v38, 16  ;;  %v1868_v14 = vld [vmem:[%s2287_s25 + $0x20] sm:$0xf]  ;;  %v2360_v15 = vld [vmem:[%s2287_s25 + $0x24] sm:$0x1] }
  0x1c   : > { %v1806_v53 = vcombine.low %v206_v44, %v220_v48  ;;  %v819_v54 = vrot.slane %v818_v45, 4  ;;  %v224_v58 = vrot.slane %v222_v51, 4  ;;  %v227_v59 = vrot.slane %v225_v52, 5  ;;  %v2367_v31 = vld [vmem:[%s2287_s25 + $0x20] sm:$0xf] }
  0x1d   : > { %v833_v57 = vrot.slane %v832_v49, 4  ;;  %v239_v60 = vshll.u32 %v2329_v38, 16  ;;  %v1055_v63 = vrot.slane %v2310_v19, 5  ;;  %v238_v0 = vrot.slane %v236_v56, 4  ;;  %v2372_v39 = vld [vmem:[%s2287_s25 + $0x24] sm:$0x1] }
  0x1e   : > { %2040 = vmatprep.mubr.msk.bf16.mxu1 %vm326_vm2, %v1806_v53  ;;  %v824_v62 = vsel %vm2319_vm3, %v819_v54, %v823_v46  ;;  %v245_v8 = vshll.u32 %v2340_v50, 16  ;;  %v228_v11 = vor.u32 %v227_v59, %v224_v58  ;;  %v233_v12 = vrot.slane %v231_v55, 5  ;;  %v2376_v46 = vld [vmem:[%s2287_s25 + $0x28] sm:$0xf]  ;;  %v2382_v51 = vld [vmem:[%s2287_s25 + $0x2c] sm:$0x1] }
  0x1f   : > { %v838_v10 = vsel %vm2319_vm3, %v833_v57, %v837_v47  ;;  %v241_v13 = vrot.slane %v239_v60, 5  ;;  %v1059_v17 = vrot.slane %v2314_v23, 5  ;;  %v840_v20 = vshrl.u32 %v1866_v61, 16  ;;  %v2388_v57 = vld [vmem:[%s2287_s25 + $0x30] sm:$0xf] }
  0x20   : > { %v1880_v16 = vcombine.low %v824_v62, %v838_v10  ;;  %v247_v18 = vrot.slane %v245_v8, 5  ;;  %v229_v21 = vrot.slane %v228_v11, 4  ;;  %v843_v24 = vshll.u32 %v1866_v61, 16  ;;  %v2393_v58 = vld [vmem:[%s2754_s1 + $0x10] sm:$0xff]  }
  0x21   : > { %v242_v22 = vor.u32 %v241_v13, %v238_v0  ;;  %v849_v25 = vshll.u32 %v2354_v9, 16  ;;  %v842_v26 = vrot.slane %v840_v20, 4  ;;  %v854_v27 = vshrl.u32 %v1868_v14, 16  ;;  %v2398_v0 = vld [vmem:[%s2287_s25 + $0x38] sm:$0xf] }
  0x22   : > { %2080 = vmatprep.mubr.msk.bf16.mxu0 %vm326_vm2, %v1880_v16  ;;  %v857_v29 = vshll.u32 %v1868_v14, 16  ;;  %v863_v30 = vshll.u32 %v2360_v15, 16  ;;  %v234_v32 = vsel %vm2319_vm3, %v229_v21, %v233_v12  ;;  %v845_v36 = vrot.slane %v843_v24, 5  ;;  %v2403_v13 = vld [vmem:[%s2287_s25 + $0x34] sm:$0x1] }
  0x23   : > { %v243_v34 = vrot.slane %v242_v22, 4  ;;  %v851_v37 = vrot.slane %v849_v25, 5  ;;  %v856_v41 = vrot.slane %v854_v27, 4  ;;  %v1063_v45 = vrot.slane %v2354_v9, 5  ;;  %v2409_v20 = vld [vmem:[%s2287_s25 + $0x3c] sm:$0x1] }
  0x24   : > { %v859_v42 = vrot.slane %v857_v29, 5  ;;  %v865_v44 = vrot.slane %v863_v30, 5  ;;  %v846_v48 = vor.u32 %v845_v36, %v842_v26  ;;  %v1067_v49 = vrot.slane %v2360_v15, 5  ;;  %v2415_v22 = vld [vmem:[%s2754_s1 + $0x30] sm:$0xff]   ;;  %v1889_v27 = vld [vmem:[%s2287_s25 + $0x8] sm:$0xe] }
  0x25   : > { %v248_v47 = vsel %vm2319_vm3, %v243_v34, %v247_v18  ;;  %v250_v52 = vshrl.u32 %v2367_v31, 16  ;;  %v253_v55 = vshll.u32 %v2367_v31, 16  ;;  %v259_v56 = vshll.u32 %v2372_v39, 16  ;;  %v1890_v29 = vld [vmem:[%s2287_s25 + $0x10] sm:$0xe] }
  0x26   : > { %v1807_v53 = vcombine.low %v234_v32, %v248_v47  ;;  %v860_v54 = vor.u32 %v859_v42, %v856_v41  ;;  %v847_v59 = vrot.slane %v846_v48, 4  ;;  %v264_v61 = vshrl.u32 %v2376_v46, 16  ;;  %v1989_v48 = vld [vmem:[%s2755_s2] ss:$0 sm:$0xff] }
  0x27   : > { %v252_v60 = vrot.slane %v250_v52, 4  ;;  %v267_v62 = vshll.u32 %v2376_v46, 16  ;;  %v255_v10 = vrot.slane %v253_v55, 5  ;;  %v261_v11 = vrot.slane %v259_v56, 5  ;;  %v1892_v52 = vld [vmem:[%s2287_s25 + $0x20] sm:$0xe] }
  0x28   : > { %2041 = vmatmul.mubr.msk.bf16.vlgmr.msra.gmra.mrb[0].mxu1 %vm326_vm2, %v1807_v53  ;;  %v861_v8 = vrot.slane %v860_v54, 4  ;;  %v273_v12 = vshll.u32 %v2382_v51, 16  ;;  %v852_v14 = vsel %vm2319_vm3, %v847_v59, %v851_v37  ;;  %v266_v16 = vrot.slane %v264_v61, 4  ;;  %v1891_v37 = vld [vmem:[%s2287_s25 + $0x18] sm:$0xe] }
  0x29   : > { %2049 = vmatpush3.bf16.msra.mxu1 %v2273_v2  ;;  %v269_v18 = vrot.slane %v267_v62, 5  ;;  %v278_v21 = vshrl.u32 %v2388_v57, 16  ;;  %v256_v25 = vor.u32 %v255_v10, %v252_v60  ;;  %v281_v26 = vshll.u32 %v2388_v57, 16  ;;  %v1893_v59 = vld [vmem:[%s2287_s25 + $0x28] sm:$0xe] }
  0x2a   : > { %v866_v24 = vsel %vm2319_vm3, %v861_v8, %v865_v44  ;;  %v275_v2 = vrot.slane %v273_v12, 5  ;;  %2058 = vmatprep.subr.bf16.mxu1 %v2393_v58  ;;  %v287_v36 = vshll.u32 %v2403_v13, 16  ;;  %v292_v44 = vshrl.u32 %v2398_v0, 16  ;;  %v2441_v10 = vld [vmem:[%s2287_s25 + $0x2c] sm:$0x1] }
  0x2b   : > { %v1881_v30 = vcombine.low %v852_v14, %v866_v24  ;;  %v270_v32 = vor.u32 %v269_v18, %v266_v16  ;;  %v280_v34 = vrot.slane %v278_v21, 4  ;;  %v257_v41 = vrot.slane %v256_v25, 4  ;;  %v2451_v25 = vld [vmem:[%s2287_s25 + $0x34] sm:$0x1] }
  0x2c   : > { %v283_v42 = vrot.slane %v281_v26, 5  ;;  %v295_v47 = vshll.u32 %v2398_v0, 16  ;;  %v289_v54 = vrot.slane %v287_v36, 5  ;;  %v301_v55 = vshll.u32 %v2409_v20, 16  ;;  %v1894_v26 = vld [vmem:[%s2287_s25 + $0x30] sm:$0xe] }
  0x2d   : > { %2081 = vmatmul.mubr.msk.bf16.vlgmr.msra.gmra.mrb[0].mxu0 %vm326_vm2, %v1881_v30  ;;  %v271_v53 = vrot.slane %v270_v32, 4  ;;  %v1897_v56 = vrot.slane %v1889_v27, 9  ;;  %v262_v60 = vsel %vm2319_vm3, %v257_v41, %v261_v11  ;;  %v294_v62 = vrot.slane %v292_v44, 4  ;;  %v2459_v27 = vld [vmem:[%s2287_s25 + $0x3c] sm:$0x1] }
  0x2e   : > { %2089 = vmatpush3.bf16.msra.mxu0 %v2282_v3  ;;  %v284_v61 = vor.u32 %v283_v42, %v280_v34  ;;  %v297_v8 = vrot.slane %v295_v47, 5  ;;  %v303_v14 = vrot.slane %v301_v55, 5  ;;  %v1898_v3 = vrot.slane %v1890_v29, 9  ;;  %v2469_v34 = vld [vmem:[%s2287_s25 + $0x44] sm:$0x1] }
  0x2f   : > { %v276_v12 = vsel %vm2319_vm3, %v271_v53, %v275_v2  ;;  %v1056_v16 = vsel %vm2429_vm6, %v1897_v56, %v1055_v63  ;;  %2098 = vmatprep.subr.bf16.mxu0 %v2415_v22  ;;  %v1899_v24 = vrot.slane %v1891_v37, 9  ;;  %v1900_v2 = vrot.slane %v1892_v52, 9  ;;  %v1896_v44 = vld [vmem:[%s2287_s25 + $0x40] sm:$0xe]  ;;  %v508_v55 = vld [vmem:[%s2287_s25 + $0x8] sm:$0xe] }
  0x30   : > { %v1808_v11 = vcombine.low %v262_v60, %v276_v12  ;;  %v285_v18 = vrot.slane %v284_v61, 4  ;;  %v298_v21 = vor.u32 %v297_v8, %v294_v62  ;;  %v1060_v19 = vsel %vm2429_vm6, %v1898_v3, %v1059_v17  ;;  %v1895_v17 = vld [vmem:[%s2287_s25 + $0x38] sm:$0xe]  ;;  %v507_v47 = vld [vmem:[%s2287_s25] sm:$0xe] }
  0x31   : > { %v1901_v63 = vrot.slane %v1893_v59, 9  ;;  %v1907_v32 = vcombine.low %v1056_v16, %v1060_v19  ;;  %v1064_v23 = vsel %vm2429_vm6, %v1899_v24, %v1063_v45  ;;  %v1068_v36 = vsel %vm2429_vm6, %v1900_v2, %v1067_v49  ;;  %v2494_v60 = vld [vmem:[%s2754_s1 + $0x38] sm:$0xff]   ;;  %v511_v8 = vld [vmem:[%s2287_s25 + $0x20] sm:$0xe]  ;;  %v512_v3 = vld [vmem:[%s2287_s25 + $0x28] sm:$0xe] }
  0x32   : > { %2044 = vmatprep.mubr.msk.bf16.mxu1 %vm326_vm2, %v1808_v11  ;;  %v290_v29 = vsel %vm2319_vm3, %v285_v18, %v289_v54  ;;  %v299_v30 = vrot.slane %v298_v21, 4  ;;  %v1071_v37 = vrot.slane %v2441_v10, 5  ;;  %v1902_v41 = vrot.slane %v1894_v26, 9  ;;  %v510_v62 = vld [vmem:[%s2287_s25 + $0x18] sm:$0xe] }
  0x33   : > { %v1075_v42 = vrot.slane %v2451_v25, 5  ;;  %2090 = vmatprep.mubr.msk.bf16.mxu0 %vm326_vm2, %v1907_v32  ;;  %v1908_v45 = vcombine.low %v1064_v23, %v1068_v36  ;;  %v1815_v15 = vcombine.low %v2291_v4, %v2294_v5  ;;  %v1903_v54 = vrot.slane %v1895_v17, 9  ;;  %v509_v4 = vld [vmem:[%s2287_s25 + $0x10] sm:$0xe]  ;;  %v2544_v32 = vld [vmem:[%s2287_s25 + $0x38] sm:$0xe] }
  0x34   : > { %v304_v9 = vsel %vm2319_vm3, %v299_v30, %v303_v14  ;;  %v1072_v52 = vsel %vm2429_vm6, %v1901_v63, %v1071_v37  ;;  %v1079_v59 = vrot.slane %v2459_v27, 5  ;;  %v1904_v5 = vrot.slane %v1896_v44, 9  ;;  %v1937_v63 = vld [vmem:[%s2287_s25 + $0x18] sm:$0xf]  ;;  %v2547_v23 = vld [vmem:[%s2287_s25 + $0x14] sm:$0x1] }
  0x35   : > { %v1809_v49 = vcombine.low %v290_v29, %v304_v9  ;;  %v1076_v53 = vsel %vm2429_vm6, %v1902_v41, %v1075_v42  ;;  %v1083_v61 = vrot.slane %v2469_v34, 5  ;;  %v544_v12 = vrot.slane %v2333_v43, 5  ;;  %v2556_v36 = vld [vmem:[%s2287_s25 + $0x1c] sm:$0x1]  ;;  %v1939_v42 = vld [vmem:[%s2287_s25 + $0x20] sm:$0xf] }
  0x36   : > { %v1909_v56 = vcombine.low %v1072_v52, %v1076_v53  ;;  %v1824_v14 = vrot.slane %v507_v47, 9  ;;  %v1825_v16 = vrot.slane %v508_v55, 9  ;;  %v548_v11 = vrot.slane %v2340_v50, 5  ;;  %v1941_v47 = vld [vmem:[%s2287_s25 + $0x28] sm:$0xf] }
  0x37   : > { %2045 = vmatmul.mubr.msk.bf16.gmra.mrb[4].mxu1 %vm326_vm2, %v1809_v49  ;;  %v1080_v18 = vsel %vm2429_vm6, %v1903_v54, %v1079_v59  ;;  %v1084_v21 = vsel %vm2429_vm6, %v1904_v5, %v1083_v61  ;;  %v1826_v24 = vrot.slane %v509_v4, 9  ;;  %v1827_v26 = vrot.slane %v510_v62, 9  ;;  %v2577_v53 = vld [vmem:[%s2287_s25 + $0x24] sm:$0x1]  ;;  %v2588_v5 = vld [vmem:[%s2287_s25 + $0x2c] sm:$0x1] }
  0x38   : > { %2050 = vmatprep.mubr.msk.bf16.mxu1 %vm326_vm2, %v1815_v15  ;;  %v2516_v43 = vsel %vm2429_vm6, %v1824_v14, %v536_v35  ;;  %v2522_v50 = vsel %vm2429_vm6, %v1825_v16, %v540_v40  ;;  %v1828_v19 = vrot.slane %v511_v8, 9  ;;  %v1816_v6 = vcombine.low %v2325_v33, %v2329_v38  ;;  %v2531_v35 = vld [vmem:[%s2754_s1 + $0x18] sm:$0xff]   ;;  %v2535_v40 = vld [vmem:[%s2287_s25 + $0x30] sm:$0xe]  ;;  %v2215_v8 = vld [vmem:[%s2287_s25 + $0x20] ss:$8 sps:$4 sm:$0xff]  }
  0x39   : > { %2091 = vmatmul.mubr.msk.bf16.vlgmr.msra.gmra.mrb[0].mxu0 %vm326_vm2, %v1908_v45  ;;  %v552_v7 = vrot.slane %v2372_v39, 5  ;;  %v1829_v2 = vrot.slane %v512_v3, 9  ;;  %v1910_v29 = vcombine.low %v1080_v18, %v1084_v21  ;;  %v1817_v30 = vcombine.low %v2367_v31, %v2376_v46  ;;  %v2213_v38 = vld [vmem:[%s2287_s25 + $0x10] ss:$8 sps:$4 sm:$0xff]  }
  0x3a   : > { %2099 = vmatpush3.bf16.msra.mxu0 %v2415_v22  ;;  %2094 = vmatprep.mubr.msk.bf16.mxu0 %vm326_vm2, %v1909_v56  ;;  %v1935_v22 = vld [vmem:[%s2287_s25 + $0x10] sm:$0xf]  ;;  %v1818_v33 = vcombine.low %v2388_v57, %v2398_v0  ;;  %v1834_v39 = vcombine.low %v2516_v43, %v2522_v50  ;;  %v2553_v17 = vsel %vm2429_vm6, %v1826_v24, %v544_v12  ;;  %v556_v46 = vrot.slane %v2382_v51, 5 }
  0x3b   : > { %2108 = vmatprep.subr.bf16.mxu0 %v2494_v60  ;;  %v1331_v37 = vshrl.u32 %v1935_v22, 16  ;;  %v1334_v31 = vshll.u32 %v1935_v22, 16  ;;  %v1830_v57 = vrot.slane %v2535_v40, 9  ;;  %v560_v0 = vrot.slane %v2403_v13, 5  ;;  %v2599_v40 = vld [vmem:[%s2287_s25 + $0x34] sm:$0x1] }
  0x3c   : > { %v1345_v41 = vshrl.u32 %v1937_v63, 16  ;;  %v1831_v44 = vrot.slane %v2544_v32, 9  ;;  %v1340_v15 = vshll.u32 %v2547_v23, 16  ;;  %v2570_v51 = vsel %vm2429_vm6, %v1827_v26, %v548_v11  ;;  %v2217_v11 = vld [vmem:[%s2287_s25 + $0x30] ss:$8 sps:$4 sm:$0xff]  }
  0x3d   : > { %v1333_v9 = vrot.slane %v1331_v37, 4  ;;  %v1336_v45 = vrot.slane %v1334_v31, 5  ;;  %v2574_v13 = vsel %vm2429_vm6, %v1828_v19, %v552_v7  ;;  %v1348_v52 = vshll.u32 %v1937_v63, 16  ;;  %v1945_v63 = vld [vmem:[%s2287_s25 + $0x38] sm:$0xf] }
  0x3e   : > { %v1347_v49 = vrot.slane %v1345_v41, 4  ;;  %v1354_v54 = vshll.u32 %v2556_v36, 16  ;;  %v1359_v55 = vshrl.u32 %v1939_v42, 16  ;;  %v1362_v56 = vshll.u32 %v1939_v42, 16  ;;  %v2617_v37 = vld [vmem:[%s2287_s25 + $0x3c] sm:$0x1] }
  0x3f   : > { %2051 = vmatmul.mubr.msk.bf16.vlgmr.msra.gmra.mrb[0].mxu1 %vm326_vm2, %v1816_v6  ;;  %v2585_v59 = vsel %vm2429_vm6, %v1829_v2, %v556_v46  ;;  %v1350_v4 = vrot.slane %v1348_v52, 5  ;;  %v1373_v61 = vshrl.u32 %v1941_v47, 16  ;;  %v1376_v62 = vshll.u32 %v1941_v47, 16  ;;  %v1943_v6 = vld [vmem:[%s2287_s25 + $0x30] sm:$0xf] }
  0x40   : > { %2059 = vmatpush3.bf16.msra.mxu1 %v2393_v58  ;;  %2054 = vmatprep.mubr.msk.bf16.mxu1 %vm326_vm2, %v1817_v30  ;;  %v1337_v58 = vor.u32 %v1336_v45, %v1333_v9  ;;  %v1342_v12 = vrot.slane %v1340_v15, 5  ;;  %v1361_v14 = vrot.slane %v1359_v55, 4  ;;  %v1364_v16 = vrot.slane %v1362_v56, 5  ;;  %v1947_v41 = vld [vmem:[%s2287_s25 + $0x40] sm:$0xf] }
  0x41   : > { %2095 = vmatmul.mubr.msk.bf16.gmra.mrb[4].mxu0 %vm326_vm2, %v1910_v29  ;;  %2068 = vmatprep.subr.bf16.mxu1 %v2531_v35  ;;  %v1368_v3 = vshll.u32 %v2577_v53, 16  ;;  %v1351_v21 = vor.u32 %v1350_v4, %v1347_v49  ;;  %v1375_v24 = vrot.slane %v1373_v61, 4  ;;  %v1378_v43 = vrot.slane %v1376_v62, 5  ;;  %v1949_v47 = vld [vmem:[%s2287_s25 + $0x48] sm:$0xf] }
  0x42   : > { %2100 = vmatprep.mubr.msk.bf16.mxu0 %vm326_vm2, %v2213_v38  ;;  %v1338_v18 = vrot.slane %v1337_v58, 4  ;;  %v564_v50 = vrot.slane %v2409_v20, 5  ;;  %v1356_v26 = vrot.slane %v1354_v54, 5  ;;  %v1365_v19 = vor.u32 %v1364_v16, %v1361_v14  ;;  %v2612_v38 = vld [vmem:[%s2754_s1 + $0x40] sm:$0xff]   ;;  %v2641_v62 = vld [vmem:[%s2287_s25 + $0x4c] sm:$0x1] }
  0x43   : > { %v1382_v22 = vshll.u32 %v2588_v5, 16  ;;  %v1835_v7 = vcombine.low %v2553_v17, %v2570_v51  ;;  %v1352_v2 = vrot.slane %v1351_v21, 4  ;;  %v1387_v29 = vshrl.u32 %v1943_v6, 16  ;;  %v2632_v52 = vld [vmem:[%s2287_s25 + $0x44] sm:$0x1] }
  0x44   : > { %v1836_v30 = vcombine.low %v2574_v13, %v2585_v59  ;;  %v2607_v20 = vsel %vm2429_vm6, %v1830_v57, %v560_v0  ;;  %v2614_v17 = vrot.slane %v1368_v3, 5  ;;  %v1390_v31 = vshll.u32 %v1943_v6, 16  ;;  %v2218_v58 = vld [vmem:[%s2287_s25 + $0x40] ss:$8 sps:$4 sm:$0xff]  }
  0x45   : > { %v1379_v46 = vor.u32 %v1378_v43, %v1375_v24  ;;  %v1389_v57 = vrot.slane %v1387_v29, 4  ;;  %v1401_v0 = vshrl.u32 %v1945_v63, 16  ;;  %v1357_v42 = vsel %vm2319_vm3, %v1352_v2, %v1356_v26 }
  0x46   : > { %v1366_v9 = vrot.slane %v1365_v19, 4  ;;  %v1392_v45 = vrot.slane %v1390_v31, 5  ;;  %v1396_v15 = vshll.u32 %v2599_v40, 16  ;;  %v1404_v13 = vshll.u32 %v1945_v63, 16  ;;  %v1962_v19 = vld [vmem:[%s2287_s25 + $0x10] sm:$0xe] }
  0x47   : > { %2055 = vmatmul.mubr.msk.bf16.gmra.mrb[4].mxu1 %vm326_vm2, %v1818_v33  ;;  %v1343_v33 = vsel %vm2319_vm3, %v1338_v18, %v1342_v12  ;;  %v1403_v51 = vrot.slane %v1401_v0, 4  ;;  %v1410_v49 = vshll.u32 %v2617_v37, 16  ;;  %v565_v54 = vsel %vm2429_vm6, %v1831_v44, %v564_v50  ;;  %v1872_v31 = vld [vmem:[%s2287_s25 + $0x30] sm:$0xf] }
  0x48   : > { %2060 = vmatprep.mubr.msk.bf16.mxu1 %vm326_vm2, %v1834_v39  ;;  %v1384_v39 = vrot.slane %v1382_v22, 5  ;;  %v1393_v55 = vor.u32 %v1392_v45, %v1389_v57  ;;  %v1418_v56 = vshll.u32 %v1947_v41, 16  ;;  %v1953_v59 = vcombine.low %v1343_v33, %v1357_v42  ;;  %v2220_v0 = vld [vmem:[%s2287_s25 + $0x8] ss:$8 sps:$4 sm:$0xff]  }
  0x49   : > { %2101 = vmatmul.mubr.msk.bf16.vlgmr.msra.gmra.mrb[0].mxu0 %vm326_vm2, %v2215_v8  ;;  %v1380_v4 = vrot.slane %v1379_v46, 4  ;;  %v1406_v61 = vrot.slane %v1404_v13, 5  ;;  %v1429_v8 = vshrl.u32 %v1949_v47, 16  ;;  %v1398_v12 = vrot.slane %v1396_v15, 5 }
  0x4a   : > { %2109 = vmatpush3.bf16.msra.mxu0 %v2494_v60  ;;  %2104 = vmatprep.mubr.msk.bf16.mxu0 %vm326_vm2, %v2217_v11  ;;  %v1415_v60 = vshrl.u32 %v1947_v41, 16  ;;  %v1420_v16 = vrot.slane %v1418_v56, 5  ;;  %v1432_v3 = vshll.u32 %v1949_v47, 16  ;;  %v1394_v32 = vrot.slane %v1393_v55, 4 }
  0x4b   : > { %2118 = vmatprep.subr.bf16.mxu0 %v2612_v38  ;;  %v1407_v11 = vor.u32 %v1406_v61, %v1403_v51  ;;  %v1424_v44 = vshll.u32 %v2632_v52, 16  ;;  %v1431_v18 = vrot.slane %v1429_v8, 4  ;;  %v1412_v21 = vrot.slane %v1410_v49, 5 }
  0x4c   : > { %v1417_v14 = vrot.slane %v1415_v60, 4  ;;  %v1434_v24 = vrot.slane %v1432_v3, 5  ;;  %v1438_v43 = vshll.u32 %v2641_v62, 16  ;;  %v1837_v22 = vcombine.low %v2607_v20, %v565_v54  ;;  %v1870_v20 = vld [vmem:[%s2287_s25 + $0x28] sm:$0xf] }
  0x4d   : > { %v1408_v50 = vrot.slane %v1407_v11, 4  ;;  %v1574_v2 = vrot.slane %v2547_v23, 5  ;;  %v1385_v63 = vsel %vm2319_vm3, %v1380_v4, %v1384_v39  ;;  %v1399_v29 = vsel %vm2319_vm3, %v1394_v32, %v1398_v12  ;;  %v2221_v3 = vld [vmem:[%s2287_s25 + $0x18] ss:$8 sps:$4 sm:$0xff]  }
  0x4e   : > { %v1421_v26 = vor.u32 %v1420_v16, %v1417_v14  ;;  %v1435_v6 = vor.u32 %v1434_v24, %v1431_v18  ;;  %v1440_v46 = vrot.slane %v1438_v43, 5  ;;  %v1970_v23 = vrot.slane %v1962_v19, 9  ;;  %v1874_v14 = vld [vmem:[%s2287_s25 + $0x38] sm:$0xf]  ;;  %v1876_v16 = vld [vmem:[%s2287_s25 + $0x40] sm:$0xf] }
  0x4f   : > { %2061 = vmatmul.mubr.msk.bf16.vlgmr.msra.gmra.mrb[0].mxu1 %vm326_vm2, %v1835_v7  ;;  %v1963_v7 = vld [vmem:[%s2287_s25 + $0x18] sm:$0xe]  ;;  %v1413_v33 = vsel %vm2319_vm3, %v1408_v50, %v1412_v21  ;;  %v1578_v57 = vrot.slane %v2556_v36, 5  ;;  %v871_v15 = vshll.u32 %v1870_v20, 16  ;;  %v882_v47 = vshrl.u32 %v1872_v31, 16 }
  0x50   : > { %2069 = vmatpush3.bf16.msra.mxu1 %v2531_v35  ;;  %2064 = vmatprep.mubr.msk.bf16.mxu1 %vm326_vm2, %v1836_v30  ;;  %v1371_v35 = vsel %vm2319_vm3, %v1366_v9, %v2614_v17  ;;  %v1426_v30 = vrot.slane %v1424_v44, 5  ;;  %v1422_v41 = vrot.slane %v1421_v26, 4  ;;  %v1436_v17 = vrot.slane %v1435_v6, 4  ;;  %v1964_v36 = vld [vmem:[%s2287_s25 + $0x20] sm:$0xe] }
  0x51   : > { %2105 = vmatmul.mubr.msk.bf16.gmra.mrb[4].mxu0 %vm326_vm2, %v2218_v58  ;;  %2128 = vmatprep.subr.bf16.mxu1 %v2266_v1  ;;  %v1971_v42 = vrot.slane %v1963_v7, 9  ;;  %v868_v9 = vshrl.u32 %v1870_v20, 16  ;;  %v1954_v45 = vcombine.low %v1371_v35, %v1385_v63  ;;  %v1955_v39 = vcombine.low %v1399_v29, %v1413_v33  ;;  %v1967_v50 = vld [vmem:[%s2287_s25 + $0x38] sm:$0xe]  ;;  %v2222_v26 = vld [vmem:[%s2287_s25 + $0x28] ss:$8 sps:$4 sm:$0xff]  }
  0x52   : > { %2110 = vmatprep.mubr.msk.bf16.mxu0 %vm326_vm2, %v1953_v59  ;;  %v885_v13 = vshll.u32 %v1872_v31, 16  ;;  %v1575_v49 = vsel %vm2429_vm6, %v1970_v23, %v1574_v2  ;;  %v873_v58 = vrot.slane %v871_v15, 5  ;;  %v884_v54 = vrot.slane %v882_v47, 4  ;;  %v1965_v59 = vld [vmem:[%s2287_s25 + $0x28] sm:$0xe] }
  0x53   : > { %v870_v51 = vrot.slane %v868_v9, 4  ;;  %v1427_v55 = vsel %vm2319_vm3, %v1422_v41, %v1426_v30  ;;  %v1441_v60 = vsel %vm2319_vm3, %v1436_v17, %v1440_v46  ;;  %v1579_v56 = vsel %vm2429_vm6, %v1971_v42, %v1578_v57  ;;  %v1968_v41 = vld [vmem:[%s2287_s25 + $0x40] sm:$0xe]  ;;  %v1969_v17 = vld [vmem:[%s2287_s25 + $0x48] sm:$0xe] }
  0x54   : > { %v887_v4 = vrot.slane %v885_v13, 5  ;;  %v877_v8 = vshll.u32 %v2441_v10, 16  ;;  %v891_v12 = vshll.u32 %v2451_v25, 16  ;;  %v1972_v32 = vrot.slane %v1964_v36, 9  ;;  %v1966_v10 = vld [vmem:[%s2287_s25 + $0x30] sm:$0xe] }
  0x55   : > { %v874_v61 = vor.u32 %v873_v58, %v870_v51  ;;  %v1582_v11 = vrot.slane %v2577_v53, 5  ;;  %v1956_v18 = vcombine.low %v1427_v55, %v1441_v60  ;;  %v1980_v21 = vcombine.low %v1575_v49, %v1579_v56 }
  0x56   : > { %v888_v44 = vor.u32 %v887_v4, %v884_v54  ;;  %v1973_v24 = vrot.slane %v1965_v59, 9  ;;  %v1586_v43 = vrot.slane %v2588_v5, 5  ;;  %v896_v25 = vshrl.u32 %v1874_v14, 16 }
  0x57   : > { %2065 = vmatmul.mubr.msk.bf16.gmra.mrb[4].mxu1 %vm326_vm2, %v1837_v22  ;;  %v899_v19 = vshll.u32 %v1874_v14, 16  ;;  %v910_v22 = vshrl.u32 %v1876_v16, 16  ;;  %v913_v6 = vshll.u32 %v1876_v16, 16  ;;  %v879_v7 = vrot.slane %v877_v8, 5 }
  0x58   : > { %2070 = vmatprep.mubr.msk.bf16.mxu1 %vm326_vm2, %v2220_v0  ;;  %v889_v2 = vrot.slane %v888_v44, 4  ;;  %v893_v35 = vrot.slane %v891_v12, 5  ;;  %v1974_v63 = vrot.slane %v1966_v10, 9  ;;  %v1590_v53 = vrot.slane %v2599_v40, 5  ;;  %v2223_v0 = vld [vmem:[%s2287_s25 + $0x38] ss:$8 sps:$4 sm:$0xff]  }
  0x59   : > { %2111 = vmatmul.mubr.msk.bf16.vlgmr.msra.gmra.mrb[0].mxu0 %vm326_vm2, %v1954_v45  ;;  %v1975_v29 = vrot.slane %v1967_v50, 9  ;;  %v1594_v30 = vrot.slane %v2617_v37, 5  ;;  %v898_v5 = vrot.slane %v896_v25, 4  ;;  %v901_v20 = vrot.slane %v899_v19, 5 }
  0x5a   : > { %2119 = vmatpush3.bf16.msra.mxu0 %v2612_v38  ;;  %2114 = vmatprep.mubr.msk.bf16.mxu0 %vm326_vm2, %v1955_v39  ;;  %v875_v38 = vrot.slane %v874_v61, 4  ;;  %v912_v31 = vrot.slane %v910_v22, 4  ;;  %v915_v33 = vrot.slane %v913_v6, 5  ;;  %v905_v46 = vshll.u32 %v2459_v27, 16 }
  0x5b   : > { %v894_v37 = vsel %vm2319_vm3, %v889_v2, %v893_v35  ;;  %v1587_v23 = vsel %vm2429_vm6, %v1973_v24, %v1586_v43  ;;  %v1591_v57 = vsel %vm2429_vm6, %v1974_v63, %v1590_v53  ;;  %v1595_v27 = vsel %vm2429_vm6, %v1975_v29, %v1594_v30 }
  0x5c   : > { %v880_v40 = vsel %vm2319_vm3, %v875_v38, %v879_v7  ;;  %v919_v42 = vshll.u32 %v2469_v34, 16  ;;  %v902_v45 = vor.u32 %v901_v20, %v898_v5  ;;  %v916_v15 = vor.u32 %v915_v33, %v912_v31 }
  0x5d   : > { %v1882_v9 = vcombine.low %v880_v40, %v894_v37  ;;  %v1982_v39 = vcombine.low %v1591_v57, %v1595_v27  ;;  %v1976_v51 = vrot.slane %v1968_v41, 9  ;;  %v1598_v13 = vrot.slane %v2632_v52, 5 }
  0x5e   : > { %v1977_v49 = vrot.slane %v1969_v17, 9  ;;  %v1602_v36 = vrot.slane %v2641_v62, 5  ;;  %v907_v58 = vrot.slane %v905_v46, 5  ;;  %v921_v54 = vrot.slane %v919_v42, 5 }
  0x5f   : > { %2071 = vmatmul.mubr.msk.bf16.vlgmr.msra.gmra.mrb[0].mxu1 %vm326_vm2, %v2221_v3  ;;  %v903_v55 = vrot.slane %v902_v45, 4  ;;  %v917_v60 = vrot.slane %v916_v15, 4  ;;  %v1599_v34 = vsel %vm2429_vm6, %v1976_v51, %v1598_v13 }
  0x60   : > { %2129 = vmatpush3.bf16.msra.mxu1 %v2266_v1  ;;  %2074 = vmatprep.mubr.msk.bf16.mxu1 %vm326_vm2, %v2222_v26  ;;  %v1583_v1 = vsel %vm2429_vm6, %v1972_v32, %v1582_v11  ;;  %v1603_v52 = vsel %vm2429_vm6, %v1977_v49, %v1602_v36 }
  0x61   : > { %2115 = vmatmul.mubr.msk.bf16.gmra.mrb[4].mxu0 %vm326_vm2, %v1956_v18  ;;  %v1981_v47 = vcombine.low %v1583_v1, %v1587_v23  ;;  %v908_v62 = vsel %vm2319_vm3, %v903_v55, %v907_v58  ;;  %v922_v56 = vsel %vm2319_vm3, %v917_v60, %v921_v54  ;;  %v1983_v59 = vcombine.low %v1599_v34, %v1603_v52 }
  0x62   : > { %2120 = vmatprep.mubr.msk.bf16.mxu0 %vm326_vm2, %v1980_v21  ;;  %v1883_v4 = vcombine.low %v908_v62, %v922_v56 }
  0x67   : > { %2075 = vmatmul.mubr.msk.bf16.gmra.mrb[4].mxu1 %vm326_vm2, %v2223_v0 }
  0x68   : > { %2084 = vmatprep.mubr.msk.bf16.mxu1 %vm326_vm2, %v1882_v9 }
  0x69   : > { %2121 = vmatmul.mubr.msk.bf16.vlgmr.msra.gmra.mrb[0].mxu0 %vm326_vm2, %v1981_v47 }
  0x6a   : > { %2124 = vmatprep.mubr.msk.bf16.mxu0 %vm326_vm2, %v1982_v39 }
  0x71   : > { %2125 = vmatmul.mubr.msk.bf16.gmra.mrb[4].mxu0 %vm326_vm2, %v1983_v59 }
  0x73   : > { %2085 = vmatmul.mubr.msk.bf16.vlgmr.msra.gmra.mrb[4].mxu1 %vm326_vm2, %v1883_v4 }
 0x132   : > { %v2072_v61 = vpop.f32.mrb[0].mxu1 }
 0x133   : > { %v756_v8 = vpop.f32.mrb[1].mxu1 }
 0x134   : > { %v2073_v12 = vpop.f32.mrb[2].mxu1 }
 0x135   : > { %v759_v14 = vpop.f32.mrb[3].mxu1 }
 0x13c   : > { %v2122_v16 = vpop.f32.mrb[0].mxu0 }
 0x13d   : > { %v2130_v3 = vadd.f32 %v2122_v16, %v2072_v61  ;;  %v1671_v32 = vpop.f32.mrb[1].mxu0 }
 0x13e   : > { %v2131_v28 = vadd.f32 %v1671_v32, %v756_v8  ;;  %v2123_v11 = vpop.f32.mrb[2].mxu0 }
 0x13f   : > { %v1719_v44 = vadd.f32 %v2130_v3, %v1989_v48  ;;  %v2132_v18 = vadd.f32 %v2123_v11, %v2073_v12  ;;  %v1674_v21 = vpop.f32.mrb[3].mxu0 }
 0x140   : > { %v1717_v24 = vadd.f32 %v2131_v28, %v1989_v48  ;;  %v2133_v43 = vadd.f32 %v1674_v21, %v759_v14 }
 0x141   : > { %v1727_v10 = vmax.f32 %v1719_v44, 0.0  ;;  %v1720_v50 = vadd.f32 %v2132_v18, %v1989_v48 }
 0x142   : > { %v1725_v26 = vmax.f32 %v1717_v24, 0.0  ;;  %v1718_v25 = vadd.f32 %v2133_v43, %v1989_v48 }
 0x143   : > { %1735 = vst [vmem:[%s2740_s16 + $0x10] sm:$0xff] %v1727_v10  ;;  %v1728_v19 = vmax.f32 %v1720_v50, 0.0 }
 0x144   : > { %1733 = vst [vmem:[%s2740_s16] sm:$0xff] %v1725_v26  ;;  %v1726_v22 = vmax.f32 %v1718_v25, 0.0  ;;  %v2126_v6 = vpop.f32.mrb[4].mxu0 }
 0x145   : > { %1736 = vst [vmem:[%s2740_s16 + $0x18] sm:$0xff] %v1728_v19  ;;  %v1687_v38 = vpop.f32.mrb[5].mxu0 }
 0x146   : > { %1734 = vst [vmem:[%s2740_s16 + $0x8] sm:$0xff] %v1726_v22  ;;  %v2086_v7 = vpop.f32.mrb[4].mxu1  ;;  %v2127_v2 = vpop.f32.mrb[6].mxu0 }
 0x147   : > { %v2134_v35 = vadd.f32 %v2126_v6, %v2086_v7  ;;  %v1006_v63 = vpop.f32.mrb[5].mxu1  ;;  %v1690_v53 = vpop.f32.mrb[7].mxu0 }
 0x148   : > { %v2135_v29 = vadd.f32 %v1687_v38, %v1006_v63  ;;  %v2087_v30 = vpop.f32.mrb[6].mxu1 }
 0x149   : > { %v1723_v5 = vadd.f32 %v2134_v35, %v1989_v48  ;;  %v2136_v20 = vadd.f32 %v2127_v2, %v2087_v30  ;;  %v1009_v31 = vpop.f32.mrb[7].mxu1 }
 0x14a   : > { %v1721_v33 = vadd.f32 %v2135_v29, %v1989_v48  ;;  %v2137_v46 = vadd.f32 %v1690_v53, %v1009_v31 }
 0x14b   : > { %v1731_v40 = vmax.f32 %v1723_v5, 0.0  ;;  %v1724_v37 = vadd.f32 %v2136_v20, %v1989_v48 }
 0x14c   : > { %v1729_v1 = vmax.f32 %v1721_v33, 0.0  ;;  %v1722_v23 = vadd.f32 %v2137_v46, %v1989_v48 }
 0x14d   : > { %1739 = vst [vmem:[%s2740_s16 + $0x30] sm:$0xff] %v1731_v40  ;;  %v1732_v57 = vmax.f32 %v1724_v37, 0.0 }
 0x14e   : > { %1737 = vst [vmem:[%s2740_s16 + $0x20] sm:$0xff] %v1729_v1  ;;  %v1730_v27 = vmax.f32 %v1722_v23, 0.0 }
 0x14f   : > { %1740 = vst [vmem:[%s2740_s16 + $0x38] sm:$0xff] %v1732_v57 }
 0x150   : > { %1738 = vst [vmem:[%s2740_s16 + $0x28] sm:$0xff] %v1730_v27 }
 0x151 PF: > { %s13_s12 = sadd.s32 1, %s2230_s12  }
 0x152   : > { %p10_p4 = scmp.ge.s32.totalorder %s13_s12, 4  }
 0x154   :  { %12 = sbr.rel (!%p10_p4) target bundleno = 1 (0x1), region = 72 }

</bundles_post_ra>
